<compile_context>
chip_gen: v7x
topology: tpu7x:2x2x1
jax: 0.10.0
libtpu: 0.0.40
codegen_flags: <defaults>
</compile_context>

<pallas_src>
import functools
import math

import numpy as np
import jax
import jax.numpy as jnp
from jax import lax
from jax.experimental import pallas as pl
from jax.experimental.pallas import tpu as pltpu

PATCH = 32
NPIX = PATCH * PATCH              # 1024 pixels per patch, flattened p = y*32 + x
NUM_ANG = 8
NUM_SPATIAL = 4
NSB2 = NUM_SPATIAL * NUM_SPATIAL  # 16
DESC_DIM = NUM_ANG * NSB2         # 128
EPS = 1e-10
TWO_PI = 2.0 * math.pi
CLIPVAL = 0.2


# ---------------------------------------------------------------------------
# Deterministic "parameter" construction (matches kornia's __init__ formulas)
# ---------------------------------------------------------------------------
@functools.lru_cache(maxsize=1)
def _constants():
    # Gaussian window, sigma = patch_size / sqrt(2), flattened to (1, 1024).
    sigma = float(PATCH) / math.sqrt(2.0)
    xs = np.arange(PATCH, dtype=np.float64) - PATCH // 2
    if PATCH % 2 == 0:
        xs = xs + 0.5
    g = np.exp(-(xs ** 2) / (2.0 * sigma ** 2))
    g = g / g.sum()
    gk = np.outer(g, g).reshape(1, NPIX).astype(np.float32)

    # Separable triangular pooling conv (ksize=12, stride=8, pad=3, zero pad).
    ksize = 2 * (PATCH // (NUM_SPATIAL + 1))   # 12
    stride = PATCH // NUM_SPATIAL              # 8
    pad = ksize // 4                           # 3
    ks_2 = ksize / 2.0
    xc2 = ks_2 - np.abs(np.arange(ksize, dtype=np.float64) + 0.5 - ks_2)
    k1 = xc2 / ks_2
    K = np.zeros((PATCH, NUM_SPATIAL), np.float64)
    for r in range(NUM_SPATIAL):
        for u in range(ksize):
            y = r * stride + u - pad
            if 0 <= y < PATCH:
                K[y, r] += k1[u]
    # P[p = y*32 + x, r*4 + c] = K[y, r] * K[x, c]
    P = np.einsum("yr,xc->yxrc", K, K).reshape(NPIX, NSB2)
    # Block-diagonal pooling matrix: (TB, 8*1024) @ P_bd -> (TB, 128) with the
    # descriptor already ordered [ang_bin, spatial_row, spatial_col] bin-major,
    # matching kornia's torch.cat(dim=1).view(B, -1).
    P_bd = np.zeros((NUM_ANG * NPIX, DESC_DIM), np.float64)
    for i in range(NUM_ANG):
        P_bd[i * NPIX:(i + 1) * NPIX, i * NSB2:(i + 1) * NSB2] = P
    return jnp.asarray(gk), jnp.asarray(P_bd.astype(np.float32))


# ---------------------------------------------------------------------------
# Pallas kernel (one batch tile per grid step, fully vectorized over the tile)
# ---------------------------------------------------------------------------
def sift_desc_kernel(x_ref, gk_ref, pool_ref, out_ref, *, num_ch: int):
    # x_ref: (TB, C*1024) patches flattened row-major; cast AFTER the DMA.
    xb = x_ref[...].astype(jnp.float32)

    # Channel mean via lane-aligned 1024-wide slices.
    img = xb[:, :NPIX]
    for c in range(1, num_ch):
        img = img + xb[:, c * NPIX:(c + 1) * NPIX]
    img = img * (1.0 / float(num_ch))                          # (TB, 1024)

    # Central-difference gradients with replicate boundary (kornia 'diff', *0.5).
    lane = lax.broadcasted_iota(jnp.int32, (1, NPIX), 1)
    xpos = lane & (PATCH - 1)                                   # x = p % 32
    vr = jnp.concatenate([img[:, 1:], img[:, -1:]], axis=1)     # value at p+1
    vl = jnp.concatenate([img[:, :1], img[:, :-1]], axis=1)     # value at p-1
    vr = jnp.where(xpos == PATCH - 1, img, vr)                  # replicate at x=31
    vl = jnp.where(xpos == 0, img, vl)                          # replicate at x=0
    gx = 0.5 * (vr - vl)
    vd = jnp.concatenate([img[:, PATCH:], img[:, -PATCH:]], axis=1)   # y+1 (replicate last row)
    vu = jnp.concatenate([img[:, :PATCH], img[:, :-PATCH]], axis=1)   # y-1 (replicate first row)
    gy = 0.5 * (vd - vu)

    # Gaussian-windowed magnitude and orientation.
    mag = jnp.sqrt(gx * gx + gy * gy + EPS) * gk_ref[...]
    ori = jnp.arctan2(gy, gx + EPS) + TWO_PI
    o_big = (float(NUM_ANG) / TWO_PI) * ori
    bo0f = jnp.floor(o_big)
    frac = o_big - bo0f
    # NOTE: ori is in [pi, 3pi] so o_big is in [4, 12]; a single conditional
    # subtraction of 8 is exactly `% NUM_ANG` here. Revisit if the +2*pi
    # offset ever changes.
    bo0 = jnp.where(bo0f >= float(NUM_ANG), bo0f - float(NUM_ANG), bo0f)
    bo1 = bo0 + 1.0
    bo1 = jnp.where(bo1 >= float(NUM_ANG), bo1 - float(NUM_ANG), bo1)
    wo0 = (1.0 - frac) * mag
    wo1 = frac * mag

    # Soft-assigned per-bin weight maps laid out as one lane-aligned
    # (TB, 8*1024) slab (each 1024-chunk starts on a lane-tile boundary), then
    # a single MXU matmul does the full 4x4 spatial pooling for all 8 bins and
    # emits a lane-dense (TB, 128) descriptor.
    parts = [
        jnp.where(bo0 == float(i), wo0, 0.0) + jnp.where(bo1 == float(i), wo1, 0.0)
        for i in range(NUM_ANG)
    ]
    lhs = jnp.concatenate(parts, axis=1)                        # (TB, 8192)
    desc = jnp.dot(lhs, pool_ref[...], preferred_element_type=jnp.float32)  # (TB, 128)

    # L2-normalize -> clip(0.2) -> L2-normalize -> rootSIFT (L1-normalize + sqrt).
    # x * rsqrt(max(ss, 1e-24)) == x / max(||x||_2, 1e-12) (F.normalize semantics).
    ss = jnp.sum(desc * desc, axis=1, keepdims=True)
    desc = desc * lax.rsqrt(jnp.maximum(ss, 1e-24))
    desc = jnp.clip(desc, 0.0, CLIPVAL)
    ss = jnp.sum(desc * desc, axis=1, keepdims=True)
    desc = desc * lax.rsqrt(jnp.maximum(ss, 1e-24))
    l1 = jnp.sum(jnp.abs(desc), axis=1, keepdims=True)
    desc = jnp.sqrt(desc / jnp.maximum(l1, 1e-12) + EPS)
    out_ref[...] = desc.astype(out_ref.dtype)


# ---------------------------------------------------------------------------
# Wrapper
# ---------------------------------------------------------------------------
def sift_descriptor(x: jax.Array) -> jax.Array:
    """x: (B, C, 32, 32) NCHW. Returns (128, B), matching SiftDescriptor.forward."""
    B, C, H, W = x.shape
    assert H == PATCH and W == PATCH, "patch_size=32 requires 32x32 inputs"
    gk, pool = _constants()

    # Free row-major reshape in the wrapper; dtype is preserved so the kernel's
    # DMA moves the original (possibly narrow) dtype and casts in VMEM.
    x2 = x.reshape(B, C * NPIX)

    # Batch tiling: pad to a sublane multiple (8); take the whole batch in a
    # single grid step when it fits, otherwise stream 32 rows per step.
    bp = ((B + 7) // 8) * 8
    if bp <= 32:
        tb = bp
    else:
        tb = 32
        bp = ((bp + tb - 1) // tb) * tb
    if bp != B:
        x2 = jnp.concatenate([x2, jnp.zeros((bp - B, C * NPIX), x2.dtype)], axis=0)

    nbytes = jnp.dtype(x.dtype).itemsize
    cost = pl.CostEstimate(
        flops=int(bp) * (2 * NUM_ANG * NPIX * DESC_DIM + 64 * NPIX),
        transcendentals=int(bp) * 4 * NPIX,
        bytes_accessed=int(bp) * C * NPIX * int(nbytes)
        + int(bp) * DESC_DIM * 4 + int(pool.size) * 4 + int(gk.size) * 4,
    )

    desc = pl.pallas_call(
        functools.partial(sift_desc_kernel, num_ch=C),
        out_shape=jax.ShapeDtypeStruct((bp, DESC_DIM), jnp.float32),
        grid=(bp // tb,),
        in_specs=[
            pl.BlockSpec((tb, C * NPIX), lambda i: (i, 0)),            # streamed over batch
            pl.BlockSpec((1, NPIX), lambda i: (0, 0)),                 # VMEM-resident consts
            pl.BlockSpec((NUM_ANG * NPIX, DESC_DIM), lambda i: (0, 0)),
        ],
        out_specs=pl.BlockSpec((tb, DESC_DIM), lambda i: (i, 0)),
        compiler_params=pltpu.CompilerParams(
            dimension_semantics=("parallel",),
            vmem_limit_bytes=32 * 1024 * 1024,
        ),
        cost_estimate=cost,
    )(x2, gk, pool)

    # nn.Flatten + .T from the PyTorch module (pure glue).
    return desc[:B].T


if __name__ == "__main__":
    key = jax.random.PRNGKey(0)
    # Small, module-consistent shapes: batch=4, channels=3, 32x32 patches
    # (SIFTDescriptor(patch_size=32) requires 32x32 spatial inputs).
    x = jax.random.normal(key, (4, 3, PATCH, PATCH), dtype=jnp.float32)
    out = jax.jit(sift_descriptor)(x)
    jax.block_until_ready(out)
    assert out.shape == (DESC_DIM, 4), out.shape
    assert bool(jnp.all(jnp.isfinite(out)))
    print("KERNEL_OK")
</pallas_src>

<mosaic_0001>
module attributes {stable_mosaic.version = 11 : i64} {
  func.func @sift_desc_kernel(%arg0: i32, %arg1: memref<8x3072xf32, #tpu.memory_space<vmem>>, %arg2: memref<1x1024xf32, #tpu.memory_space<vmem>>, %arg3: memref<8192x128xf32, #tpu.memory_space<vmem>>, %arg4: memref<8x128xf32, #tpu.memory_space<vmem>>) attributes {dimension_semantics = [#tpu.dimension_semantics<parallel>], iteration_bounds = array<i64: 1>, scalar_prefetch = 0 : i64, scratch_operands = 0 : i64, tpu.core_type = #tpu.core_type<tc>, window_params = [{transform_indices = @transform_0, window_bounds = array<i64: 8, 3072>}, {pipeline_mode = #tpu.pipeline_mode<synchronous>, transform_indices = @transform_1, window_bounds = array<i64: 1, 1024>}, {pipeline_mode = #tpu.pipeline_mode<synchronous>, transform_indices = @transform_2, window_bounds = array<i64: 8192, 128>}, {transform_indices = @transform_3, window_bounds = array<i64: 8, 128>}]} {
    %c0 = arith.constant 0 : index
    %c0_0 = arith.constant 0 : index
    %0 = vector.load %arg1[%c0, %c0_0] : memref<8x3072xf32, #tpu.memory_space<vmem>>, vector<8x3072xf32>
    %1 = vector.extract_strided_slice %0 {offsets = [0, 0], sizes = [8, 1024], strides = [1, 1]} : vector<8x3072xf32> to vector<8x1024xf32>
    %2 = vector.extract_strided_slice %0 {offsets = [0, 1024], sizes = [8, 1024], strides = [1, 1]} : vector<8x3072xf32> to vector<8x1024xf32>
    %3 = arith.addf %1, %2 : vector<8x1024xf32>
    %4 = vector.extract_strided_slice %0 {offsets = [0, 2048], sizes = [8, 1024], strides = [1, 1]} : vector<8x3072xf32> to vector<8x1024xf32>
    %5 = arith.addf %3, %4 : vector<8x1024xf32>
    %cst = arith.constant 0.333333343 : f32
    %6 = vector.broadcast %cst : f32 to vector<8x1024xf32>
    %7 = arith.mulf %5, %6 : vector<8x1024xf32>
    %8 = tpu.iota {dimensions = array<i32: 1>} : vector<1x1024xi32>
    %c31_i32 = arith.constant 31 : i32
    %9 = vector.broadcast %c31_i32 : i32 to vector<1x1024xi32>
    %10 = arith.andi %8, %9 : vector<1x1024xi32>
    %11 = vector.extract_strided_slice %7 {offsets = [0, 1], sizes = [8, 1023], strides = [1, 1]} : vector<8x1024xf32> to vector<8x1023xf32>
    %12 = vector.extract_strided_slice %7 {offsets = [0, 1023], sizes = [8, 1], strides = [1, 1]} : vector<8x1024xf32> to vector<8x1xf32>
    %13 = tpu.concatenate %11, %12 in 1 : vector<8x1023xf32>, vector<8x1xf32> -> vector<8x1024xf32>
    %14 = vector.extract_strided_slice %7 {offsets = [0, 0], sizes = [8, 1], strides = [1, 1]} : vector<8x1024xf32> to vector<8x1xf32>
    %15 = vector.extract_strided_slice %7 {offsets = [0, 0], sizes = [8, 1023], strides = [1, 1]} : vector<8x1024xf32> to vector<8x1023xf32>
    %16 = tpu.concatenate %14, %15 in 1 : vector<8x1xf32>, vector<8x1023xf32> -> vector<8x1024xf32>
    %c31_i32_1 = arith.constant 31 : i32
    %17 = vector.broadcast %c31_i32_1 : i32 to vector<1x1024xi32>
    %18 = arith.cmpi eq, %10, %17 : vector<1x1024xi32>
    %19 = vector.shape_cast %18 : vector<1x1024xi1> to vector<1x1024xi1>
    %20 = vector.broadcast %19 : vector<1x1024xi1> to vector<8x1024xi1>
    %21 = arith.select %20, %7, %13 : vector<8x1024xi1>, vector<8x1024xf32>
    %c0_i32 = arith.constant 0 : i32
    %22 = vector.broadcast %c0_i32 : i32 to vector<1x1024xi32>
    %23 = arith.cmpi eq, %10, %22 : vector<1x1024xi32>
    %24 = vector.shape_cast %23 : vector<1x1024xi1> to vector<1x1024xi1>
    %25 = vector.broadcast %24 : vector<1x1024xi1> to vector<8x1024xi1>
    %26 = arith.select %25, %7, %16 : vector<8x1024xi1>, vector<8x1024xf32>
    %27 = arith.subf %21, %26 : vector<8x1024xf32>
    %cst_2 = arith.constant 5.000000e-01 : f32
    %28 = vector.broadcast %cst_2 : f32 to vector<8x1024xf32>
    %29 = arith.mulf %28, %27 : vector<8x1024xf32>
    %30 = vector.extract_strided_slice %7 {offsets = [0, 32], sizes = [8, 992], strides = [1, 1]} : vector<8x1024xf32> to vector<8x992xf32>
    %31 = vector.extract_strided_slice %7 {offsets = [0, 992], sizes = [8, 32], strides = [1, 1]} : vector<8x1024xf32> to vector<8x32xf32>
    %32 = tpu.concatenate %30, %31 in 1 : vector<8x992xf32>, vector<8x32xf32> -> vector<8x1024xf32>
    %33 = vector.extract_strided_slice %7 {offsets = [0, 0], sizes = [8, 32], strides = [1, 1]} : vector<8x1024xf32> to vector<8x32xf32>
    %34 = vector.extract_strided_slice %7 {offsets = [0, 0], sizes = [8, 992], strides = [1, 1]} : vector<8x1024xf32> to vector<8x992xf32>
    %35 = tpu.concatenate %33, %34 in 1 : vector<8x32xf32>, vector<8x992xf32> -> vector<8x1024xf32>
    %36 = arith.subf %32, %35 : vector<8x1024xf32>
    %cst_3 = arith.constant 5.000000e-01 : f32
    %37 = vector.broadcast %cst_3 : f32 to vector<8x1024xf32>
    %38 = arith.mulf %37, %36 : vector<8x1024xf32>
    %39 = arith.mulf %29, %29 : vector<8x1024xf32>
    %40 = arith.mulf %38, %38 : vector<8x1024xf32>
    %41 = arith.addf %39, %40 : vector<8x1024xf32>
    %cst_4 = arith.constant 1.000000e-10 : f32
    %42 = vector.broadcast %cst_4 : f32 to vector<8x1024xf32>
    %43 = arith.addf %41, %42 : vector<8x1024xf32>
    %44 = math.sqrt %43 : vector<8x1024xf32>
    %c0_5 = arith.constant 0 : index
    %c0_6 = arith.constant 0 : index
    %45 = vector.load %arg2[%c0_5, %c0_6] : memref<1x1024xf32, #tpu.memory_space<vmem>>, vector<1x1024xf32>
    %46 = vector.broadcast %45 : vector<1x1024xf32> to vector<8x1024xf32>
    %47 = arith.mulf %44, %46 : vector<8x1024xf32>
    %cst_7 = arith.constant 1.000000e-10 : f32
    %48 = vector.broadcast %cst_7 : f32 to vector<8x1024xf32>
    %49 = arith.addf %29, %48 : vector<8x1024xf32>
    %50 = math.atan2 %38, %49 : vector<8x1024xf32>
    %cst_8 = arith.constant 6.28318548 : f32
    %51 = vector.broadcast %cst_8 : f32 to vector<8x1024xf32>
    %52 = arith.addf %50, %51 : vector<8x1024xf32>
    %cst_9 = arith.constant 1.27323949 : f32
    %53 = vector.broadcast %cst_9 : f32 to vector<8x1024xf32>
    %54 = arith.mulf %53, %52 : vector<8x1024xf32>
    %55 = math.floor %54 : vector<8x1024xf32>
    %56 = arith.subf %54, %55 : vector<8x1024xf32>
    %cst_10 = arith.constant 8.000000e+00 : f32
    %57 = vector.broadcast %cst_10 : f32 to vector<8x1024xf32>
    %58 = arith.cmpf oge, %55, %57 : vector<8x1024xf32>
    %cst_11 = arith.constant 8.000000e+00 : f32
    %59 = vector.broadcast %cst_11 : f32 to vector<8x1024xf32>
    %60 = arith.subf %55, %59 : vector<8x1024xf32>
    %61 = arith.select %58, %60, %55 : vector<8x1024xi1>, vector<8x1024xf32>
    %cst_12 = arith.constant 1.000000e+00 : f32
    %62 = vector.broadcast %cst_12 : f32 to vector<8x1024xf32>
    %63 = arith.addf %61, %62 : vector<8x1024xf32>
    %cst_13 = arith.constant 8.000000e+00 : f32
    %64 = vector.broadcast %cst_13 : f32 to vector<8x1024xf32>
    %65 = arith.cmpf oge, %63, %64 : vector<8x1024xf32>
    %cst_14 = arith.constant 8.000000e+00 : f32
    %66 = vector.broadcast %cst_14 : f32 to vector<8x1024xf32>
    %67 = arith.subf %63, %66 : vector<8x1024xf32>
    %68 = arith.select %65, %67, %63 : vector<8x1024xi1>, vector<8x1024xf32>
    %cst_15 = arith.constant 1.000000e+00 : f32
    %69 = vector.broadcast %cst_15 : f32 to vector<8x1024xf32>
    %70 = arith.subf %69, %56 : vector<8x1024xf32>
    %71 = arith.mulf %70, %47 : vector<8x1024xf32>
    %72 = arith.mulf %56, %47 : vector<8x1024xf32>
    %cst_16 = arith.constant 0.000000e+00 : f32
    %73 = vector.broadcast %cst_16 : f32 to vector<8x1024xf32>
    %74 = arith.cmpf oeq, %61, %73 : vector<8x1024xf32>
    %cst_17 = arith.constant 0.000000e+00 : f32
    %75 = vector.broadcast %cst_17 : f32 to vector<8x1024xf32>
    %76 = arith.select %74, %71, %75 : vector<8x1024xi1>, vector<8x1024xf32>
    %cst_18 = arith.constant 0.000000e+00 : f32
    %77 = vector.broadcast %cst_18 : f32 to vector<8x1024xf32>
    %78 = arith.cmpf oeq, %68, %77 : vector<8x1024xf32>
    %cst_19 = arith.constant 0.000000e+00 : f32
    %79 = vector.broadcast %cst_19 : f32 to vector<8x1024xf32>
    %80 = arith.select %78, %72, %79 : vector<8x1024xi1>, vector<8x1024xf32>
    %81 = arith.addf %76, %80 : vector<8x1024xf32>
    %cst_20 = arith.constant 1.000000e+00 : f32
    %82 = vector.broadcast %cst_20 : f32 to vector<8x1024xf32>
    %83 = arith.cmpf oeq, %61, %82 : vector<8x1024xf32>
    %cst_21 = arith.constant 0.000000e+00 : f32
    %84 = vector.broadcast %cst_21 : f32 to vector<8x1024xf32>
    %85 = arith.select %83, %71, %84 : vector<8x1024xi1>, vector<8x1024xf32>
    %cst_22 = arith.constant 1.000000e+00 : f32
    %86 = vector.broadcast %cst_22 : f32 to vector<8x1024xf32>
    %87 = arith.cmpf oeq, %68, %86 : vector<8x1024xf32>
    %cst_23 = arith.constant 0.000000e+00 : f32
    %88 = vector.broadcast %cst_23 : f32 to vector<8x1024xf32>
    %89 = arith.select %87, %72, %88 : vector<8x1024xi1>, vector<8x1024xf32>
    %90 = arith.addf %85, %89 : vector<8x1024xf32>
    %cst_24 = arith.constant 2.000000e+00 : f32
    %91 = vector.broadcast %cst_24 : f32 to vector<8x1024xf32>
    %92 = arith.cmpf oeq, %61, %91 : vector<8x1024xf32>
    %cst_25 = arith.constant 0.000000e+00 : f32
    %93 = vector.broadcast %cst_25 : f32 to vector<8x1024xf32>
    %94 = arith.select %92, %71, %93 : vector<8x1024xi1>, vector<8x1024xf32>
    %cst_26 = arith.constant 2.000000e+00 : f32
    %95 = vector.broadcast %cst_26 : f32 to vector<8x1024xf32>
    %96 = arith.cmpf oeq, %68, %95 : vector<8x1024xf32>
    %cst_27 = arith.constant 0.000000e+00 : f32
    %97 = vector.broadcast %cst_27 : f32 to vector<8x1024xf32>
    %98 = arith.select %96, %72, %97 : vector<8x1024xi1>, vector<8x1024xf32>
    %99 = arith.addf %94, %98 : vector<8x1024xf32>
    %cst_28 = arith.constant 3.000000e+00 : f32
    %100 = vector.broadcast %cst_28 : f32 to vector<8x1024xf32>
    %101 = arith.cmpf oeq, %61, %100 : vector<8x1024xf32>
    %cst_29 = arith.constant 0.000000e+00 : f32
    %102 = vector.broadcast %cst_29 : f32 to vector<8x1024xf32>
    %103 = arith.select %101, %71, %102 : vector<8x1024xi1>, vector<8x1024xf32>
    %cst_30 = arith.constant 3.000000e+00 : f32
    %104 = vector.broadcast %cst_30 : f32 to vector<8x1024xf32>
    %105 = arith.cmpf oeq, %68, %104 : vector<8x1024xf32>
    %cst_31 = arith.constant 0.000000e+00 : f32
    %106 = vector.broadcast %cst_31 : f32 to vector<8x1024xf32>
    %107 = arith.select %105, %72, %106 : vector<8x1024xi1>, vector<8x1024xf32>
    %108 = arith.addf %103, %107 : vector<8x1024xf32>
    %cst_32 = arith.constant 4.000000e+00 : f32
    %109 = vector.broadcast %cst_32 : f32 to vector<8x1024xf32>
    %110 = arith.cmpf oeq, %61, %109 : vector<8x1024xf32>
    %cst_33 = arith.constant 0.000000e+00 : f32
    %111 = vector.broadcast %cst_33 : f32 to vector<8x1024xf32>
    %112 = arith.select %110, %71, %111 : vector<8x1024xi1>, vector<8x1024xf32>
    %cst_34 = arith.constant 4.000000e+00 : f32
    %113 = vector.broadcast %cst_34 : f32 to vector<8x1024xf32>
    %114 = arith.cmpf oeq, %68, %113 : vector<8x1024xf32>
    %cst_35 = arith.constant 0.000000e+00 : f32
    %115 = vector.broadcast %cst_35 : f32 to vector<8x1024xf32>
    %116 = arith.select %114, %72, %115 : vector<8x1024xi1>, vector<8x1024xf32>
    %117 = arith.addf %112, %116 : vector<8x1024xf32>
    %cst_36 = arith.constant 5.000000e+00 : f32
    %118 = vector.broadcast %cst_36 : f32 to vector<8x1024xf32>
    %119 = arith.cmpf oeq, %61, %118 : vector<8x1024xf32>
    %cst_37 = arith.constant 0.000000e+00 : f32
    %120 = vector.broadcast %cst_37 : f32 to vector<8x1024xf32>
    %121 = arith.select %119, %71, %120 : vector<8x1024xi1>, vector<8x1024xf32>
    %cst_38 = arith.constant 5.000000e+00 : f32
    %122 = vector.broadcast %cst_38 : f32 to vector<8x1024xf32>
    %123 = arith.cmpf oeq, %68, %122 : vector<8x1024xf32>
    %cst_39 = arith.constant 0.000000e+00 : f32
    %124 = vector.broadcast %cst_39 : f32 to vector<8x1024xf32>
    %125 = arith.select %123, %72, %124 : vector<8x1024xi1>, vector<8x1024xf32>
    %126 = arith.addf %121, %125 : vector<8x1024xf32>
    %cst_40 = arith.constant 6.000000e+00 : f32
    %127 = vector.broadcast %cst_40 : f32 to vector<8x1024xf32>
    %128 = arith.cmpf oeq, %61, %127 : vector<8x1024xf32>
    %cst_41 = arith.constant 0.000000e+00 : f32
    %129 = vector.broadcast %cst_41 : f32 to vector<8x1024xf32>
    %130 = arith.select %128, %71, %129 : vector<8x1024xi1>, vector<8x1024xf32>
    %cst_42 = arith.constant 6.000000e+00 : f32
    %131 = vector.broadcast %cst_42 : f32 to vector<8x1024xf32>
    %132 = arith.cmpf oeq, %68, %131 : vector<8x1024xf32>
    %cst_43 = arith.constant 0.000000e+00 : f32
    %133 = vector.broadcast %cst_43 : f32 to vector<8x1024xf32>
    %134 = arith.select %132, %72, %133 : vector<8x1024xi1>, vector<8x1024xf32>
    %135 = arith.addf %130, %134 : vector<8x1024xf32>
    %cst_44 = arith.constant 7.000000e+00 : f32
    %136 = vector.broadcast %cst_44 : f32 to vector<8x1024xf32>
    %137 = arith.cmpf oeq, %61, %136 : vector<8x1024xf32>
    %cst_45 = arith.constant 0.000000e+00 : f32
    %138 = vector.broadcast %cst_45 : f32 to vector<8x1024xf32>
    %139 = arith.select %137, %71, %138 : vector<8x1024xi1>, vector<8x1024xf32>
    %cst_46 = arith.constant 7.000000e+00 : f32
    %140 = vector.broadcast %cst_46 : f32 to vector<8x1024xf32>
    %141 = arith.cmpf oeq, %68, %140 : vector<8x1024xf32>
    %cst_47 = arith.constant 0.000000e+00 : f32
    %142 = vector.broadcast %cst_47 : f32 to vector<8x1024xf32>
    %143 = arith.select %141, %72, %142 : vector<8x1024xi1>, vector<8x1024xf32>
    %144 = arith.addf %139, %143 : vector<8x1024xf32>
    %145 = tpu.concatenate %81, %90, %99, %108, %117, %126, %135, %144 in 1 : vector<8x1024xf32>, vector<8x1024xf32>, vector<8x1024xf32>, vector<8x1024xf32>, vector<8x1024xf32>, vector<8x1024xf32>, vector<8x1024xf32>, vector<8x1024xf32> -> vector<8x8192xf32>
    %c0_48 = arith.constant 0 : index
    %c0_49 = arith.constant 0 : index
    %146 = vector.load %arg3[%c0_48, %c0_49] : memref<8192x128xf32, #tpu.memory_space<vmem>>, vector<8192x128xf32>
    %cst_50 = arith.constant dense<0.000000e+00> : vector<8x128xf32>
    %147 = tpu.matmul %145, %146, %cst_50 {dimension_numbers = #tpu.dot_dimension_numbers<[1], [0], [0], [1], [0, 0, 1, 1], [], []>} : vector<8x8192xf32>, vector<8192x128xf32>, vector<8x128xf32> -> vector<8x128xf32>
    %148 = arith.mulf %147, %147 : vector<8x128xf32>
    %cst_51 = arith.constant dense<0.000000e+00> : vector<8xf32>
    %149 = vector.multi_reduction <add>, %148, %cst_51 [1] : vector<8x128xf32> to vector<8xf32>
    %150 = vector.shape_cast %149 : vector<8xf32> to vector<8x1xf32>
    %cst_52 = arith.constant 1.000000e-24 : f32
    %151 = vector.broadcast %cst_52 : f32 to vector<8x1xf32>
    %152 = arith.maximumf %150, %151 : vector<8x1xf32>
    %153 = math.rsqrt %152 : vector<8x1xf32>
    %154 = vector.broadcast %153 : vector<8x1xf32> to vector<8x128xf32>
    %155 = arith.mulf %147, %154 : vector<8x128xf32>
    %cst_53 = arith.constant 0.000000e+00 : f32
    %cst_54 = arith.constant 2.000000e-01 : f32
    %156 = vector.broadcast %cst_53 : f32 to vector<8x128xf32>
    %157 = arith.maximumf %156, %155 : vector<8x128xf32>
    %158 = vector.broadcast %cst_54 : f32 to vector<8x128xf32>
    %159 = arith.minimumf %158, %157 : vector<8x128xf32>
    %160 = arith.mulf %159, %159 : vector<8x128xf32>
    %cst_55 = arith.constant dense<0.000000e+00> : vector<8xf32>
    %161 = vector.multi_reduction <add>, %160, %cst_55 [1] : vector<8x128xf32> to vector<8xf32>
    %162 = vector.shape_cast %161 : vector<8xf32> to vector<8x1xf32>
    %cst_56 = arith.constant 1.000000e-24 : f32
    %163 = vector.broadcast %cst_56 : f32 to vector<8x1xf32>
    %164 = arith.maximumf %162, %163 : vector<8x1xf32>
    %165 = math.rsqrt %164 : vector<8x1xf32>
    %166 = vector.broadcast %165 : vector<8x1xf32> to vector<8x128xf32>
    %167 = arith.mulf %159, %166 : vector<8x128xf32>
    %168 = math.absf %167 : vector<8x128xf32>
    %cst_57 = arith.constant dense<0.000000e+00> : vector<8xf32>
    %169 = vector.multi_reduction <add>, %168, %cst_57 [1] : vector<8x128xf32> to vector<8xf32>
    %170 = vector.shape_cast %169 : vector<8xf32> to vector<8x1xf32>
    %cst_58 = arith.constant 9.99999996E-13 : f32
    %171 = vector.broadcast %cst_58 : f32 to vector<8x1xf32>
    %172 = arith.maximumf %170, %171 : vector<8x1xf32>
    %173 = vector.broadcast %172 : vector<8x1xf32> to vector<8x128xf32>
    %174 = arith.divf %167, %173 : vector<8x128xf32>
    %cst_59 = arith.constant 1.000000e-10 : f32
    %175 = vector.broadcast %cst_59 : f32 to vector<8x128xf32>
    %176 = arith.addf %174, %175 : vector<8x128xf32>
    %177 = math.sqrt %176 : vector<8x128xf32>
    %c0_60 = arith.constant 0 : index
    %c0_61 = arith.constant 0 : index
    %178 = vector.load %arg4[%c0_60, %c0_61] : memref<8x128xf32, #tpu.memory_space<vmem>>, vector<8x128xf32>
    tpu.vector_store %arg4[%c0_60, %c0_61], %177 {strides = array<i32>} : memref<8x128xf32, #tpu.memory_space<vmem>>, vector<8x128xf32>,
    return
  }
  func.func @transform_0(%arg0: i32) -> (i32, i32) {
    %c0_i32 = arith.constant 0 : i32
    %c0_i32_0 = arith.constant 0 : i32
    return %arg0, %c0_i32 : i32, i32
  }
  func.func @transform_1(%arg0: i32) -> (i32, i32) {
    %c0_i32 = arith.constant 0 : i32
    %c0_i32_0 = arith.constant 0 : i32
    %c0_i32_1 = arith.constant 0 : i32
    return %c0_i32, %c0_i32_0 : i32, i32
  }
  func.func @transform_2(%arg0: i32) -> (i32, i32) {
    %c0_i32 = arith.constant 0 : i32
    %c0_i32_0 = arith.constant 0 : i32
    %c0_i32_1 = arith.constant 0 : i32
    return %c0_i32, %c0_i32_0 : i32, i32
  }
  func.func @transform_3(%arg0: i32) -> (i32, i32) {
    %c0_i32 = arith.constant 0 : i32
    %c0_i32_0 = arith.constant 0 : i32
    return %arg0, %c0_i32 : i32, i32
  }
}

</mosaic_0001>

<bundles_post_ra>
// kernel: sift_descriptor.1
= control target key start
LH: loop header
LB: loop body
LE: loop exit
PB: predicated region body
PF: predicated region fallthrough
CT: control target
= control target key end

     0   :  { %8 = vsyncpa [#allocation3], 0  ;;  %s8728_s0 = inlined_call_operand.vmem [shape: f32[8,3072], index: 0, kind: input, shape index: {}]   ;;  %s8729_s1 = inlined_call_operand.hbm [shape: f32[1,1024], index: 1, kind: input, shape index: {}]   ;;  %s8730_s2 = inlined_call_operand.hbm [shape: f32[8192,128], index: 2, kind: input, shape index: {}]   ;;  %s8731_s3 = inlined_call_operand.vmem [shape: f32[8,128], index: 3, kind: output, shape index: {}]  }
   0x1   :  { %9 = vsyncpa [#allocation5], 0  ;;  %s6853_s12 = smov [#allocation2]   ;;  %s6854_s14 = smov [#allocation4]  }
   0x2   :  { %s18_s13 = sshll.u32 %s6853_s12, 4  ;;  %s27_s15 = sshll.u32 %s6854_s14, 4  ;;  %s19_s13 = int_to_ptr.vmem [resolvable:$true] %s18_s13  ;;  %s6883_s15 = int_to_ptr.vmem [resolvable:$true] %s27_s15 }
   0x3   :  { %s6805_s18 = scalar_lea.hbm %s8729_s1, 128 }
   0x4   :  { %p6806_p0 = scmp.ne.s32.totalorder %s8729_s1, %s6805_s18  ;;  %p6809_p1 = scmp.lt.u32.totalorder %s6805_s18, %s8729_s1 }
   0x6   :  { %p6811_p2 = pnand %p6809_p1, %p6806_p0 }
   0x8   :  { %6814 = shalt.err (!%p6811_p2)
}
   0x9   :  { %s6815_s23 = scalar_lea.vmem %s19_s13, 128  ;;  %p6820_p4 = scmp.lt.s32.totalorder %s19_s13, %s19_s13 }
   0xa   :  { %p6816_p3 = scmp.ne.s32.totalorder %s19_s13, %s6815_s23  ;;  %p6821_p5 = scmp.lt.s32.totalorder %s6815_s23, %s6815_s23 }
   0xc   :  { %p6822_p6 = por %p6821_p5, %p6820_p4 }
   0xe   :  { %p6823_p7 = pnand %p6822_p6, %p6816_p3 }
  0x10   :  { %6826 = shalt.err (!%p6823_p7)
}
  0x11   :  { %21 = dma.hbm_to_vmem [thread:$0]  %s8729_s1, 128, %s19_s13, [#allocation3]  }
  0x12   :  { %s6827_s28 = scalar_lea.hbm %s8730_s2, 131072 }
  0x13   :  { %p6828_p8 = scmp.ne.s32.totalorder %s8730_s2, %s6827_s28  ;;  %p6831_p9 = scmp.lt.u32.totalorder %s6827_s28, %s8730_s2 }
  0x15   :  { %p6833_p10 = pnand %p6831_p9, %p6828_p8 }
  0x17   :  { %6836 = shalt.err (!%p6833_p10)
}
  0x18   :  { %s6837_s6 = scalar_lea.vmem %s6883_s15, 131072  ;;  %p6842_p12 = scmp.lt.s32.totalorder %s6883_s15, %s6883_s15 }
  0x19   :  { %p6838_p11 = scmp.ne.s32.totalorder %s6883_s15, %s6837_s6  ;;  %p6843_p13 = scmp.lt.s32.totalorder %s6837_s6, %s6837_s6 }
  0x1b   :  { %p6844_p0 = por %p6843_p13, %p6842_p12 }
  0x1d   :  { %p6845_p1 = pnand %p6844_p0, %p6838_p11 }
  0x1f   :  { %6848 = shalt.err (!%p6845_p1)
}
  0x20   :  { %s6855_s1 = smov 128   ;;  %s6856_s7 = smov 8  }
  0x21   :  { %33 = dma.hbm_to_vmem [thread:$0]  %s8730_s2, 131072, %s6883_s15, [#allocation5], %s6855_s1, %s6855_s1, %s6856_s7  }
  0x22   :  { %6849 = dma.done.wait [#allocation3], 128  }
  0x23   :  { %6850 = vsyncadd [#allocation3], 4294967168 }
  0x24   :  { %6851 = dma.done.wait [#allocation5], 131072  }
  0x25   :  { %6852 = vsyncadd [#allocation5], 4294836224  ;;  %v41_v0 = vld [vmem:[%s8728_s0 + $0x8] sm:$0xff]  ;;  %v40_v4 = vld [vmem:[%s8728_s0] sm:$0xff]  ;;  %s6857_s9 = smov 127   ;;  %s6858_s10 = smov 1   ;;  %v88_v49 = vlaneseq }
  0x26   :  { %v49_v1 = vld [vmem:[%s8728_s0 + $0x48] sm:$0xff]  ;;  %v48_v5 = vld [vmem:[%s8728_s0 + $0x40] sm:$0xff]  ;;  %v42_v8 = vld [vmem:[%s8728_s0 + $0x10] sm:$0xff]  ;;  %s6859_s13 = smov 96   ;;  %s6860_s14 = smov 32   ;;  %vm129_vm0 = vcmask 1039360  }
  0x27   :  { %v57_v2 = vld [vmem:[%s8728_s0 + $0x88] sm:$0xff]  ;;  %v65_v3 = vadd.f32 %v49_v1, %v41_v0  ;;  %v56_v6 = vld [vmem:[%s8728_s0 + $0x80] sm:$0xff]  ;;  %v64_v7 = vadd.f32 %v48_v5, %v40_v4  ;;  %v50_v9 = vld [vmem:[%s8728_s0 + $0x50] sm:$0xff]  ;;  %v7066_v51 = vand.u32 127, %v88_v49  ;;  %vm162_vm1 = vcmask 7168  }
  0x28   :  { %v58_v10 = vld [vmem:[%s8728_s0 + $0x90] sm:$0xff]  ;;  %v66_v12 = vadd.f32 %v50_v9, %v42_v8  ;;  %v43_v13 = vld [vmem:[%s8728_s0 + $0x18] sm:$0xff]  ;;  %v44_v17 = vld [vmem:[%s8728_s0 + $0x20] sm:$0xff]  ;;  %vm8748_vm6 = vcmask 785408   ;;  %vm8750_vm7 = vcmask 261120  }
  0x29   :  { %v73_v11 = vadd.f32 %v65_v3, %v57_v2  ;;  %v51_v14 = vld [vmem:[%s8728_s0 + $0x58] sm:$0xff]  ;;  %v72_v15 = vadd.f32 %v64_v7, %v56_v6  ;;  %v52_v18 = vld [vmem:[%s8728_s0 + $0x60] sm:$0xff]  ;;  %v45_v30 = vld [vmem:[%s8728_s0 + $0x28] sm:$0xff]  ;;  %v90_v54 = vadd.s32 128, %v7066_v51  ;;  %v97_v58 = vand.u32 31, %v7066_v51 }
  0x2a   :  { %v67_v16 = vadd.f32 %v51_v14, %v43_v13  ;;  %v74_v20 = vadd.f32 %v66_v12, %v58_v10  ;;  %v59_v21 = vld [vmem:[%s8728_s0 + $0x98] sm:$0xff]  ;;  %v68_v24 = vadd.f32 %v52_v18, %v44_v17  ;;  %v60_v26 = vld [vmem:[%s8728_s0 + $0xa0] sm:$0xff]  ;;  %v53_v31 = vld [vmem:[%s8728_s0 + $0x68] sm:$0xff]  ;;  %v91_v17 = vadd.s32 256, %v7066_v51 }
  0x2b   :  { %v6953_v19 = vmul.f32 0.33333334, %v73_v11  ;;  %v6958_v22 = vmul.f32 0.33333334, %v72_v15  ;;  %v46_v32 = vld [vmem:[%s8728_s0 + $0x30] sm:$0xff]  ;;  %v69_v34 = vadd.f32 %v53_v31, %v45_v30  ;;  %v61_v35 = vld [vmem:[%s8728_s0 + $0xa8] sm:$0xff] }
  0x2c   :  { %v6962_v23 = vmul.f32 0.33333334, %v74_v20  ;;  %v75_v25 = vadd.f32 %v67_v16, %v59_v21  ;;  %v76_v27 = vadd.f32 %v68_v24, %v60_v26  ;;  %v54_v33 = vld [vmem:[%s8728_s0 + $0x70] sm:$0xff]  ;;  %v47_v40 = vld [vmem:[%s8728_s0 + $0x38] sm:$0xff]  ;;  %v98_v57 = vand.u32 31, %v90_v54  ;;  %v1311_v6 = vld [vmem:[#allocation4 + $0x80] sm:$0xff] }
  0x2d   :  { %115 = vrot.lane.b32.xlu0 %v6953_v19, %s6857_s9  ;;  %146 = vrot.lane.b32.xlu1 %v6958_v22, %s6858_s10  ;;  %v70_v36 = vadd.f32 %v54_v33, %v46_v32  ;;  %v62_v37 = vld [vmem:[%s8728_s0 + $0xb0] sm:$0xff]  ;;  %v77_v38 = vadd.f32 %v69_v34, %v61_v35  ;;  %v55_v41 = vld [vmem:[%s8728_s0 + $0x78] sm:$0xff]  ;;  %vm7089_vm4 = vcmp.eq.s32.totalorder %v97_v58, 31  ;;  %vm7094_vm5 = vcmp.eq.s32.totalorder %v97_v58, 0  ;;  %v1295_v11 = vld [vmem:[#allocation4] sm:$0xff] }
  0x2e   :  { %v6973_v28 = vmul.f32 0.33333334, %v75_v25  ;;  %v6977_v29 = vmul.f32 0.33333334, %v76_v27  ;;  %v71_v43 = vadd.f32 %v55_v41, %v47_v40  ;;  %v63_v45 = vld [vmem:[%s8728_s0 + $0xb8] sm:$0xff]  ;;  %vm7078_vm2 = vcmp.eq.s32.totalorder %v98_v57, 31 }
  0x2f   :  { %v78_v39 = vadd.f32 %v70_v36, %v62_v37  ;;  %v7027_v42 = vmul.f32 0.33333334, %v77_v38  ;;  %vm7084_vm3 = vcmp.eq.s32.totalorder %v98_v57, 0  ;;  %v1312_v10 = vld [vmem:[#allocation4 + $0x88] sm:$0xff]  ;;  %v1313_v14 = vld [vmem:[#allocation4 + $0x90] sm:$0xff]  ;;  %v1314_v15 = vld [vmem:[#allocation4 + $0x98] sm:$0xff] }
  0x30   :  { %v79_v46 = vadd.f32 %v71_v43, %v63_v45  ;;  %v1296_v12 = vld [vmem:[#allocation4 + $0x8] sm:$0xff]  ;;  %v5734_v24 = vpack.c.bf16 %v1314_v15, %v1313_v14  ;;  %v1297_v25 = vld [vmem:[#allocation4 + $0x10] sm:$0xff]  ;;  %v1298_v26 = vld [vmem:[#allocation4 + $0x18] sm:$0xff]  ;;  %v99_v34 = vand.u32 31, %v91_v17 }
  0x31   :  { %117 = vrot.lane.b32.xlu0 %v6962_v23, %s6857_s9  ;;  %148 = vrot.lane.b32.xlu1 %v6953_v19, %s6858_s10  ;;  %v7031_v44 = vmul.f32 0.33333334, %v78_v39  ;;  %v5732_v21 = vpack.c.bf16 %v1296_v12, %v1295_v11  ;;  %v1315_v31 = vld [vmem:[#allocation4 + $0xa0] sm:$0xff]  ;;  %v1316_v32 = vld [vmem:[#allocation4 + $0xa8] sm:$0xff]  ;;  %v5736_v35 = vpack.c.bf16 %v1298_v26, %v1297_v25  ;;  %v1318_v1 = vld [vmem:[#allocation4 + $0xb8] sm:$0xff] }
  0x32   :  { %v7042_v47 = vmul.f32 0.33333334, %v79_v46  ;;  %v1343_v33 = vld [vmem:[#allocation4 + $0x180] sm:$0xff]  ;;  %v1344_v36 = vld [vmem:[#allocation4 + $0x188] sm:$0xff]  ;;  %v5738_v39 = vpack.c.bf16 %v1316_v32, %v1315_v31  ;;  %vm7125_vm8 = vcmp.eq.s32.totalorder %v99_v34, 0  ;;  %vm7145_vm9 = vcmp.eq.s32.totalorder %v99_v34, 31 }
  0x33   :  { %v5762_v40 = vpack.c.bf16 %v1344_v36, %v1343_v33  ;;  %v1299_v41 = vld [vmem:[#allocation4 + $0x20] sm:$0xff]  ;;  %v1300_v43 = vld [vmem:[#allocation4 + $0x28] sm:$0xff]  ;;  %v1302_v12 = vld [vmem:[#allocation4 + $0x38] sm:$0xff] }
  0x34   :  { %v1327_v57 = vld [vmem:[#allocation4 + $0x100] sm:$0xff]  ;;  %v1328_v58 = vld [vmem:[#allocation4 + $0x108] sm:$0xff]  ;;  %v5740_v63 = vpack.c.bf16 %v1300_v43, %v1299_v41  ;;  %v1330_v14 = vld [vmem:[#allocation4 + $0x118] sm:$0xff] }
  0x35   :  { %113 = vrot.lane.b32.xlu0 %v6958_v22, %s6857_s9  ;;  %119 = vrot.lane.b32.xlu1 %v6973_v28, %s6857_s9  ;;  %v5764_v11 = vpack.c.bf16 %v1328_v58, %v1327_v57  ;;  %v7177_v36 = vld [vmem:[#allocation2] sm:$0xff] }
  0x36   :  { %5763 = vmatprep.subr.bf16.mxu1 %v5762_v40  ;;  %v7183_v40 = vadd.s32 512, %v7066_v51 }
  0x37   :  { %5765 = vmatpush3.bf16.msra.mxu1 %v5764_v11 }
  0x39   :  { %121 = vrot.lane.b32.xlu0 %v6977_v29, %s6857_s9  ;;  %150 = vrot.lane.b32.xlu1 %v6962_v23, %s6858_s10 }
  0x3d   :  { %152 = vrot.lane.b32.xlu0 %v6973_v28, %s6858_s10  ;;  %261 = vrot.lane.b32.xlu1 %v6953_v19, %s6859_s13 }
  0x41   :  { %263 = vrot.lane.b32.xlu0 %v6962_v23, %s6859_s13  ;;  %292 = vrot.lane.b32.xlu1 %v6958_v22, %s6860_s14 }
  0x45   :  { %294 = vrot.lane.b32.xlu0 %v6953_v19, %s6860_s14  ;;  %259 = vrot.lane.b32.xlu1 %v6958_v22, %s6859_s13 }
  0x49   :  { %265 = vrot.lane.b32.xlu0 %v6973_v28, %s6859_s13  ;;  %267 = vrot.lane.b32.xlu1 %v6977_v29, %s6859_s13 }
  0x4d   :  { %296 = vrot.lane.b32.xlu0 %v6962_v23, %s6860_s14  ;;  %298 = vrot.lane.b32.xlu1 %v6973_v28, %s6860_s14 }
  0x51   :  { %123 = vrot.lane.b32.xlu0 %v7027_v42, %s6857_s9  ;;  %125 = vrot.lane.b32.xlu1 %v7031_v44, %s6857_s9 }
  0x55   :  { %154 = vrot.lane.b32.xlu0 %v6977_v29, %s6858_s10  ;;  %156 = vrot.lane.b32.xlu1 %v7027_v42, %s6858_s10 }
  0x59   :  { %127 = vrot.lane.b32.xlu0 %v7042_v47, %s6857_s9  ;;  %158 = vrot.lane.b32.xlu1 %v7031_v44, %s6858_s10 }
  0x5d   :  { %160 = vrot.lane.b32.xlu0 %v7042_v47, %s6858_s10  ;;  %269 = vrot.lane.b32.xlu1 %v7027_v42, %s6859_s13 }
  0x61   :  { %271 = vrot.lane.b32.xlu0 %v7031_v44, %s6859_s13  ;;  %300 = vrot.lane.b32.xlu1 %v6977_v29, %s6860_s14 }
  0x65   :  { %302 = vrot.lane.b32.xlu0 %v7027_v42, %s6860_s14  ;;  %273 = vrot.lane.b32.xlu1 %v7042_v47, %s6859_s13 }
  0x69   :  { %304 = vrot.lane.b32.xlu0 %v7031_v44, %s6860_s14  ;;  %306 = vrot.lane.b32.xlu1 %v7042_v47, %s6860_s14 }
  0x9f   :  { %v116_v48 = vpop.permute.xlu0 %115  ;;  %v147_v50 = vpop.permute.xlu1 %146 }
  0xa0   :  { %v178_v4 = vsel %vm162_vm1, %v6958_v22, %v147_v50 }
  0xa1   :  { %v235_v16 = vsel %vm7094_vm5, %v6958_v22, %v178_v4 }
  0xa3   :  { %v7068_v52 = vpop.permute.xlu0 %117  ;;  %v149_v53 = vpop.permute.xlu1 %148 }
  0xa4   :  { %v131_v62 = vsel %vm129_vm0, %v116_v48, %v7068_v52  ;;  %v163_v0 = vsel %vm162_vm1, %v147_v50, %v149_v53 }
  0xa5   :  { %v204_v7 = vsel %vm7078_vm2, %v6953_v19, %v131_v62  ;;  %v236_v8 = vsel %vm7084_vm3, %v6953_v19, %v163_v0  ;;  %v5730_v19 = vpack.c.bf16 %v1312_v10, %v1311_v6  ;;  %v1317_v0 = vld [vmem:[#allocation4 + $0xb0] sm:$0xff] }
  0xa6   :  { %v244_v18 = vsub.f32 %v204_v7, %v236_v8  ;;  %v1345_v6 = vld [vmem:[#allocation4 + $0x190] sm:$0xff]  ;;  %v1346_v7 = vld [vmem:[#allocation4 + $0x198] sm:$0xff] }
  0xa7   :  { %v114_v55 = vpop.permute.xlu0 %113  ;;  %v7071_v56 = vpop.permute.xlu1 %119  ;;  %5731 = vmatprep.subr.bf16.mxu0 %v5730_v19 }
  0xa8   :  { %v130_v2 = vsel %vm129_vm0, %v114_v55, %v116_v48  ;;  %5733 = vmatpush3.bf16.msra.mxu0 %v5732_v21  ;;  %v7117_v37 = vmul.f32 0.5, %v244_v18  ;;  %v7123_v48 = vshrl.u32 %v88_v49, 7  ;;  %v132_v10 = vsel %vm129_vm0, %v7068_v52, %v7071_v56 }
  0xa9   :  { %v203_v13 = vsel %vm7089_vm4, %v6958_v22, %v130_v2  ;;  %5735 = vmatprep.subr.bf16.mxu0 %v5734_v24  ;;  %v92_v2 = vadd.s32 384, %v7066_v51  ;;  %v5742_v18 = vpack.c.bf16 %v1318_v1, %v1317_v0  ;;  %v5766_v24 = vpack.c.bf16 %v1346_v7, %v1345_v6  ;;  %v1347_v6 = vld [vmem:[#allocation4 + $0x1a0] sm:$0xff]  ;;  %v1348_v7 = vld [vmem:[#allocation4 + $0x1a8] sm:$0xff] }
  0xaa   :  { %v243_v27 = vsub.f32 %v203_v13, %v235_v16  ;;  %8768 = vst [vmem:[#allocation8_spill] sm:$0xff] %v7123_v48  ;;  %v1329_v13 = vld [vmem:[#allocation4 + $0x110] sm:$0xff]  ;;  %v437_v34 = vsub.s32 1, %v7123_v48  ;;  %v342_v11 = vmul.f32 %v7117_v37, %v7117_v37 }
  0xab   :  { %v7074_v59 = vpop.permute.xlu0 %121  ;;  %v7076_v60 = vpop.permute.xlu1 %150  ;;  %v5768_v25 = vpack.c.bf16 %v1330_v14, %v1329_v13  ;;  %5767 = vmatprep.subr.bf16.mxu1 %v5766_v24 }
  0xac   :  { %v7121_v45 = vmul.f32 0.5, %v243_v27  ;;  %v164_v54 = vsel %vm162_vm1, %v149_v53, %v7076_v60  ;;  %5737 = vmatpush3.bf16.msra.mxu0 %v5736_v35  ;;  %v7139_v53 = vadd.f32 1e-10, %v7117_v37  ;;  %v205_v27 = vsel %vm7145_vm9, %v6962_v23, %v132_v10 }
  0xad   :  { %5739 = vmatprep.subr.bf16.mxu0 %v5738_v39  ;;  %v237_v15 = vsel %vm7125_vm8, %v6962_v23, %v164_v54  ;;  %v433_v39 = vsub.s32 0, %v7123_v48  ;;  %5769 = vmatpush3.bf16.msra.mxu1 %v5768_v25  ;;  %v133_v54 = vsel %vm129_vm0, %v7071_v56, %v7074_v59  ;;  %v7204_v57 = vrot.slane %v7177_v36, %v437_v34 }
  0xae   :  { %v7143_v8 = vadd.f32 1e-10, %v7121_v45  ;;  %v7162_v26 = vand.u32 2147483647, %v7139_v53  ;;  %v245_v33 = vsub.f32 %v205_v27, %v237_v15  ;;  %v7216_v56 = vadd.s32 640, %v7066_v51  ;;  %v1303_v15 = vld [vmem:[#allocation4 + $0x40] sm:$0xff] }
  0xaf   :  { %v7100_v5 = vpop.permute.xlu0 %152  ;;  %v262_v9 = vpop.permute.xlu1 %261  ;;  %v341_v24 = vmul.f32 %v7121_v45, %v7121_v45  ;;  %v445_v34 = vsub.s32 3, %v7123_v48  ;;  %vm564_vm12 = vcmp.lt.s32.totalorder %v7139_v53, 0  ;;  %vm561_vm13 = vcmp.lt.f32.partialorder %v7139_v53, 0.0 }
  0xb0   :  { %5741 = vmatpush3.bf16.msra.mxu0 %v5740_v63  ;;  %v7171_v32 = vand.u32 2147483647, %v7143_v8  ;;  %v165_v43 = vsel %vm162_vm1, %v7076_v60, %v7100_v5  ;;  %v1319_v63 = vld [vmem:[#allocation4 + $0xc0] sm:$0xff]  ;;  %v102_v37 = vand.u32 31, %v7216_v56  ;;  %vm517_vm14 = vcmp.lt.s32.totalorder %v7143_v8, 0 }
  0xb1   :  { %5743 = vmatprep.subr.bf16.mxu0 %v5742_v18  ;;  %v1304_v18 = vld [vmem:[#allocation4 + $0x48] sm:$0xff]  ;;  %vm8749_vm15 = vcmp.lt.f32.partialorder %v7143_v8, 0.0 }
  0xb3   :  { %v7115_v20 = vpop.permute.xlu0 %263  ;;  %v293_v30 = vpop.permute.xlu1 %292 }
  0xb4   :  { %v277_v55 = vsel %vm8748_vm6, %v262_v9, %v7115_v20  ;;  %v324_v61 = vsel %vm8750_vm7, %v6958_v22, %v293_v30  ;;  %v1301_v22 = vld [vmem:[#allocation4 + $0x30] sm:$0xff] }
  0xb5   :  { %v5744_v52 = vpack.c.bf16 %v1302_v12, %v1301_v22 }
  0xb7   :  { %v7119_v38 = vpop.permute.xlu0 %294  ;;  %v260_v46 = vpop.permute.xlu1 %259  ;;  %5745 = vmatpush3.bf16.msra.mxu0 %v5744_v52  ;;  %v5770_v52 = vpack.c.bf16 %v1348_v7, %v1347_v6 }
  0xb8   :  { %v309_v49 = vsel %vm8750_vm7, %v293_v30, %v7119_v38  ;;  %v276_v62 = vsel %vm8748_vm6, %v260_v46, %v262_v9  ;;  %v100_v30 = vand.u32 31, %v92_v2  ;;  %v441_v2 = vsub.s32 2, %v7123_v48 }
  0xb9   :  { %v326_v3 = vsub.f32 %v277_v55, %v309_v49  ;;  %v325_v4 = vsub.f32 %v276_v62, %v324_v61  ;;  %v7201_v55 = vmul.f32 0.5, %v245_v33  ;;  %v7212_v49 = vrot.slane %v7177_v36, %v433_v39  ;;  %5771 = vmatprep.subr.bf16.mxu1 %v5770_v52 }
  0xba   :  { %vm7185_vm10 = vcmp.eq.s32.totalorder %v100_v30, 0  ;;  %vm7194_vm11 = vcmp.eq.s32.totalorder %v100_v30, 31  ;;  %v101_v62 = vand.u32 31, %v7183_v40  ;;  %v5748_v39 = vpack.c.bf16 %v1304_v18, %v1303_v15 }
  0xbb   :  { %v7155_v16 = vmul.f32 0.5, %v326_v3  ;;  %v7157_v17 = vmul.f32 0.5, %v325_v4  ;;  %v266_v19 = vpop.permute.xlu0 %265  ;;  %v7159_v21 = vpop.permute.xlu1 %267  ;;  %v238_v61 = vsel %vm7185_vm10, %v6973_v28, %v165_v43  ;;  %v206_v0 = vsel %vm7194_vm11, %v6973_v28, %v133_v54  ;;  %v1320_v4 = vld [vmem:[#allocation4 + $0xc8] sm:$0xff] }
  0xbc   :  { %v7225_v3 = vadd.s32 768, %v7066_v51  ;;  %v278_v9 = vsel %vm8748_vm6, %v7115_v20, %v266_v19  ;;  %v7238_v12 = vadd.f32 1e-10, %v7201_v55  ;;  %v246_v13 = vsub.f32 %v206_v0, %v238_v61 }
  0xbd   :  { %v7168_v31 = vand.u32 2147483647, %v7155_v16  ;;  %v7175_v35 = vand.u32 2147483647, %v7157_v17  ;;  %v350_v1 = vmul.f32 %v7155_v16, %v7155_v16  ;;  %v349_v22 = vmul.f32 %v7157_v17, %v7157_v17 }
  0xbe   :  { %8777 = vst [vmem:[#allocation9_spill] sm:$0xff] %v7238_v12  ;;  %v279_v20 = vsel %vm8748_vm6, %v266_v19, %v7159_v21  ;;  %v7250_v45 = vand.u32 2147483647, %v7238_v12  ;;  %v254_v19 = vmul.f32 0.5, %v246_v13  ;;  %v7260_v54 = vrot.slane %v7177_v36, %v441_v2 }
  0xbf   :  { %v537_v23 = vmax.f32 %v7162_v26, %v7168_v31  ;;  %v490_v46 = vmax.f32 %v7171_v32, %v7175_v35  ;;  %v297_v60 = vpop.permute.xlu0 %296  ;;  %v7206_v58 = vpop.permute.xlu1 %298  ;;  %v358_v25 = vadd.f32 %v350_v1, %v342_v11  ;;  %v357_v33 = vadd.f32 %v349_v22, %v341_v24 }
  0xc0   :  { %v310_v28 = vsel %vm8750_vm7, %v7119_v38, %v297_v60  ;;  %v311_v10 = vsel %vm8750_vm7, %v297_v60, %v7206_v58  ;;  %v5746_v38 = vpack.c.bf16 %v1320_v4, %v1319_v63  ;;  %v536_v41 = vmin.f32 %v7162_v26, %v7168_v31  ;;  %8779 = vst [vmem:[#allocation11_spill] sm:$0xff] %v7260_v54 }
  0xc1   :  { %6764 = vrcp.f32 %v537_v23  ;;  %v327_v14 = vsub.f32 %v278_v9, %v310_v28  ;;  %v328_v30 = vsub.f32 %v279_v20, %v311_v10  ;;  %v489_v50 = vmin.f32 %v7171_v32, %v7175_v35 }
  0xc2   :  { %6766 = vrcp.f32 %v490_v46  ;;  %5747 = vmatprep.subr.bf16.mxu0 %v5746_v38  ;;  %v7263_v60 = vadd.s32 896, %v7066_v51  ;;  %v449_v61 = vsub.s32 4, %v7123_v48  ;;  %v7266_v0 = vadd.f32 1e-10, %v358_v25 }
  0xc3   :  { %v7244_v27 = vmul.f32 0.5, %v327_v14  ;;  %5749 = vmatpush3.bf16.msra.mxu0 %v5748_v39  ;;  %v7272_v6 = vmul.f32 0.5, %v328_v30  ;;  %v7274_v7 = vadd.f32 1e-10, %v357_v33  ;;  %v7279_v51 = vrot.slane %v7177_v36, %v445_v34  ;;  %v7304_v18 = vpop.permute.xlu1 %125  ;;  %v124_v34 = vpop.permute.xlu0 %123 }
  0xc4   :  { %v453_v22 = vsub.s32 5, %v7123_v48  ;;  %v7283_v9 = vadd.f32 1e-10, %v254_v19  ;;  %v7296_v13 = vrot.slane %v7177_v36, %v449_v61  ;;  %v8736_v24 = vmov 0.0  }
  0xc5   :  { %v7255_v43 = vand.u32 2147483647, %v7244_v27  ;;  %8780 = vst [vmem:[#allocation12_spill] sm:$0xff] %v7279_v51  ;;  %v7302_v15 = vand.u32 2147483647, %v7272_v6  ;;  %vm7330_vm2 = vcmp.eq.s32.totalorder %v101_v62, 0  ;;  %v344_v40 = vmul.f32 %v254_v19, %v254_v19 }
  0xc6   :  { %8781 = vst [vmem:[#allocation13_spill] sm:$0xff] %v7283_v9  ;;  %8782 = vst [vmem:[#allocation14_spill] sm:$0xff] %v7296_v13  ;;  %v7307_v20 = vsel %vm564_vm12, 3.1415927, %v8736_v24  ;;  %v8732_v52 = vmov 0.7853982   ;;  %v7321_v39 = vrot.slane %v7177_v36, %v453_v22  ;;  %v135_v54 = vsel %vm129_vm0, %v124_v34, %v7304_v18 }
  0xc7   :  { %8778 = vst [vmem:[#allocation10_spill] sm:$0xff] %v7255_v43  ;;  %v584_v4 = vmax.f32 %v7250_v45, %v7255_v43  ;;  %v7315_v25 = vsel %vm561_vm13, 2.3561945, %v8732_v52  ;;  %v7318_v30 = vand.u32 2147483647, %v7283_v9  ;;  %vm611_vm3 = vcmp.lt.s32.totalorder %v7238_v12, 0  ;;  %v7369_v61 = vpop.permute.xlu1 %156 }
  0xc8   :  { %8783 = vst [vmem:[#allocation15_spill] sm:$0xff] %v7315_v25  ;;  %8784 = vst [vmem:[#allocation16_spill] sm:$0xff] %v7321_v39  ;;  %v7339_v36 = vsel %vm8749_vm15, 2.3561945, %v8732_v52  ;;  %vm8747_vm4 = vcmp.lt.f32.partialorder %v7238_v12, 0.0  ;;  %vm8746_vm5 = vcmp.lt.f32.partialorder %v7283_v9, 0.0  ;;  %v351_v52 = vmul.f32 %v7244_v27, %v7244_v27 }
  0xc9   :  { %6768 = vrcp.f32 %v584_v4  ;;  %8788 = vst [vmem:[#allocation18_spill] sm:$0xff] %v7339_v36  ;;  %v631_v22 = vmax.f32 %v7318_v30, %v7302_v15  ;;  %vm658_vm8 = vcmp.lt.s32.totalorder %v7283_v9, 0  ;;  %vm7351_vm9 = vcmp.eq.s32.totalorder %v101_v62, 31 }
  0xca   :  { %6770 = vrsqrt.f32 %v7266_v0  ;;  %vm7357_vm10 = vcmp.eq.s32.totalorder %v102_v37, 31  ;;  %vm7363_vm11 = vcmp.eq.s32.totalorder %v102_v37, 0  ;;  %v7372_v11 = vsel %vm611_vm3, 3.1415927, %v8736_v24 }
  0xcb   :  { %v6765_v46 = vpop.eup %6764  ;;  %6772 = vrsqrt.f32 %v7274_v7  ;;  %8795 = vst [vmem:[#allocation19_spill] sm:$0xff] %v7372_v11  ;;  %v583_v56 = vmin.f32 %v7250_v45, %v7255_v43  ;;  %v8796_v48 = vmov 0.7853982   ;;  %v7386_v19 = vsel %vm658_vm8, 3.1415927, %v8736_v24  ;;  %v7416_v12 = vpop.permute.xlu1 %158 }
  0xcc   :  { %v6767_v63 = vpop.eup %6766  ;;  %v7268_v1 = vmul.f32 %v6765_v46, %v536_v41  ;;  %v7326_v41 = vsel %vm517_vm14, 3.1415927, %v8736_v24  ;;  %6774 = vrcp.f32 %v631_v22  ;;  %8798 = vst [vmem:[#allocation21_spill] sm:$0xff] %v7386_v19  ;;  %vm382_vm12 = vcmp.eq.f32.partialorder %v7266_v0, inf }
  0xcd   :  { %v7276_v2 = vmul.f32 %v6767_v63, %v489_v50  ;;  %8785 = vst [vmem:[#allocation17_spill] sm:$0xff] %v7326_v41  ;;  %v385_v24 = vand.u32 2147483648, %v7266_v0  ;;  %vm375_vm14 = vcmp.eq.f32.partialorder %v7274_v7, inf  ;;  %vm384_vm3 = vcmp.eq.f32.partialorder %v7266_v0, 0.0 }
  0xce   :  { %v7287_v28 = vmul.f32 %v7268_v1, %v7268_v1  ;;  %vm377_vm8 = vcmp.eq.f32.partialorder %v7274_v7, 0.0 }
  0xcf   :  { %v7292_v10 = vmul.f32 %v7276_v2, %v7276_v2 }
  0xd0   :  { %v541_v14 = vmul.f32 0.002785687, %v7287_v28 }
  0xd1   :  { %v494_v38 = vmul.f32 0.002785687, %v7292_v10 }
  0xd2   :  { %v542_v33 = vadd.f32 -0.015866, %v541_v14 }
  0xd3   :  { %v495_v46 = vadd.f32 -0.015866, %v494_v38  ;;  %v6769_v37 = vpop.eup %6768 }
  0xd4   :  { %v543_v4 = vmul.f32 %v542_v33, %v7287_v28  ;;  %v6771_v11 = vpop.eup %6770 }
  0xd5   :  { %v496_v14 = vmul.f32 %v495_v46, %v7292_v10  ;;  %v343_v46 = vmul.f32 %v7201_v55, %v7201_v55  ;;  %v7381_v55 = vsel %vm8747_vm4, 2.3561945, %v8796_v48  ;;  %v6773_v51 = vpop.eup %6772  ;;  %vm566_vm4 = vcmp.eq.f32.partialorder %v7155_v16, 0.0 }
  0xd6   :  { %v544_v62 = vadd.f32 0.04247222, %v543_v4  ;;  %8797 = vst [vmem:[#allocation20_spill] sm:$0xff] %v7381_v55  ;;  %v7391_v4 = vsel %vm8746_vm5, 2.3561945, %v8796_v48  ;;  %v7397_v55 = vmul.f32 %v6769_v37, %v583_v56  ;;  %v378_v37 = vand.u32 2147483648, %v7274_v7 }
  0xd7   :  { %v497_v23 = vadd.f32 0.04247222, %v496_v14  ;;  %8799 = vst [vmem:[#allocation22_spill] sm:$0xff] %v7391_v4  ;;  %v155_v14 = vpop.permute.xlu0 %154  ;;  %v352_v4 = vmul.f32 %v7272_v6, %v7272_v6  ;;  %v359_v9 = vadd.f32 %v351_v52, %v343_v46 }
  0xd8   :  { %v545_v22 = vmul.f32 %v544_v62, %v7287_v28  ;;  %8800 = vst [vmem:[#allocation23_spill] sm:$0xff] %v7397_v55  ;;  %v7406_v39 = vmul.f32 %v7397_v55, %v7397_v55  ;;  %v374_v55 = vmul.f32 %v6773_v51, %v7274_v7  ;;  %v208_v51 = vsel %vm7357_vm10, %v7027_v42, %v135_v54 }
  0xd9   :  { %v498_v13 = vmul.f32 %v497_v23, %v7292_v10  ;;  %v166_v23 = vsel %vm162_vm1, %v7100_v5, %v155_v14  ;;  %v167_v5 = vsel %vm162_vm1, %v155_v14, %v7369_v61  ;;  %v360_v36 = vadd.f32 %v352_v4, %v344_v40 }
  0xda   :  { %v546_v19 = vadd.f32 -0.074975304, %v545_v22  ;;  %v134_v22 = vsel %vm129_vm0, %v7074_v59, %v124_v34  ;;  %v588_v46 = vmul.f32 0.002785687, %v7406_v39  ;;  %v239_v59 = vsel %vm7330_vm2, %v6977_v29, %v166_v23 }
  0xdb   :  { %v499_v62 = vadd.f32 -0.074975304, %v498_v13  ;;  %v381_v13 = vmul.f32 %v6771_v11, %v7266_v0  ;;  %v7427_v25 = vadd.f32 1e-10, %v359_v9  ;;  %v630_v11 = vmin.f32 %v7318_v30, %v7302_v15  ;;  %v128_v63 = vpop.permute.xlu0 %127 }
  0xdc   :  { %v547_v56 = vmul.f32 %v546_v19, %v7287_v28  ;;  %v589_v41 = vadd.f32 -0.015866, %v588_v46  ;;  %v207_v14 = vsel %vm7351_vm9, %v6977_v29, %v134_v22  ;;  %v240_v9 = vsel %vm7363_vm11, %v7027_v42, %v167_v5  ;;  %v7453_v42 = vpop.permute.xlu1 %269 }
  0xdd   :  { %v500_v52 = vmul.f32 %v499_v62, %v7292_v10  ;;  %v6775_v62 = vpop.eup %6774  ;;  %v383_v50 = vsel %vm382_vm12, %v7266_v0, %v381_v13  ;;  %v376_v29 = vsel %vm375_vm14, %v7274_v7, %v374_v55  ;;  %v7451_v54 = vadd.f32 1e-10, %v360_v36 }
  0xde   :  { %v548_v19 = vadd.f32 0.1064488, %v547_v56  ;;  %v590_v4 = vmul.f32 %v589_v41, %v7406_v39  ;;  %v7446_v23 = vmul.f32 %v6775_v62, %v630_v11  ;;  %v247_v33 = vsub.f32 %v207_v14, %v239_v59 }
  0xdf   :  { %v501_v34 = vadd.f32 0.1064488, %v500_v52  ;;  %6776 = vrsqrt.f32 %v7427_v25  ;;  %v386_v36 = vsel %vm384_vm3, %v385_v24, %v383_v50  ;;  %v379_v46 = vsel %vm377_vm8, %v378_v37, %v376_v29 }
  0xe0   :  { %v549_v43 = vmul.f32 %v548_v19, %v7287_v28  ;;  %v591_v22 = vadd.f32 0.04247222, %v590_v4  ;;  %v7458_v41 = vmul.f32 %v7446_v23, %v7446_v23  ;;  %v255_v62 = vmul.f32 0.5, %v247_v33  ;;  %v7486_v29 = vpop.permute.xlu1 %300 }
  0xe1   :  { %v502_v40 = vmul.f32 %v501_v34, %v7292_v10  ;;  %v248_v14 = vsub.f32 %v208_v51, %v240_v9  ;;  %6778 = vrsqrt.f32 %v7451_v54  ;;  %v7477_v7 = vmul.f32 %v7204_v57, %v386_v36 }
  0xe2   :  { %v550_v38 = vadd.f32 -0.14207031, %v549_v43  ;;  %v8801_v43 = vand.u32 31, %v7225_v3  ;;  %v592_v19 = vmul.f32 %v591_v22, %v7406_v39  ;;  %v635_v59 = vmul.f32 0.002785687, %v7458_v41 }
  0xe3   :  { %v503_v56 = vadd.f32 -0.14207031, %v502_v40  ;;  %v7481_v40 = vmul.f32 %v7212_v49, %v379_v46  ;;  %v392_v4 = vand.u32 2147483648, %v7427_v25  ;;  %v7497_v49 = vsel %vm129_vm0, %v7304_v18, %v128_v63 }
  0xe4   :  { %vm7462_vm2 = vcmp.eq.s32.totalorder %v8801_v43, 31  ;;  %v551_v55 = vmul.f32 %v550_v38, %v7287_v28  ;;  %v593_v24 = vadd.f32 -0.074975304, %v592_v19  ;;  %v636_v50 = vadd.f32 -0.015866, %v635_v59  ;;  %v7484_v38 = vpop.permute.xlu0 %160 }
  0xe5   :  { %v504_v5 = vmul.f32 %v503_v56, %v7292_v10  ;;  %v7493_v43 = vadd.f32 1e-10, %v255_v62  ;;  %vm558_vm9 = vcmp.gt.f32.partialorder %v7168_v31, %v7162_v26  ;;  %vm389_vm10 = vcmp.eq.f32.partialorder %v7427_v25, inf }
  0xe6   :  { %v552_v34 = vadd.f32 0.19993454, %v551_v55  ;;  %v594_v9 = vmul.f32 %v593_v24, %v7406_v39  ;;  %v637_v57 = vmul.f32 %v636_v50, %v7458_v41  ;;  %v312_v59 = vsel %vm8750_vm7, %v7206_v58, %v7486_v29 }
  0xe7   :  { %v505_v0 = vadd.f32 0.19993454, %v504_v5  ;;  %v8804_v5 = vand.u32 31, %v7225_v3  ;;  %vm569_vm12 = vcmp.ne.f32.partialorder %v7155_v16, %v7155_v16  ;;  %vm511_vm14 = vcmp.gt.f32.partialorder %v7175_v35, %v7171_v32 }
  0xe8   :  { %v553_v37 = vmul.f32 %v552_v34, %v7287_v28  ;;  %v595_v55 = vadd.f32 0.1064488, %v594_v9  ;;  %v638_v46 = vadd.f32 0.04247222, %v637_v57  ;;  %v7516_v34 = vmul.f32 %v255_v62, %v255_v62 }
  0xe9   :  { %v506_v51 = vmul.f32 %v505_v0, %v7292_v10  ;;  %vm7504_vm11 = vcmp.eq.s32.totalorder %v8804_v5, 0  ;;  %v256_v0 = vmul.f32 0.5, %v248_v14  ;;  %v7520_v3 = vsel %vm129_vm0, %v128_v63, %v7042_v47  ;;  %v6777_v24 = vpop.eup %6776  ;;  %v7539_v63 = vpop.permute.xlu0 %271 }
  0xea   :  { %v554_v56 = vadd.f32 -0.33333147, %v553_v37  ;;  %v639_v50 = vmul.f32 %v638_v46, %v7458_v41  ;;  %v280_v37 = vsel %vm8748_vm6, %v7159_v21, %v7453_v42  ;;  %vm568_vm8 = vcmp.ne.f32.partialorder %v7139_v53, %v7139_v53 }
  0xeb   :  { %v507_v36 = vadd.f32 -0.33333147, %v506_v51  ;;  %vm705_vm5 = vcmp.lt.s32.totalorder %v7493_v43, 0  ;;  %v329_v14 = vsub.f32 %v280_v37, %v312_v59  ;;  %vm702_vm0 = vcmp.lt.f32.partialorder %v7493_v43, 0.0  ;;  %v6779_v46 = vpop.eup %6778 }
  0xec   :  { %v555_v18 = vmul.f32 %v554_v56, %v7287_v28  ;;  %v596_v28 = vmul.f32 %v595_v55, %v7406_v39  ;;  %v640_v9 = vadd.f32 -0.074975304, %v639_v50  ;;  %vm519_vm7 = vcmp.eq.f32.partialorder %v7157_v17, 0.0 }
  0xed   :  { %v508_v58 = vmul.f32 %v507_v36, %v7292_v10  ;;  %v388_v56 = vmul.f32 %v6777_v24, %v7427_v25  ;;  %v7552_v36 = vand.u32 2147483647, %v7493_v43  ;;  %v7554_v55 = vadd.f32 1e-10, %v256_v0 }
  0xee   :  { %v556_v62 = vmul.f32 %v555_v18, %v7268_v1  ;;  %v597_v51 = vadd.f32 -0.14207031, %v596_v28  ;;  %vm391_vm6 = vcmp.eq.f32.partialorder %v7427_v25, 0.0  ;;  %v8807_v18 = vmov 0.0  }
  0xef   :  { %v509_v21 = vmul.f32 %v508_v58, %v7276_v2  ;;  %v7564_v24 = vsel %vm705_vm5, 3.1415927, %v8807_v18  ;;  %v8808_v58 = vand.u32 31, %v7263_v60  ;;  %vm396_vm5 = vcmp.eq.f32.partialorder %v7451_v54, inf }
  0xf0   :  { %v557_v57 = vadd.f32 %v556_v62, %v7268_v1  ;;  %v598_v59 = vmul.f32 %v597_v51, %v7406_v39  ;;  %v641_v1 = vmul.f32 %v640_v9, %v7458_v41  ;;  %v7581_v62 = vsel %vm702_vm0, 2.3561945, %v8796_v48 }
  0xf1   :  { %v510_v5 = vadd.f32 %v509_v21, %v7276_v2  ;;  %vm7568_vm3 = vcmp.eq.s32.totalorder %v8808_v58, 31  ;;  %v8811_v50 = vmov %v8808_v58  ;;  %v7583_v21 = vmul.f32 %v256_v0, %v256_v0 }
  0xf2   :  { %vm7574_vm15 = vcmp.eq.s32.totalorder %v8811_v50, 0  ;;  %v559_v37 = vsub.f32 1.5707964, %v557_v57  ;;  %v7585_v51 = vmul.f32 0.5, %v329_v14  ;;  %v599_v58 = vadd.f32 0.19993454, %v598_v59  ;;  %v7601_v59 = vpop.permute.xlu0 %302 }
  0xf3   :  { %v512_v9 = vsub.f32 1.5707964, %v510_v5  ;;  %v642_v22 = vadd.f32 0.1064488, %v641_v1  ;;  %v168_v60 = vsel %vm162_vm1, %v7369_v61, %v7416_v12  ;;  %v390_v0 = vsel %vm389_vm10, %v7427_v25, %v388_v56 }
  0xf4   :  { %v560_v50 = vsel %vm558_vm9, %v559_v37, %v557_v57  ;;  %v395_v14 = vmul.f32 %v6779_v46, %v7451_v54  ;;  %v7599_v11 = vand.u32 2147483647, %v7585_v51  ;;  %v600_v52 = vmul.f32 %v599_v58, %v7406_v39  ;;  %vm7624_vm9 = vmor %vm568_vm8, %vm569_vm12  ;;  %v8821_v58 = vld [vmem:[#allocation17_spill] sm:$0xff] }
  0xf5   :  { %v562_v1 = vsub.f32 3.1415927, %v560_v50  ;;  %v513_v61 = vsel %vm511_vm14, %v512_v9, %v510_v5  ;;  %v643_v57 = vmul.f32 %v642_v22, %v7458_v41  ;;  %v241_v56 = vsel %vm7504_vm11, %v7031_v44, %v168_v60 }
  0xf6   :  { %v515_v37 = vsub.f32 3.1415927, %v513_v61  ;;  %v169_v46 = vsel %vm162_vm1, %v7416_v12, %v7484_v38  ;;  %v678_v33 = vmax.f32 %v7552_v36, %v7599_v11  ;;  %v601_v19 = vadd.f32 -0.33333147, %v600_v52  ;;  %v8820_v52 = vld [vmem:[#allocation10_spill] sm:$0xff] }
  0xf7   :  { %v563_v10 = vsel %vm561_vm13, %v562_v1, %v560_v50  ;;  %vm398_vm10 = vcmp.eq.f32.partialorder %v7451_v54, 0.0  ;;  %v644_v12 = vadd.f32 -0.14207031, %v643_v57  ;;  %vm8816_vm1 = vcmask 261120   ;;  %v8828_v1 = vld [vmem:[#allocation18_spill] sm:$0xff] }
  0xf8   :  { %v313_v38 = vsel %vm8816_vm1, %v7486_v29, %v7601_v59  ;;  %v567_v5 = vsel %vm566_vm4, %v7307_v20, %v563_v10  ;;  %vm8817_vm13 = vcmp.eq.s32.totalorder %v7168_v31, inf  ;;  %vm8818_vm11 = vcmp.eq.s32.totalorder %v7162_v26, inf  ;;  %v8824_v10 = vld [vmem:[#allocation15_spill] sm:$0xff] }
  0xf9   :  { %vm576_vm12 = vmand %vm8818_vm11, %vm8817_vm13  ;;  %vm8819_vm14 = vcmp.lt.f32.partialorder %v7143_v8, 0.0  ;;  %vm605_vm8 = vcmp.gt.f32.partialorder %v8820_v52, %v7250_v45  ;;  %v353_v9 = vmul.f32 %v7585_v51, %v7585_v51  ;;  %6780 = vrcp.f32 %v678_v33 }
  0xfa   :  { %v516_v53 = vsel %vm8819_vm14, %v515_v37, %v513_v61  ;;  %v571_v29 = vsel %vm7624_vm9, nan, %v567_v5  ;;  %vm8822_vm4 = vcmp.ne.f32.partialorder %v7157_v17, %v7157_v17  ;;  %vm8823_vm1 = vcmp.ne.f32.partialorder %v7143_v8, %v7143_v8 }
  0xfb   :  { %v520_v31 = vsel %vm519_vm7, %v8821_v58, %v516_v53  ;;  %vm523_vm13 = vmor %vm8823_vm1, %vm8822_vm4  ;;  %v602_v26 = vmul.f32 %v601_v19, %v7406_v39  ;;  %v645_v20 = vmul.f32 %v644_v12, %v7458_v41  ;;  %v577_v33 = vsel %vm576_vm12, %v8824_v10, %v571_v29  ;;  %v8832_v12 = vld [vmem:[#allocation11_spill] sm:$0xff] }
  0xfc   :  { %v524_v60 = vsel %vm523_vm13, nan, %v520_v31  ;;  %vm8825_vm9 = vcmp.eq.s32.totalorder %v7175_v35, inf  ;;  %vm8826_vm11 = vcmp.eq.s32.totalorder %v7171_v32, inf  ;;  %v393_v50 = vsel %vm391_vm6, %v392_v4, %v390_v0  ;;  %v8829_v35 = vld [vmem:[#allocation23_spill] sm:$0xff]  ;;  %v8831_v4 = vld [vmem:[#allocation9_spill] sm:$0xff] }
  0xfd   :  { %vm529_vm14 = vmand %vm8826_vm11, %vm8825_vm9  ;;  %vm616_vm7 = vcmp.ne.f32.partialorder %v7244_v27, %v7244_v27  ;;  %v8827_v8 = vsel %vm7462_vm2, %v7031_v44, %v7497_v49  ;;  %v603_v57 = vmul.f32 %v602_v26, %v8829_v35  ;;  %vm622_vm12 = vcmp.eq.s32.totalorder %v8820_v52, inf }
  0xfe   :  { %v249_v39 = vsub.f32 %v8827_v8, %v241_v56  ;;  %v530_v61 = vsel %vm529_vm14, %v8828_v1, %v524_v60  ;;  %v646_v32 = vadd.f32 0.19993454, %v645_v20  ;;  %vm8830_vm4 = vcmask 785408   ;;  %v8839_v1 = vld [vmem:[#allocation13_spill] sm:$0xff] }
  0xff   :  { %v281_v25 = vsel %vm8830_vm4, %v7453_v42, %v7539_v63  ;;  %vm615_vm6 = vcmp.ne.f32.partialorder %v8831_v4, %v8831_v4  ;;  %vm613_vm1 = vcmp.eq.f32.partialorder %v7244_v27, 0.0  ;;  %v397_v44 = vsel %vm396_vm5, %v7451_v54, %v395_v14 }
 0x100   :  { %v210_v13 = vsel %vm7568_vm3, %v7042_v47, %v7520_v3  ;;  %v242_v49 = vsel %vm7574_vm15, %v7042_v47, %v169_v46  ;;  %v330_v0 = vsub.f32 %v281_v25, %v313_v38  ;;  %v578_v42 = vand.u32 2147483647, %v577_v33  ;;  %vm617_vm14 = vmor %vm615_vm6, %vm616_vm7 }
 0x101   :  { %v604_v37 = vadd.f32 %v603_v57, %v8829_v35  ;;  %vm621_vm2 = vcmp.eq.s32.totalorder %v7250_v45, inf  ;;  %v647_v56 = vmul.f32 %v646_v32, %v7458_v41  ;;  %v361_v22 = vadd.f32 %v353_v9, %v7516_v34  ;;  %v8841_v35 = vld [vmem:[#allocation12_spill] sm:$0xff] }
 0x102   :  { %v531_v14 = vand.u32 2147483647, %v530_v61  ;;  %v7698_v19 = vand.u32 2147483647, %v7554_v55  ;;  %vm749_vm3 = vcmp.lt.f32.partialorder %v7554_v55, 0.0  ;;  %vm752_vm5 = vcmp.lt.s32.totalorder %v7554_v55, 0 }
 0x103   :  { %v606_v3 = vsub.f32 1.5707964, %v604_v37  ;;  %v648_v28 = vadd.f32 -0.33333147, %v647_v56  ;;  %v257_v2 = vmul.f32 0.5, %v249_v39  ;;  %v250_v46 = vsub.f32 %v210_v13, %v242_v49  ;;  %v8842_v13 = vld [vmem:[#allocation19_spill] sm:$0xff] }
 0x104   :  { %v7703_v38 = vmul.f32 %v8832_v12, %v393_v50  ;;  %v8833_v5 = vand.u32 2147483648, %v7451_v54  ;;  %vm652_vm15 = vcmp.gt.f32.partialorder %v7302_v15, %v7318_v30  ;;  %v677_v53 = vmin.f32 %v7552_v36, %v7599_v11  ;;  %v6781_v54 = vpop.eup %6780 }
 0x105   :  { %v7713_v9 = vmul.f32 0.5, %v330_v0  ;;  %v8834_v29 = vand.u32 2147483648, %v7155_v16  ;;  %v607_v31 = vsel %vm605_vm8, %v606_v3, %v604_v37  ;;  %v649_v26 = vmul.f32 %v648_v28, %v7458_v41 }
 0x106   :  { %v400_v34 = vsel %vm398_vm10, %v8833_v5, %v397_v44  ;;  %v7721_v20 = vadd.f32 1e-10, %v361_v22  ;;  %v8835_v10 = vand.u32 2147483648, %v7157_v17  ;;  %v609_v60 = vsub.f32 3.1415927, %v607_v31 }
 0x107   :  { %v580_v58 = vor.u32 %v8834_v29, %v578_v42  ;;  %vm663_vm10 = vcmp.ne.f32.partialorder %v7272_v6, %v7272_v6  ;;  %v7730_v16 = vsel %vm752_vm5, 3.1415927, %v8807_v18  ;;  %v7735_v50 = vsel %vm749_vm3, 2.3561945, %v8796_v48 }
 0x108   :  { %v533_v33 = vor.u32 %v8835_v10, %v531_v14  ;;  %8836 = vst [vmem:[#allocation10_spill] sm:$0xff] %v7730_v16  ;;  %8837 = vst [vmem:[#allocation17_spill] sm:$0xff] %v7735_v50  ;;  %v650_v41 = vmul.f32 %v649_v26, %v7446_v23  ;;  %vm669_vm8 = vcmp.eq.s32.totalorder %v7302_v15, inf  ;;  %v7739_v17 = vadd.f32 1e-10, %v257_v2  ;;  %v274_v26 = vpop.permute.xlu1 %273  ;;  %v1309_v50 = vld [vmem:[#allocation4 + $0x70] sm:$0xff] }
 0x109   :  { %v7741_v8 = vmul.f32 0.5, %v250_v46  ;;  %v7743_v39 = vmul.f32 %v6781_v54, %v677_v53  ;;  %vm662_vm13 = vcmp.ne.f32.partialorder %v8839_v1, %v8839_v1  ;;  %vm8840_vm9 = vcmp.lt.f32.partialorder %v8831_v4, 0.0  ;;  %v8843_v4 = vld [vmem:[#allocation20_spill] sm:$0xff] }
 0x10a   :  { %8838 = vst [vmem:[#allocation15_spill] sm:$0xff] %v7739_v17  ;;  %v610_v61 = vsel %vm8840_vm9, %v609_v60, %v607_v31  ;;  %v7750_v57 = vmul.f32 %v8841_v35, %v400_v34  ;;  %vm660_vm11 = vcmp.eq.f32.partialorder %v7272_v6, 0.0  ;;  %v354_v32 = vmul.f32 %v7713_v9, %v7713_v9  ;;  %vm664_vm9 = vmor %vm662_vm13, %vm663_vm10 }
 0x10b   :  { %v7756_v25 = vand.u32 2147483647, %v7713_v9  ;;  %v864_v44 = vadd.f32 6.2831855, %v580_v58  ;;  %v614_v49 = vsel %vm613_vm1, %v8842_v13, %v610_v61  ;;  %vm668_vm4 = vcmp.eq.s32.totalorder %v7318_v30, inf  ;;  %vm623_vm1 = vmand %vm621_vm2, %vm622_vm12  ;;  %v1332_v61 = vld [vmem:[#allocation4 + $0x128] sm:$0xff] }
 0x10c   :  { %v651_v0 = vadd.f32 %v650_v41, %v7446_v23  ;;  %6782 = vrsqrt.f32 %v7721_v20  ;;  %v863_v42 = vadd.f32 6.2831855, %v533_v33  ;;  %v618_v37 = vsel %vm617_vm14, nan, %v614_v49  ;;  %v1331_v41 = vld [vmem:[#allocation4 + $0x120] sm:$0xff]  ;;  %v1321_v49 = vld [vmem:[#allocation4 + $0xd0] sm:$0xff] }
 0x10d   :  { %v7774_v56 = vmul.f32 %v257_v2, %v257_v2  ;;  %v7778_v22 = vmul.f32 %v7743_v39, %v7743_v39  ;;  %v624_v14 = vsel %vm623_vm1, %v8843_v4, %v618_v37  ;;  %vm799_vm7 = vcmp.lt.s32.totalorder %v7739_v17, 0  ;;  %v305_v2 = vpop.permute.xlu0 %304 }
 0x10e   :  { %v653_v3 = vsub.f32 1.5707964, %v651_v0  ;;  %v7783_v23 = vadd.f32 1e-10, %v7741_v8  ;;  %v625_v28 = vand.u32 2147483647, %v624_v14  ;;  %v362_v45 = vadd.f32 %v354_v32, %v7583_v21 }
 0x10f   :  { %vm796_vm6 = vcmp.lt.f32.partialorder %v7739_v17, 0.0  ;;  %v725_v52 = vmax.f32 %v7698_v19, %v7756_v25  ;;  %v872_v46 = vmul.f32 1.2732395, %v864_v44  ;;  %v7793_v5 = vand.u32 2147483647, %v7739_v17  ;;  %v8850_v32 = vld [vmem:[#allocation21_spill] sm:$0xff] }
 0x110   :  { %8844 = vst [vmem:[#allocation18_spill] sm:$0xff] %v7783_v23  ;;  %v654_v12 = vsel %vm652_vm15, %v653_v3, %v651_v0  ;;  %v682_v34 = vmul.f32 0.002785687, %v7778_v22  ;;  %v871_v53 = vmul.f32 1.2732395, %v863_v42  ;;  %v8845_v29 = vand.u32 2147483648, %v7244_v27 }
 0x111   :  { %v656_v31 = vsub.f32 3.1415927, %v654_v12  ;;  %v7799_v21 = vsel %vm799_vm7, 3.1415927, %v8807_v18  ;;  %v7804_v54 = vsel %vm796_vm6, 2.3561945, %v8796_v48  ;;  %6784 = vrcp.f32 %v725_v52 }
 0x112   :  { %v627_v58 = vor.u32 %v8845_v29, %v625_v28  ;;  %8846 = vst [vmem:[#allocation23_spill] sm:$0xff] %v7799_v21  ;;  %8847 = vst [vmem:[#allocation9_spill] sm:$0xff] %v7804_v54  ;;  %vm843_vm12 = vcmp.lt.f32.partialorder %v7783_v23, 0.0  ;;  %v683_v10 = vadd.f32 -0.015866, %v682_v34  ;;  %vm8848_vm2 = vcmask 261120  }
 0x113   :  { %v314_v33 = vsel %vm8848_vm2, %v7601_v59, %v305_v2  ;;  %vm8849_vm5 = vcmp.lt.f32.partialorder %v8839_v1, 0.0  ;;  %vm846_vm15 = vcmp.lt.s32.totalorder %v7783_v23, 0  ;;  %v7812_v60 = vadd.f32 1e-10, %v362_v45  ;;  %v1322_v0 = vld [vmem:[#allocation4 + $0xd8] sm:$0xff]  ;;  %v1349_v3 = vld [vmem:[#allocation4 + $0x1b0] sm:$0xff] }
 0x114   :  { %v657_v27 = vsel %vm8849_vm5, %v656_v31, %v654_v12  ;;  %v7814_v35 = vfloor.f32 %v872_v46  ;;  %v684_v59 = vmul.f32 %v683_v10, %v7778_v22  ;;  %vm8851_vm14 = vcmask 785408   ;;  %v1350_v1 = vld [vmem:[#allocation4 + $0x1b8] sm:$0xff]  ;;  %v8852_v45 = vld [vmem:[#allocation22_spill] sm:$0xff]  ;;  %v307_v31 = vpop.permute.xlu1 %306 }
 0x115   :  { %v661_v44 = vsel %vm660_vm11, %v8850_v32, %v657_v27  ;;  %v282_v13 = vsel %vm8851_vm14, %v7539_v63, %v274_v26  ;;  %v7828_v42 = vfloor.f32 %v871_v53  ;;  %v865_v37 = vadd.f32 6.2831855, %v627_v58  ;;  %vm670_vm11 = vmand %vm668_vm4, %vm669_vm8  ;;  %v1354_v17 = vld [vmem:[#allocation4 + $0x1d8] sm:$0xff] }
 0x116   :  { %v665_v4 = vsel %vm664_vm9, nan, %v661_v44  ;;  %v331_v14 = vsub.f32 %v282_v13, %v314_v33  ;;  %v6783_v28 = vpop.eup %6782  ;;  %v7836_v12 = vand.u32 2147483647, %v7783_v23  ;;  %v7841_v63 = vsel %vm846_vm15, 3.1415927, %v8807_v18  ;;  %vm8856_vm13 = vmmov %vm8851_vm14 }
 0x117   :  { %v671_v52 = vsel %vm670_vm11, %v8852_v45, %v665_v4  ;;  %8853 = vst [vmem:[#allocation11_spill] sm:$0xff] %v7841_v63  ;;  %v685_v34 = vadd.f32 0.04247222, %v684_v59  ;;  %v7846_v15 = vsel %vm843_vm12, 2.3561945, %v8796_v48  ;;  %6786 = vrsqrt.f32 %v7812_v60  ;;  %vm8857_vm4 = vmmov %vm8848_vm2  ;;  %v1305_v45 = vld [vmem:[#allocation4 + $0x50] sm:$0xff] }
 0x118   :  { %v672_v29 = vand.u32 2147483647, %v671_v52  ;;  %8854 = vst [vmem:[#allocation13_spill] sm:$0xff] %v7846_v15  ;;  %v7849_v30 = vmul.f32 0.5, %v331_v14  ;;  %v5772_v10 = vpack.c.bf16 %v1332_v61, %v1331_v41  ;;  %v5750_v33 = vpack.c.bf16 %v1322_v0, %v1321_v49 }
 0x119   :  { %v686_v58 = vmul.f32 %v685_v34, %v7778_v22  ;;  %v5774_v27 = vpack.c.bf16 %v1350_v1, %v1349_v3  ;;  %v888_v18 = vsub.f32 %v872_v46, %v7814_v35  ;;  %v887_v32 = vsub.f32 %v871_v53, %v7828_v42 }
 0x11a   :  { %v873_v44 = vmul.f32 1.2732395, %v865_v37  ;;  %v402_v59 = vmul.f32 %v6783_v28, %v7721_v20  ;;  %v7857_v48 = vmul.f32 %v7741_v8, %v7741_v8  ;;  %vm403_vm10 = vcmp.eq.f32.partialorder %v7721_v20, inf  ;;  %5773 = vmatpush3.bf16.msra.mxu1 %v5772_v10  ;;  %5751 = vmatprep.subr.bf16.mxu0 %v5750_v33  ;;  %v1333_v10 = vld [vmem:[#allocation4 + $0x130] sm:$0xff] }
 0x11b   :  { %v687_v13 = vadd.f32 -0.074975304, %v686_v58  ;;  %v7861_v4 = vand.u32 2147483647, %v7849_v30  ;;  %v8855_v41 = vand.u32 2147483648, %v7272_v6  ;;  %vm405_vm8 = vcmp.eq.f32.partialorder %v7721_v20, 0.0  ;;  %5775 = vmatprep.subr.bf16.mxu1 %v5774_v27  ;;  %v6785_v6 = vpop.eup %6784 }
 0x11c   :  { %v291_v53 = vsel %vm8856_vm13, %v274_v26, %v7042_v47  ;;  %v315_v61 = vsel %vm8857_vm4, %v305_v2, %v307_v31  ;;  %v406_v8 = vand.u32 2147483648, %v7721_v20  ;;  %v724_v0 = vmin.f32 %v7698_v19, %v7756_v25  ;;  %v1306_v31 = vld [vmem:[#allocation4 + $0x58] sm:$0xff] }
 0x11d   :  { %v674_v46 = vor.u32 %v8855_v41, %v672_v29  ;;  %v688_v49 = vmul.f32 %v687_v13, %v7778_v22  ;;  %v772_v37 = vmax.f32 %v7793_v5, %v7861_v4  ;;  %v952_v14 = vsub.f32 1.0, %v888_v18  ;;  %v1334_v41 = vld [vmem:[#allocation4 + $0x138] sm:$0xff] }
 0x11e   :  { %v951_v3 = vsub.f32 1.0, %v887_v32  ;;  %v7875_v1 = vfloor.f32 %v873_v44  ;;  %v404_v47 = vsel %vm403_vm10, %v7721_v20, %v402_v59  ;;  %v7880_v26 = vmul.f32 %v6785_v6, %v724_v0 }
 0x11f   :  { %v689_v2 = vadd.f32 0.1064488, %v688_v49  ;;  %6788 = vrcp.f32 %v772_v37  ;;  %v332_v28 = vsub.f32 %v291_v53, %v315_v61  ;;  %v7883_v52 = vadd.f32 -8.0, %v7828_v42  ;;  %v1324_v53 = vld [vmem:[#allocation4 + $0xe8] sm:$0xff] }
 0x120   :  { %v866_v34 = vadd.f32 6.2831855, %v674_v46  ;;  %v355_v58 = vmul.f32 %v7849_v30, %v7849_v30  ;;  %v7889_v33 = vmul.f32 %v888_v18, %v7477_v7  ;;  %v7892_v27 = vmul.f32 %v887_v32, %v7481_v40  ;;  %v1323_v46 = vld [vmem:[#allocation4 + $0xe0] sm:$0xff] }
 0x121   :  { %v690_v59 = vmul.f32 %v689_v2, %v7778_v22  ;;  %v7897_v13 = vmul.f32 %v7880_v26, %v7880_v26  ;;  %v6787_v61 = vpop.eup %6786  ;;  %v7900_v49 = vmul.f32 %v952_v14, %v7477_v7  ;;  %v7903_v0 = vmul.f32 %v951_v3, %v7481_v40 }
 0x122   :  { %v889_v18 = vsub.f32 %v873_v44, %v7875_v1  ;;  %v407_v32 = vsel %vm405_vm8, %v406_v8, %v404_v47  ;;  %v7909_v2 = vmul.f32 0.5, %v332_v28  ;;  %v5752_v29 = vpack.c.bf16 %v1306_v31, %v1305_v45  ;;  %v1351_v8 = vld [vmem:[#allocation4 + $0x1c0] sm:$0xff]  ;;  %v1352_v47 = vld [vmem:[#allocation4 + $0x1c8] sm:$0xff]  ;;  %v8859_v28 = vld [vmem:[#allocation14_spill] sm:$0xff] }
 0x123   :  { %8858 = vst [vmem:[#allocation12_spill] sm:$0xff] %v7903_v0  ;;  %v691_v37 = vadd.f32 -0.14207031, %v690_v59  ;;  %v729_v6 = vmul.f32 0.002785687, %v7897_v13  ;;  %v363_v63 = vadd.f32 %v355_v58, %v7774_v56  ;;  %v5776_v7 = vpack.c.bf16 %v1334_v41, %v1333_v10  ;;  %v1307_v45 = vld [vmem:[#allocation4 + $0x60] sm:$0xff] }
 0x124   :  { %v7911_v15 = vmul.f32 1.2732395, %v866_v34  ;;  %v5754_v14 = vpack.c.bf16 %v1324_v53, %v1323_v46  ;;  %v409_v3 = vmul.f32 %v6787_v61, %v7812_v60  ;;  %v7917_v20 = vand.u32 2147483647, %v7909_v2  ;;  %5753 = vmatpush3.bf16.msra.mxu0 %v5752_v29  ;;  %v1308_v34 = vld [vmem:[#allocation4 + $0x68] sm:$0xff]  ;;  %v1335_v58 = vld [vmem:[#allocation4 + $0x140] sm:$0xff] }
 0x125   :  { %v692_v40 = vmul.f32 %v691_v37, %v7778_v22  ;;  %v730_v44 = vadd.f32 -0.015866, %v729_v6  ;;  %v7920_v59 = vmul.f32 %v8859_v28, %v407_v32  ;;  %vm410_vm1 = vcmp.eq.f32.partialorder %v7812_v60, inf  ;;  %5777 = vmatpush3.bf16.msra.mxu1 %v5776_v7  ;;  %v1336_v46 = vld [vmem:[#allocation4 + $0x148] sm:$0xff]  ;;  %v1325_v53 = vld [vmem:[#allocation4 + $0xf0] sm:$0xff]  ;;  %v1326_v61 = vld [vmem:[#allocation4 + $0xf8] sm:$0xff] }
 0x126   :  { %vm412_vm7 = vcmp.eq.f32.partialorder %v7812_v60, 0.0  ;;  %v413_v56 = vand.u32 2147483648, %v7812_v60  ;;  %5755 = vmatprep.subr.bf16.mxu0 %v5754_v14  ;;  %v953_v31 = vsub.f32 1.0, %v889_v18  ;;  %v771_v41 = vmin.f32 %v7793_v5, %v7861_v4 }
 0x127   :  { %8860 = vst [vmem:[#allocation19_spill] sm:$0xff] %v7920_v59  ;;  %v693_v10 = vadd.f32 0.19993454, %v692_v40  ;;  %v731_v29 = vmul.f32 %v730_v44, %v7897_v13  ;;  %v7929_v32 = vfloor.f32 %v7911_v15  ;;  %v7931_v37 = vadd.f32 1e-10, %v363_v63  ;;  %v1353_v59 = vld [vmem:[#allocation4 + $0x1d0] sm:$0xff] }
 0x128   :  { %v819_v6 = vmax.f32 %v7836_v12, %v7917_v20  ;;  %v5778_v7 = vpack.c.bf16 %v1352_v47, %v1351_v8  ;;  %v411_v44 = vsel %vm410_vm1, %v7812_v60, %v409_v3  ;;  %v5756_v54 = vpack.c.bf16 %v1308_v34, %v1307_v45  ;;  %v1310_v3 = vld [vmem:[#allocation4 + $0x78] sm:$0xff]  ;;  %v1337_v45 = vld [vmem:[#allocation4 + $0x150] sm:$0xff] }
 0x129   :  { %v6789_v14 = vpop.eup %6788  ;;  %v694_v40 = vmul.f32 %v693_v10, %v7778_v22  ;;  %v732_v28 = vadd.f32 0.04247222, %v731_v29  ;;  %v5780_v21 = vpack.c.bf16 %v1336_v46, %v1335_v58  ;;  %v5758_v63 = vpack.c.bf16 %v1326_v61, %v1325_v53  ;;  %v1338_v34 = vld [vmem:[#allocation4 + $0x158] sm:$0xff]  ;;  %v1375_v61 = vld [vmem:[#allocation4 + $0x280] sm:$0xff] }
 0x12a   :  { %v7939_v23 = vmul.f32 %v6789_v14, %v771_v41  ;;  %6790 = vrcp.f32 %v819_v6  ;;  %5779 = vmatprep.subr.bf16.mxu1 %v5778_v7  ;;  %v7942_v8 = vmul.f32 %v889_v18, %v7703_v38  ;;  %5757 = vmatpush3.bf16.msra.mxu0 %v5756_v54  ;;  %v7947_v29 = vadd.f32 -8.0, %v7875_v1  ;;  %v1355_v54 = vld [vmem:[#allocation4 + $0x1e0] sm:$0xff]  ;;  %v1376_v6 = vld [vmem:[#allocation4 + $0x288] sm:$0xff] }
 0x12b   :  { %v695_v47 = vadd.f32 -0.33333147, %v694_v40  ;;  %v733_v10 = vmul.f32 %v732_v28, %v7897_v13  ;;  %v7950_v58 = vmul.f32 %v953_v31, %v7703_v38  ;;  %vm699_vm2 = vcmp.gt.f32.partialorder %v7599_v11, %v7552_v36  ;;  %5781 = vmatpush3.bf16.msra.mxu1 %v5780_v21  ;;  %5759 = vmatprep.subr.bf16.mxu0 %v5758_v63  ;;  %v1356_v31 = vld [vmem:[#allocation4 + $0x1e8] sm:$0xff]  ;;  %v1339_v14 = vld [vmem:[#allocation4 + $0x160] sm:$0xff] }
 0x12c   :  { %v414_v18 = vsel %vm412_vm7, %v413_v56, %v411_v44  ;;  %v7958_v41 = vmul.f32 %v7939_v23, %v7939_v23  ;;  %6792 = vrsqrt.f32 %v7931_v37  ;;  %v5782_v38 = vpack.c.bf16 %v1354_v17, %v1353_v59  ;;  %v8861_v17 = vld [vmem:[#allocation16_spill] sm:$0xff] }
 0x12d   :  { %v696_v46 = vmul.f32 %v695_v47, %v7778_v22  ;;  %v734_v53 = vadd.f32 -0.074975304, %v733_v10  ;;  %v7964_v60 = vsub.f32 %v7911_v15, %v7929_v32  ;;  %vm710_vm5 = vcmp.ne.f32.partialorder %v7585_v51, %v7585_v51  ;;  %v1340_v22 = vld [vmem:[#allocation4 + $0x168] sm:$0xff] }
 0x12e   :  { %v776_v21 = vmul.f32 0.002785687, %v7958_v41  ;;  %v5760_v56 = vpack.c.bf16 %v1310_v3, %v1309_v50  ;;  %v5784_v7 = vpack.c.bf16 %v1338_v34, %v1337_v45  ;;  %vm716_vm15 = vcmp.eq.s32.totalorder %v7599_v11, inf  ;;  %5783 = vmatprep.subr.bf16.mxu1 %v5782_v38  ;;  %v1358_v11 = vld [vmem:[#allocation4 + $0x1f8] sm:$0xff] }
 0x12f   :  { %v697_v40 = vmul.f32 %v696_v46, %v7743_v39  ;;  %v7972_v59 = vmul.f32 %v8861_v17, %v414_v18  ;;  %v735_v44 = vmul.f32 %v734_v53, %v7897_v13  ;;  %vm896_vm9 = vcmp.ge.f32.partialorder %v7814_v35, 8.0 }
 0x130   :  { %vm709_vm14 = vcmp.ne.f32.partialorder %v7493_v43, %v7493_v43  ;;  %vm707_vm11 = vcmp.eq.f32.partialorder %v7585_v51, 0.0  ;;  %v777_v50 = vadd.f32 -0.015866, %v776_v21  ;;  %5761 = vmatpush3.bf16.msra.mxu0 %v5760_v56  ;;  %5785 = vmatpush3.bf16.msra.mxu1 %v5784_v7  ;;  %v4595_v15 = vadd.f32 -8.0, %v7814_v35 }
 0x131   :  { %v5786_v28 = vpack.c.bf16 %v1356_v31, %v1355_v54  ;;  %v5794_v63 = vpack.c.bf16 %v1376_v6, %v1375_v61  ;;  %vm715_vm10 = vcmp.eq.s32.totalorder %v7552_v36, inf  ;;  %v698_v47 = vadd.f32 %v697_v40, %v7743_v39  ;;  %vm711_vm7 = vmor %vm709_vm14, %vm710_vm5 }
 0x132   :  { %v736_v10 = vadd.f32 0.1064488, %v735_v44  ;;  %vm895_vm8 = vcmp.ge.f32.partialorder %v7828_v42, 8.0  ;;  %v5788_v3 = vpack.c.bf16 %v1340_v22, %v1339_v14  ;;  %v954_v45 = vsub.f32 1.0, %v7964_v60 }
 0x133   :  { %v778_v34 = vmul.f32 %v777_v50, %v7958_v41  ;;  %v7988_v18 = vsel %vm896_vm9, %v4595_v15, %v7814_v35  ;;  %5787 = vmatprep.subr.bf16.mxu1 %v5786_v28  ;;  %5795 = vmatprep.subr.bf16.mxu0 %v5794_v63  ;;  %v7992_v54 = vsel %vm895_vm8, %v7883_v52, %v7828_v42  ;;  %v700_v39 = vsub.f32 1.5707964, %v698_v47 }
 0x134   :  { %8862 = vst [vmem:[#allocation20_spill] sm:$0xff] %v7992_v54  ;;  %v737_v46 = vmul.f32 %v736_v10, %v7897_v13  ;;  %v818_v53 = vmin.f32 %v7836_v12, %v7917_v20  ;;  %v920_v38 = vadd.f32 1.0, %v7988_v18  ;;  %v6791_v31 = vpop.eup %6790  ;;  %v8001_v35 = vmul.f32 %v7909_v2, %v7909_v2  ;;  %5789 = vmatpush3.bf16.msra.mxu1 %v5788_v3 }
 0x135   :  { %v779_v61 = vadd.f32 0.04247222, %v778_v34  ;;  %v919_v21 = vadd.f32 1.0, %v7992_v54  ;;  %v701_v42 = vsel %vm699_vm2, %v700_v39, %v698_v47  ;;  %vm976_vm4 = vcmp.eq.f32.partialorder %v7988_v18, 0.0  ;;  %vm717_vm2 = vmand %vm715_vm10, %vm716_vm15 }
 0x136   :  { %v738_v52 = vadd.f32 -0.14207031, %v737_v46  ;;  %v8007_v56 = vmul.f32 %v6791_v31, %v818_v53  ;;  %vm928_vm13 = vcmp.ge.f32.partialorder %v920_v38, 8.0  ;;  %v703_v7 = vsub.f32 3.1415927, %v701_v42  ;;  %v8011_v40 = vpop.eup %6792 }
 0x137   :  { %v780_v14 = vmul.f32 %v779_v61, %v7958_v41  ;;  %v4603_v22 = vadd.f32 -8.0, %v920_v38  ;;  %v8014_v17 = vmul.f32 %v954_v45, %v7750_v57  ;;  %v984_v15 = vsel %vm976_vm4, %v7900_v49, 0.0  ;;  %v1360_v61 = vld [vmem:[#allocation4 + $0x208] sm:$0xff] }
 0x138   :  { %v739_v44 = vmul.f32 %v738_v52, %v7897_v13  ;;  %v8019_v50 = vmul.f32 %v8007_v56, %v8007_v56  ;;  %v704_v28 = vsel %vm702_vm0, %v703_v7, %v701_v42  ;;  %v4602_v10 = vadd.f32 -8.0, %v919_v21  ;;  %v1357_v42 = vld [vmem:[#allocation4 + $0x1f0] sm:$0xff] }
 0x139   :  { %v781_v63 = vadd.f32 -0.074975304, %v780_v14  ;;  %v8024_v47 = vsel %vm928_vm13, %v4603_v22, %v920_v38  ;;  %vm898_vm1 = vcmp.ge.f32.partialorder %v7929_v32, 8.0  ;;  %v708_v3 = vsel %vm707_vm11, %v7564_v24, %v704_v28  ;;  %v1359_v24 = vld [vmem:[#allocation4 + $0x200] sm:$0xff]  ;;  %v1377_v22 = vld [vmem:[#allocation4 + $0x290] sm:$0xff] }
 0x13a   :  { %v740_v45 = vadd.f32 0.19993454, %v739_v44  ;;  %v823_v34 = vmul.f32 0.002785687, %v8019_v50  ;;  %vm927_vm0 = vcmp.ge.f32.partialorder %v919_v21, 8.0  ;;  %v712_v39 = vsel %vm711_vm7, nan, %v708_v3 }
 0x13b   :  { %v782_v46 = vmul.f32 %v781_v63, %v7958_v41  ;;  %vm992_vm9 = vcmp.eq.f32.partialorder %v8024_v47, 0.0  ;;  %vm975_vm11 = vcmp.eq.f32.partialorder %v7992_v54, 0.0  ;;  %v718_v43 = vsel %vm717_vm2, %v7581_v62, %v712_v39  ;;  %v1378_v44 = vld [vmem:[#allocation4 + $0x298] sm:$0xff]  ;;  %v1341_v3 = vld [vmem:[#allocation4 + $0x170] sm:$0xff] }
 0x13c   :  { %v741_v53 = vmul.f32 %v740_v45, %v7897_v13  ;;  %v824_v38 = vadd.f32 -0.015866, %v823_v34  ;;  %v1000_v31 = vsel %vm992_vm9, %v7889_v33, 0.0  ;;  %v719_v52 = vand.u32 2147483647, %v718_v43  ;;  %v1342_v45 = vld [vmem:[#allocation4 + $0x178] sm:$0xff] }
 0x13d   :  { %v783_v36 = vadd.f32 0.1064488, %v782_v46  ;;  %v1008_v7 = vadd.f32 %v1000_v31, %v984_v15  ;;  %v8048_v14 = vsel %vm927_vm0, %v4602_v10, %v919_v21  ;;  %v983_v62 = vsel %vm975_vm11, %v7903_v0, 0.0  ;;  %v1361_v46 = vld [vmem:[#allocation4 + $0x210] sm:$0xff]  ;;  %v1362_v43 = vld [vmem:[#allocation4 + $0x218] sm:$0xff]  ;;  %v1380_v0 = vld [vmem:[#allocation4 + $0x2a8] sm:$0xff] }
 0x13e   :  { %v742_v28 = vadd.f32 -0.33333147, %v741_v53  ;;  %v825_v63 = vmul.f32 %v824_v38, %v8019_v50  ;;  %vm991_vm5 = vcmp.eq.f32.partialorder %v8048_v14, 0.0  ;;  %v8863_v34 = vand.u32 2147483648, %v7585_v51  ;;  %v1379_v53 = vld [vmem:[#allocation4 + $0x2a0] sm:$0xff] }
 0x13f   :  { %vm746_vm15 = vcmp.gt.f32.partialorder %v7756_v25, %v7698_v19  ;;  %v784_v21 = vmul.f32 %v783_v36, %v7958_v41  ;;  %2383 = vmatprep.mubr.f32.mxu0 %v1008_v7  ;;  %v999_v15 = vsel %vm991_vm5, %v7892_v27, 0.0  ;;  %v5796_v10 = vpack.c.bf16 %v1360_v61, %v1359_v24  ;;  %v1407_v51 = vld [vmem:[#allocation4 + $0x380] sm:$0xff] }
 0x140   :  { %v721_v39 = vor.u32 %v8863_v34, %v719_v52  ;;  %v743_v38 = vmul.f32 %v742_v28, %v7897_v13  ;;  %v826_v31 = vadd.f32 0.04247222, %v825_v63  ;;  %v1007_v6 = vadd.f32 %v999_v15, %v983_v62  ;;  %v1408_v52 = vld [vmem:[#allocation4 + $0x388] sm:$0xff] }
 0x141   :  { %v5790_v16 = vpack.c.bf16 %v1358_v11, %v1357_v42  ;;  %vm757_vm14 = vcmp.ne.f32.partialorder %v7713_v9, %v7713_v9  ;;  %v785_v36 = vadd.f32 -0.14207031, %v784_v21  ;;  %v5798_v7 = vpack.c.bf16 %v1378_v44, %v1377_v22 }
 0x142   :  { %v867_v34 = vadd.f32 6.2831855, %v721_v39  ;;  %v5792_v54 = vpack.c.bf16 %v1342_v45, %v1341_v3  ;;  %v744_v24 = vmul.f32 %v743_v38, %v7880_v26  ;;  %vm763_vm10 = vcmp.eq.s32.totalorder %v7756_v25, inf  ;;  %2384 = vmatmul.mubr.f32.vlgmr.msra.gmra.mrb[0].mxu0 %v1007_v6 }
 0x143   :  { %v827_v61 = vmul.f32 %v826_v31, %v8019_v50  ;;  %5791 = vmatprep.subr.bf16.mxu1 %v5790_v16  ;;  %v5800_v13 = vpack.c.bf16 %v1362_v43, %v1361_v46  ;;  %v4597_v42 = vadd.f32 -8.0, %v7929_v32  ;;  %vm756_vm8 = vcmp.ne.f32.partialorder %v7554_v55, %v7554_v55  ;;  %5797 = vmatpush3.bf16.msra.mxu0 %v5796_v10 }
 0x144   :  { %v875_v11 = vmul.f32 1.2732395, %v867_v34  ;;  %vm754_vm13 = vcmp.eq.f32.partialorder %v7713_v9, 0.0  ;;  %v786_v22 = vmul.f32 %v785_v36, %v7958_v41  ;;  %5793 = vmatpush3.bf16.msra.mxu1 %v5792_v54  ;;  %v5802_v44 = vpack.c.bf16 %v1380_v0, %v1379_v53  ;;  %5799 = vmatprep.subr.bf16.mxu0 %v5798_v7  ;;  %v1363_v34 = vld [vmem:[#allocation4 + $0x220] sm:$0xff]  ;;  %v1364_v36 = vld [vmem:[#allocation4 + $0x228] sm:$0xff]  ;;  %v8864_v7 = vld [vmem:[#allocation10_spill] sm:$0xff] }
 0x145   :  { %v5826_v28 = vpack.c.bf16 %v1408_v52, %v1407_v51  ;;  %v745_v63 = vadd.f32 %v744_v24, %v7880_v26  ;;  %vm762_vm4 = vcmp.eq.s32.totalorder %v7698_v19, inf  ;;  %v828_v16 = vadd.f32 -0.074975304, %v827_v61  ;;  %vm8129_vm5 = vmor %vm756_vm8, %vm757_vm14  ;;  %v8154_v19 = vld [vmem:[#allocation4 + $0x398] sm:$0xff] }
 0x146   :  { %v8077_v6 = vsel %vm898_vm1, %v4597_v42, %v7929_v32  ;;  %vm897_vm7 = vcmp.ge.f32.partialorder %v7875_v1, 8.0  ;;  %v8080_v62 = vfloor.f32 %v875_v11  ;;  %v787_v3 = vadd.f32 0.19993454, %v786_v22  ;;  %v8135_v22 = vld [vmem:[#allocation4 + $0x300] sm:$0xff] }
 0x147   :  { %v364_v0 = vadd.f32 %v8001_v35, %v7857_v48  ;;  %v922_v54 = vadd.f32 1.0, %v8077_v6  ;;  %5827 = vmatprep.subr.bf16.mxu1 %v5826_v28  ;;  %v8087_v26 = vmul.f32 %v7964_v60, %v7750_v57  ;;  %v747_v45 = vsub.f32 1.5707964, %v745_v63  ;;  %5801 = vmatpush3.bf16.msra.mxu0 %v5800_v13  ;;  %v1381_v28 = vld [vmem:[#allocation4 + $0x2b0] sm:$0xff] }
 0x148   :  { %v829_v39 = vmul.f32 %v828_v16, %v8019_v50  ;;  %v861_v32 = vand.u32 2147483648, %v7909_v2  ;;  %v8092_v21 = vsub.f32 %v875_v11, %v8080_v62  ;;  %v788_v15 = vmul.f32 %v787_v3, %v7958_v41  ;;  %5803 = vmatprep.subr.bf16.mxu0 %v5802_v44  ;;  %v8137_v44 = vld [vmem:[#allocation4 + $0x308] sm:$0xff]  ;;  %v1382_v16 = vld [vmem:[#allocation4 + $0x2b8] sm:$0xff]  ;;  %v8147_v3 = vld [vmem:[#allocation4 + $0x390] sm:$0xff] }
 0x149   :  { %vm978_vm1 = vcmp.eq.f32.partialorder %v8077_v6, 0.0  ;;  %v8098_v48 = vsel %vm897_vm7, %v7947_v29, %v7875_v1  ;;  %v748_v57 = vsel %vm746_vm15, %v747_v45, %v745_v63  ;;  %vm930_vm0 = vcmp.ge.f32.partialorder %v922_v54, 8.0 }
 0x14a   :  { %v830_v60 = vadd.f32 0.1064488, %v829_v39  ;;  %v4605_v35 = vadd.f32 -8.0, %v922_v54  ;;  %vm899_vm2 = vcmp.ge.f32.partialorder %v8080_v62, 8.0  ;;  %v750_v10 = vsub.f32 3.1415927, %v748_v57 }
 0x14b   :  { %v8104_v46 = vadd.f32 1e-10, %v364_v0  ;;  %v986_v43 = vsel %vm978_vm1, %v8014_v17, 0.0  ;;  %v789_v53 = vadd.f32 -0.33333147, %v788_v15  ;;  %v921_v29 = vadd.f32 1.0, %v8098_v48 }
 0x14c   :  { %v831_v38 = vmul.f32 %v830_v60, %v8019_v50  ;;  %v8108_v1 = vsel %vm930_vm0, %v4605_v35, %v922_v54  ;;  %v8112_v31 = vadd.f32 -8.0, %v8080_v62  ;;  %v955_v51 = vsub.f32 1.0, %v8092_v21  ;;  %v8867_v0 = vld [vmem:[#allocation17_spill] sm:$0xff]  ;;  %v1365_v39 = vld [vmem:[#allocation4 + $0x230] sm:$0xff]  ;;  %v1366_v15 = vld [vmem:[#allocation4 + $0x238] sm:$0xff] }
 0x14d   :  { %v751_v52 = vsel %vm749_vm3, %v750_v10, %v748_v57  ;;  %vm793_vm9 = vcmp.gt.f32.partialorder %v7861_v4, %v7793_v5  ;;  %vm994_vm11 = vcmp.eq.f32.partialorder %v8108_v1, 0.0  ;;  %v790_v13 = vmul.f32 %v789_v53, %v7958_v41  ;;  %vm764_vm3 = vmand %vm762_vm4, %vm763_vm10  ;;  %v8868_v57 = vld [vmem:[#allocation15_spill] sm:$0xff]  ;;  %v8163_v53 = vld [vmem:[#allocation4 + $0x310] sm:$0xff] }
 0x14e   :  { %v755_v24 = vsel %vm754_vm13, %v8864_v7, %v751_v52  ;;  %v832_v42 = vadd.f32 -0.14207031, %v831_v38  ;;  %v1002_v11 = vsel %vm994_vm11, %v8087_v26, 0.0  ;;  %vm804_vm15 = vcmp.ne.f32.partialorder %v7849_v30, %v7849_v30  ;;  %v8165_v38 = vld [vmem:[#allocation4 + $0x318] sm:$0xff]  ;;  %v1383_v52 = vld [vmem:[#allocation4 + $0x2c0] sm:$0xff] }
 0x14f   :  { %v759_v63 = vsel %vm8129_vm5, nan, %v755_v24  ;;  %v1010_v55 = vadd.f32 %v1002_v11, %v986_v43  ;;  %vm929_vm14 = vcmp.ge.f32.partialorder %v921_v29, 8.0  ;;  %v4604_v41 = vadd.f32 -8.0, %v921_v29 }
 0x150   :  { %v765_v54 = vsel %vm764_vm3, %v8867_v0, %v759_v63  ;;  %v791_v45 = vmul.f32 %v790_v13, %v7939_v23  ;;  %vm810_vm8 = vcmp.eq.s32.totalorder %v7861_v4, inf  ;;  %v833_v25 = vmul.f32 %v832_v42, %v8019_v50  ;;  %v1384_v13 = vld [vmem:[#allocation4 + $0x2c8] sm:$0xff]  ;;  %v8170_v42 = vld [vmem:[#allocation4 + $0x3a0] sm:$0xff]  ;;  %v8304_v4 = vld [vmem:[#allocation4 + $0x270] sm:$0xff] }
 0x151   :  { %vm977_vm13 = vcmp.eq.f32.partialorder %v8098_v48, 0.0  ;;  %vm803_vm10 = vcmp.ne.f32.partialorder %v8868_v57, %v8868_v57  ;;  %v766_v60 = vand.u32 2147483647, %v765_v54  ;;  %vm801_vm4 = vcmp.eq.f32.partialorder %v7849_v30, 0.0  ;;  %2453 = vmatprep.mubr.f32.mxu1 %v1010_v55  ;;  %v8179_v55 = vld [vmem:[#allocation4 + $0x240] sm:$0xff] }
 0x152   :  { %v8160_v35 = vsel %vm929_vm14, %v4604_v41, %v921_v29  ;;  %v985_v10 = vsel %vm977_vm13, %v7950_v58, 0.0  ;;  %v5804_v43 = vpack.c.bf16 %v1364_v36, %v1363_v34  ;;  %v792_v7 = vadd.f32 %v791_v45, %v7939_v23  ;;  %v8172_v29 = vld [vmem:[#allocation4 + $0x3a8] sm:$0xff] }
 0x153   :  { %vm809_vm7 = vcmp.eq.s32.totalorder %v7793_v5, inf  ;;  %v834_v24 = vadd.f32 0.19993454, %v833_v25  ;;  %vm993_vm1 = vcmp.eq.f32.partialorder %v8160_v35, 0.0  ;;  %v5806_v61 = vpack.c.bf16 %v1382_v16, %v1381_v28  ;;  %v8181_v41 = vld [vmem:[#allocation4 + $0x248] sm:$0xff]  ;;  %v8183_v28 = vld [vmem:[#allocation4 + $0x320] sm:$0xff] }
 0x154   :  { %v8869_v34 = vand.u32 2147483648, %v7713_v9  ;;  %v1001_v11 = vsel %vm993_vm1, %v7942_v8, 0.0  ;;  %5805 = vmatpush3.bf16.msra.mxu0 %v5804_v43  ;;  %v5828_v23 = vpack.c.bf16 %v8137_v44, %v8135_v22  ;;  %v5808_v63 = vpack.c.bf16 %v1366_v15, %v1365_v39  ;;  %v8188_v45 = vld [vmem:[#allocation4 + $0x328] sm:$0xff]  ;;  %v8190_v25 = vld [vmem:[#allocation4 + $0x2d0] sm:$0xff]  ;;  %v8192_v22 = vld [vmem:[#allocation4 + $0x2d8] sm:$0xff] }
 0x155   :  { %v794_v16 = vsub.f32 1.5707964, %v792_v7  ;;  %v835_v0 = vmul.f32 %v834_v24, %v8019_v50  ;;  %v1009_v54 = vadd.f32 %v1001_v11, %v985_v10  ;;  %5807 = vmatprep.subr.bf16.mxu0 %v5806_v61  ;;  %v5830_v9 = vpack.c.bf16 %v8154_v19, %v8147_v3  ;;  %v8870_v39 = vld [vmem:[#allocation19_spill] sm:$0xff]  ;;  %v8204_v43 = vld [vmem:[#allocation4 + $0x3b0] sm:$0xff]  ;;  %vm811_vm5 = vmand %vm809_vm7, %vm810_vm8 }
 0x156   :  { %v768_v36 = vor.u32 %v8869_v34, %v766_v60  ;;  %v8198_v44 = vsel %vm899_vm2, %v8112_v31, %v8080_v62  ;;  %v8202_v15 = vmul.f32 %v8092_v21, %v8870_v39  ;;  %v5810_v10 = vpack.c.bf16 %v1384_v13, %v1383_v52  ;;  %v8206_v3 = vld [vmem:[#allocation4 + $0x3b8] sm:$0xff]  ;;  %v8208_v19 = vld [vmem:[#allocation4 + $0x250] sm:$0xff] }
 0x157   :  { %v8213_v24 = vmul.f32 %v955_v51, %v8870_v39  ;;  %v795_v62 = vsel %vm793_vm9, %v794_v16, %v792_v7  ;;  %v836_v31 = vadd.f32 -0.33333147, %v835_v0  ;;  %2454 = vmatmul.mubr.f32.vlgmr.msra.gmra.mrb[0].mxu1 %v1009_v54  ;;  %v5832_v52 = vpack.c.bf16 %v8165_v38, %v8163_v53  ;;  %v8220_v61 = vld [vmem:[#allocation4 + $0x258] sm:$0xff]  ;;  %v8222_v13 = vld [vmem:[#allocation4 + $0x330] sm:$0xff]  ;;  %v8232_v53 = vld [vmem:[#allocation4 + $0x2e0] sm:$0xff] }
 0x158   :  { %v868_v60 = vadd.f32 6.2831855, %v768_v36  ;;  %v8224_v34 = vld [vmem:[#allocation4 + $0x338] sm:$0xff]  ;;  %v797_v11 = vsub.f32 3.1415927, %v795_v62  ;;  %vm840_vm0 = vcmp.gt.f32.partialorder %v7917_v20, %v7836_v12  ;;  %5829 = vmatpush3.bf16.msra.mxu1 %v5828_v23  ;;  %5809 = vmatpush3.bf16.msra.mxu0 %v5808_v63  ;;  %v5834_v21 = vpack.c.bf16 %v8172_v29, %v8170_v42  ;;  %v8234_v38 = vld [vmem:[#allocation4 + $0x2e8] sm:$0xff] }
 0x159   :  { %v5812_v51 = vpack.c.bf16 %v8181_v41, %v8179_v55  ;;  %6794 = vrsqrt.f32 %v8104_v46  ;;  %v837_v7 = vmul.f32 %v836_v31, %v8019_v50  ;;  %5831 = vmatprep.subr.bf16.mxu1 %v5830_v9  ;;  %5811 = vmatprep.subr.bf16.mxu0 %v5810_v10  ;;  %v5836_v23 = vpack.c.bf16 %v8188_v45, %v8183_v28  ;;  %v8242_v42 = vld [vmem:[#allocation4 + $0x3c0] sm:$0xff]  ;;  %v8244_v29 = vld [vmem:[#allocation4 + $0x3c8] sm:$0xff]  ;;  %v8871_v45 = vld [vmem:[#allocation23_spill] sm:$0xff] }
 0x15a   :  { %v876_v36 = vmul.f32 1.2732395, %v868_v60  ;;  %v5814_v63 = vpack.c.bf16 %v8192_v22, %v8190_v25  ;;  %v8246_v55 = vld [vmem:[#allocation4 + $0x260] sm:$0xff]  ;;  %v798_v16 = vsel %vm796_vm6, %v797_v11, %v795_v62  ;;  %vm851_vm2 = vcmp.ne.f32.partialorder %v7909_v2, %v7909_v2  ;;  %v8256_v0 = vld [vmem:[#allocation4 + $0x268] sm:$0xff]  ;;  %vm8271_vm6 = vmor %vm803_vm10, %vm804_vm15 }
 0x15b   :  { %v5838_v50 = vpack.c.bf16 %v8206_v3, %v8204_v43  ;;  %v5816_v28 = vpack.c.bf16 %v8220_v61, %v8208_v19  ;;  %v8258_v54 = vld [vmem:[#allocation4 + $0x340] sm:$0xff]  ;;  %v8260_v9 = vld [vmem:[#allocation4 + $0x348] sm:$0xff]  ;;  %v802_v25 = vsel %vm801_vm4, %v8871_v45, %v798_v16  ;;  %v838_v39 = vmul.f32 %v837_v7, %v8007_v56  ;;  %v8281_v43 = vld [vmem:[#allocation4 + $0x2f0] sm:$0xff] }
 0x15c   :  { %v884_v41 = vfloor.f32 %v876_v36  ;;  %vm857_vm9 = vcmp.eq.s32.totalorder %v7917_v20, inf  ;;  %v5840_v60 = vpack.c.bf16 %v8224_v34, %v8222_v13  ;;  %v5818_v10 = vpack.c.bf16 %v8234_v38, %v8232_v53  ;;  %v8283_v3 = vld [vmem:[#allocation4 + $0x2f8] sm:$0xff]  ;;  %v8874_v19 = vld [vmem:[#allocation18_spill] sm:$0xff]  ;;  %5833 = vmatpush3.bf16.msra.mxu1 %v5832_v52  ;;  %5813 = vmatpush3.bf16.msra.mxu0 %v5812_v51  ;;  %v8330_v22 = vld [vmem:[#allocation4 + $0x480] sm:$0xff] }
 0x15d   :  { %vm850_vm11 = vcmp.ne.f32.partialorder %v8874_v19, %v8874_v19  ;;  %v806_v31 = vsel %vm8271_vm6, nan, %v802_v25  ;;  %vm848_vm3 = vcmp.eq.f32.partialorder %v7909_v2, 0.0  ;;  %v8294_v61 = vld [vmem:[#allocation4 + $0x3d0] sm:$0xff]  ;;  %v8296_v13 = vld [vmem:[#allocation4 + $0x3d8] sm:$0xff]  ;;  %v923_v34 = vadd.f32 1.0, %v8198_v44  ;;  %5835 = vmatprep.subr.bf16.mxu1 %v5834_v21  ;;  %5815 = vmatprep.subr.bf16.mxu0 %v5814_v63 }
 0x15e   :  { %v892_v57 = vsub.f32 %v876_v36, %v884_v41  ;;  %v4599_v62 = vadd.f32 -8.0, %v884_v41  ;;  %v8875_v36 = vld [vmem:[#allocation9_spill] sm:$0xff]  ;;  %vm856_vm15 = vcmp.eq.s32.totalorder %v7836_v12, inf  ;;  %v839_v53 = vadd.f32 %v838_v39, %v8007_v56  ;;  %v8306_v52 = vld [vmem:[#allocation4 + $0x278] sm:$0xff]  ;;  %v8316_v63 = vld [vmem:[#allocation4 + $0x350] sm:$0xff] }
 0x15f   :  { %v812_v11 = vsel %vm811_vm5, %v8875_v36, %v806_v31  ;;  %v5842_v5 = vpack.c.bf16 %v8244_v29, %v8242_v42  ;;  %vm900_vm14 = vcmp.ge.f32.partialorder %v884_v41, 8.0  ;;  %v5820_v7 = vpack.c.bf16 %v8256_v0, %v8246_v55  ;;  %v8332_v39 = vld [vmem:[#allocation4 + $0x488] sm:$0xff]  ;;  %vm8363_vm7 = vmor %vm850_vm11, %vm851_vm2  ;;  %v1442_v20 = vld [vmem:[#allocation4 + $0x498] sm:$0xff] }
 0x160   :  { %v956_v51 = vsub.f32 1.0, %v892_v57  ;;  %v813_v38 = vand.u32 2147483647, %v812_v11  ;;  %v5844_v16 = vpack.c.bf16 %v8260_v9, %v8258_v54  ;;  %v841_v45 = vsub.f32 1.5707964, %v839_v53  ;;  %5837 = vmatpush3.bf16.msra.mxu1 %v5836_v23  ;;  %5817 = vmatpush3.bf16.msra.mxu0 %v5816_v28  ;;  %v8327_v54 = vld [vmem:[#allocation4 + $0x358] sm:$0xff] }
 0x161   :  { %v5822_v56 = vpack.c.bf16 %v8283_v3, %v8281_v43  ;;  %v5846_v21 = vpack.c.bf16 %v8296_v13, %v8294_v61  ;;  %v8318_v42 = vsel %vm900_vm14, %v4599_v62, %v884_v41  ;;  %v8321_v29 = vmul.f32 %v892_v57, %v7972_v59  ;;  %5839 = vmatprep.subr.bf16.mxu1 %v5838_v50  ;;  %v8877_v11 = vld [vmem:[#allocation11_spill] sm:$0xff] }
 0x162   :  { %v8876_v25 = vand.u32 2147483648, %v7849_v30  ;;  %v5824_v0 = vpack.c.bf16 %v8306_v52, %v8304_v4  ;;  %v924_v9 = vadd.f32 1.0, %v8318_v42  ;;  %v8335_v41 = vmul.f32 %v956_v51, %v7972_v59  ;;  %5819 = vmatprep.subr.bf16.mxu0 %v5818_v10  ;;  %v1423_v4 = vld [vmem:[#allocation4 + $0x400] sm:$0xff]  ;;  %v1424_v52 = vld [vmem:[#allocation4 + $0x408] sm:$0xff] }
 0x163   :  { %v842_v30 = vsel %vm840_vm0, %v841_v45, %v839_v53  ;;  %vm931_vm8 = vcmp.ge.f32.partialorder %v923_v34, 8.0  ;;  %v4606_v23 = vadd.f32 -8.0, %v923_v34  ;;  %v6795_v57 = vpop.eup %6794  ;;  %v5848_v62 = vpack.c.bf16 %v8327_v54, %v8316_v63  ;;  %vm858_vm0 = vmand %vm856_vm15, %vm857_vm9  ;;  %v1428_v63 = vld [vmem:[#allocation4 + $0x428] sm:$0xff]  ;;  %v1445_v54 = vld [vmem:[#allocation4 + $0x4b0] sm:$0xff] }
 0x164   :  { %v815_v55 = vor.u32 %v8876_v25, %v813_v38  ;;  %v844_v43 = vsub.f32 3.1415927, %v842_v30  ;;  %vm932_vm13 = vcmp.ge.f32.partialorder %v924_v9, 8.0  ;;  %v4607_v3 = vadd.f32 -8.0, %v924_v9  ;;  %5841 = vmatpush3.bf16.msra.mxu1 %v5840_v60  ;;  %5821 = vmatpush3.bf16.msra.mxu0 %v5820_v7  ;;  %v1419_v38 = vld [vmem:[#allocation4 + $0x3e0] sm:$0xff]  ;;  %v1420_v7 = vld [vmem:[#allocation4 + $0x3e8] sm:$0xff] }
 0x165   :  { %vm980_vm10 = vcmp.eq.f32.partialorder %v8318_v42, 0.0  ;;  %v5858_v59 = vpack.c.bf16 %v8332_v39, %v8330_v22  ;;  %v8345_v31 = vsel %vm931_vm8, %v4606_v23, %v923_v34  ;;  %5843 = vmatprep.subr.bf16.mxu1 %v5842_v5  ;;  %5823 = vmatprep.subr.bf16.mxu0 %v5822_v56  ;;  %vm979_vm1 = vcmp.eq.f32.partialorder %v8198_v44, 0.0  ;;  %v8880_v56 = vld [vmem:[#allocation13_spill] sm:$0xff]  ;;  %v1441_v22 = vld [vmem:[#allocation4 + $0x490] sm:$0xff] }
 0x166   :  { %v869_v28 = vadd.f32 6.2831855, %v815_v55  ;;  %v845_v50 = vsel %vm843_vm12, %v844_v43, %v842_v30  ;;  %v8351_v10 = vsel %vm932_vm13, %v4607_v3, %v924_v9  ;;  %vm995_vm4 = vcmp.eq.f32.partialorder %v8345_v31, 0.0  ;;  %v1403_v30 = vld [vmem:[#allocation4 + $0x360] sm:$0xff]  ;;  %v1404_v23 = vld [vmem:[#allocation4 + $0x368] sm:$0xff] }
 0x167   :  { %v849_v53 = vsel %vm848_vm3, %v8877_v11, %v845_v50  ;;  %v988_v60 = vsel %vm980_vm10, %v8335_v41, 0.0  ;;  %vm996_vm12 = vcmp.eq.f32.partialorder %v8351_v10, 0.0  ;;  %v1003_v45 = vsel %vm995_vm4, %v8202_v15, 0.0  ;;  %v1421_v11 = vld [vmem:[#allocation4 + $0x3f0] sm:$0xff] }
 0x168   :  { %v8347_v36 = vmul.f32 1.2732395, %v869_v28  ;;  %v853_v19 = vsel %vm8363_vm7, nan, %v849_v53  ;;  %v1004_v5 = vsel %vm996_vm12, %v8321_v29, 0.0  ;;  %v987_v9 = vsel %vm979_vm1, %v8213_v24, 0.0  ;;  %5845 = vmatpush3.bf16.msra.mxu1 %v5844_v16  ;;  %5825 = vmatpush3.bf16.msra.mxu0 %v5824_v0  ;;  %v1425_v53 = vld [vmem:[#allocation4 + $0x410] sm:$0xff] }
 0x169   :  { %v859_v25 = vsel %vm858_vm0, %v8880_v56, %v853_v19  ;;  %v1012_v55 = vadd.f32 %v1004_v5, %v988_v60  ;;  %vm1032_vm2 = vcmp.eq.f32.partialorder %v8024_v47, 1.0  ;;  %v5860_v28 = vpack.c.bf16 %v1424_v52, %v1423_v4  ;;  %5847 = vmatprep.subr.bf16.mxu1 %v5846_v21  ;;  %v1426_v16 = vld [vmem:[#allocation4 + $0x418] sm:$0xff]  ;;  %5859 = vmatprep.subr.bf16.mxu0 %v5858_v59  ;;  %v1443_v60 = vld [vmem:[#allocation4 + $0x4a0] sm:$0xff]  ;;  %v1444_v4 = vld [vmem:[#allocation4 + $0x4a8] sm:$0xff] }
 0x16a   :  { %v8371_v51 = vfloor.f32 %v8347_v36  ;;  %v860_v39 = vand.u32 2147483647, %v859_v25  ;;  %v5850_v43 = vpack.c.bf16 %v1420_v7, %v1419_v38  ;;  %v1011_v3 = vadd.f32 %v1003_v45, %v987_v9  ;;  %v1422_v21 = vld [vmem:[#allocation4 + $0x3f8] sm:$0xff]  ;;  %v8881_v19 = vld [vmem:[#allocation8_spill] sm:$0xff] }
 0x16b   :  { %2523 = vmatprep.mubr.f32.mxu0 %v1012_v55  ;;  %vm1016_vm9 = vcmp.eq.f32.partialorder %v7988_v18, 1.0  ;;  %v1040_v50 = vsel %vm1032_vm2, %v7889_v33, 0.0  ;;  %v5862_v34 = vpack.c.bf16 %v1442_v20, %v1441_v22  ;;  %v6804_v52 = vld [vmem:[#allocation2] sm:$0xff]  ;;  %v8882_v5 = vsub.s32 6, %v8881_v19  ;;  %v1471_v22 = vld [vmem:[#allocation4 + $0x580] sm:$0xff]  ;;  %v1472_v20 = vld [vmem:[#allocation4 + $0x588] sm:$0xff] }
 0x16c   :  { %vm901_vm6 = vcmp.ge.f32.partialorder %v8371_v51, 8.0  ;;  %v4600_v12 = vadd.f32 -8.0, %v8371_v51  ;;  %v862_v61 = vor.u32 %v861_v32, %v860_v39  ;;  %v1024_v13 = vsel %vm1016_vm9, %v7900_v49, 0.0  ;;  %2524 = vmatmul.mubr.f32.vlgmr.msra.gmra.mrb[2].mxu0 %v1011_v3  ;;  %v1405_v32 = vld [vmem:[#allocation4 + $0x370] sm:$0xff]  ;;  %5849 = vmatpush3.bf16.msra.mxu1 %v5848_v62  ;;  %v1406_v25 = vld [vmem:[#allocation4 + $0x378] sm:$0xff]  ;;  %v1427_v3 = vld [vmem:[#allocation4 + $0x420] sm:$0xff] }
 0x16d   :  { %v8405_v38 = vrot.slane %v6804_v52, %v8882_v5  ;;  %v416_v7 = vmul.f32 %v8011_v40, %v7931_v37  ;;  %v423_v45 = vmul.f32 %v6795_v57, %v8104_v46  ;;  %v1048_v2 = vadd.f32 %v1040_v50, %v1024_v13  ;;  %5861 = vmatpush3.bf16.msra.mxu0 %v5860_v28  ;;  %v1448_v5 = vld [vmem:[#allocation4 + $0x4c8] sm:$0xff] }
 0x16e   :  { %v8398_v0 = vsel %vm901_vm6, %v4600_v12, %v8371_v51  ;;  %v870_v59 = vadd.f32 6.2831855, %v862_v61  ;;  %v5852_v56 = vpack.c.bf16 %v1404_v23, %v1403_v30  ;;  %v5864_v55 = vpack.c.bf16 %v1426_v16, %v1425_v53  ;;  %5851 = vmatprep.subr.bf16.mxu1 %v5850_v43  ;;  %5863 = vmatprep.subr.bf16.mxu0 %v5862_v34  ;;  %v1446_v23 = vld [vmem:[#allocation4 + $0x4b8] sm:$0xff] }
 0x16f   :  { %v925_v9 = vadd.f32 1.0, %v8398_v0  ;;  %vm417_vm11 = vcmp.eq.f32.partialorder %v7931_v37, inf  ;;  %v8883_v40 = vsub.s32 7, %v8881_v19  ;;  %2663 = vmatprep.mubr.f32.mxu0 %v1048_v2  ;;  %v5854_v12 = vpack.c.bf16 %v1422_v21, %v1421_v11  ;;  %v1447_v19 = vld [vmem:[#allocation4 + $0x4c0] sm:$0xff] }
 0x170   :  { %v5866_v39 = vpack.c.bf16 %v1444_v4, %v1443_v60  ;;  %vm419_vm5 = vcmp.eq.f32.partialorder %v7931_v37, 0.0  ;;  %v420_v62 = vand.u32 2147483648, %v7931_v37  ;;  %vm424_vm3 = vcmp.eq.f32.partialorder %v8104_v46, inf  ;;  %5853 = vmatpush3.bf16.msra.mxu1 %v5852_v56  ;;  %v1429_v60 = vld [vmem:[#allocation4 + $0x430] sm:$0xff]  ;;  %v1430_v4 = vld [vmem:[#allocation4 + $0x438] sm:$0xff] }
 0x171   :  { %v462_v57 = vrot.slane %v6804_v52, %v8883_v40  ;;  %v878_v30 = vmul.f32 1.2732395, %v870_v59  ;;  %v418_v28 = vsel %vm417_vm11, %v7931_v37, %v416_v7  ;;  %v893_v43 = vsub.f32 %v8347_v36, %v8371_v51  ;;  %5865 = vmatpush3.bf16.msra.mxu0 %v5864_v55  ;;  %5855 = vmatprep.subr.bf16.mxu1 %v5854_v12  ;;  %v1449_v40 = vld [vmem:[#allocation4 + $0x4d0] sm:$0xff]  ;;  %v1450_v12 = vld [vmem:[#allocation4 + $0x4d8] sm:$0xff] }
 0x172   :  { %v425_v50 = vsel %vm424_vm3, %v8104_v46, %v423_v45  ;;  %v427_v11 = vand.u32 2147483648, %v8104_v46  ;;  %v5856_v16 = vpack.c.bf16 %v1406_v25, %v1405_v32  ;;  %v4608_v61 = vadd.f32 -8.0, %v925_v9  ;;  %5867 = vmatprep.subr.bf16.mxu0 %v5866_v39 }
 0x173   :  { %v886_v53 = vfloor.f32 %v878_v30  ;;  %v5868_v13 = vpack.c.bf16 %v1428_v63, %v1427_v3  ;;  %vm426_vm15 = vcmp.eq.f32.partialorder %v8104_v46, 0.0  ;;  %vm933_vm14 = vcmp.ge.f32.partialorder %v925_v9, 8.0 }
 0x174   :  { %v5890_v21 = vpack.c.bf16 %v1472_v20, %v1471_v22  ;;  %v5870_v34 = vpack.c.bf16 %v1446_v23, %v1445_v54  ;;  %v428_v36 = vsel %vm426_vm15, %v427_v11, %v425_v50  ;;  %v421_v7 = vsel %vm419_vm5, %v420_v62, %v418_v28  ;;  %5857 = vmatpush3.bf16.msra.mxu1 %v5856_v16  ;;  %v1431_v22 = vld [vmem:[#allocation4 + $0x440] sm:$0xff]  ;;  %v1432_v20 = vld [vmem:[#allocation4 + $0x448] sm:$0xff]  ;;  %v1473_v23 = vld [vmem:[#allocation4 + $0x590] sm:$0xff] }
 0x175   :  { %v894_v51 = vsub.f32 %v878_v30, %v886_v53  ;;  %v4601_v52 = vadd.f32 -8.0, %v886_v53  ;;  %vm902_vm8 = vcmp.ge.f32.partialorder %v886_v53, 8.0  ;;  %v957_v45 = vsub.f32 1.0, %v893_v43  ;;  %5869 = vmatpush3.bf16.msra.mxu0 %v5868_v13  ;;  %v1456_v30 = vld [vmem:[#allocation4 + $0x508] sm:$0xff]  ;;  %v1474_v50 = vld [vmem:[#allocation4 + $0x598] sm:$0xff]  ;;  %v1433_v11 = vld [vmem:[#allocation4 + $0x450] sm:$0xff] }
 0x176   :  { %v8431_v46 = vsel %vm933_vm14, %v4608_v61, %v925_v9  ;;  %v5872_v59 = vpack.c.bf16 %v1430_v4, %v1429_v60  ;;  %v478_v56 = vmul.f32 %v462_v57, %v428_v36  ;;  %5891 = vmatprep.subr.bf16.mxu1 %v5890_v21  ;;  %5871 = vmatprep.subr.bf16.mxu0 %v5870_v34  ;;  %vm1034_vm4 = vcmp.eq.f32.partialorder %v8108_v1, 1.0  ;;  %v1451_v21 = vld [vmem:[#allocation4 + $0x4e0] sm:$0xff]  ;;  %v1452_v34 = vld [vmem:[#allocation4 + $0x4e8] sm:$0xff] }
 0x177   :  { %v958_v2 = vsub.f32 1.0, %v894_v51  ;;  %v8428_v32 = vsel %vm902_vm8, %v4601_v52, %v886_v53  ;;  %v5874_v55 = vpack.c.bf16 %v1448_v5, %v1447_v19  ;;  %v477_v37 = vmul.f32 %v8405_v38, %v421_v7  ;;  %v1455_v38 = vld [vmem:[#allocation4 + $0x500] sm:$0xff]  ;;  %v1434_v53 = vld [vmem:[#allocation4 + $0x458] sm:$0xff]  ;;  %v1457_v5 = vld [vmem:[#allocation4 + $0x510] sm:$0xff] }
 0x178   :  { %v926_v25 = vadd.f32 1.0, %v8428_v32  ;;  %vm997_vm10 = vcmp.eq.f32.partialorder %v8431_v46, 0.0  ;;  %v5876_v63 = vpack.c.bf16 %v1432_v20, %v1431_v22  ;;  %v8443_v54 = vmul.f32 %v894_v51, %v478_v56  ;;  %v1458_v7 = vld [vmem:[#allocation4 + $0x518] sm:$0xff]  ;;  %v1436_v22 = vld [vmem:[#allocation4 + $0x468] sm:$0xff]  ;;  %v1453_v20 = vld [vmem:[#allocation4 + $0x4f0] sm:$0xff] }
 0x179   :  { %v8435_v39 = vmul.f32 %v958_v2, %v478_v56  ;;  %v8438_v9 = vmul.f32 %v957_v45, %v477_v37  ;;  %v8440_v57 = vmul.f32 %v893_v43, %v477_v37  ;;  %5873 = vmatpush3.bf16.msra.mxu0 %v5872_v59  ;;  %v5878_v28 = vpack.c.bf16 %v1450_v12, %v1449_v40  ;;  %v1475_v45 = vld [vmem:[#allocation4 + $0x5a0] sm:$0xff]  ;;  %v1476_v56 = vld [vmem:[#allocation4 + $0x5a8] sm:$0xff]  ;;  %v1454_v37 = vld [vmem:[#allocation4 + $0x4f8] sm:$0xff] }
 0x17a   :  { %vm934_vm13 = vcmp.ge.f32.partialorder %v926_v25, 8.0  ;;  %v4609_v3 = vadd.f32 -8.0, %v926_v25  ;;  %5875 = vmatprep.subr.bf16.mxu0 %v5874_v55  ;;  %vm982_vm7 = vcmp.eq.f32.partialorder %v8428_v32, 0.0  ;;  %vm981_vm1 = vcmp.eq.f32.partialorder %v8398_v0, 0.0  ;;  %v1435_v55 = vld [vmem:[#allocation4 + $0x460] sm:$0xff] }
 0x17b   :  { %v1005_v43 = vsel %vm997_vm10, %v8440_v57, 0.0  ;;  %v990_v16 = vsel %vm982_vm7, %v8435_v39, 0.0  ;;  %v1042_v13 = vsel %vm1034_vm4, %v8087_v26, 0.0  ;;  %v989_v4 = vsel %vm981_vm1, %v8438_v9, 0.0 }
 0x17c   :  { %v8445_v62 = vsel %vm934_vm13, %v4609_v3, %v926_v25  ;;  %v5892_v36 = vpack.c.bf16 %v1456_v30, %v1455_v38  ;;  %vm1018_vm0 = vcmp.eq.f32.partialorder %v8077_v6, 1.0  ;;  %v1013_v51 = vadd.f32 %v1005_v43, %v989_v4  ;;  %v1459_v3 = vld [vmem:[#allocation4 + $0x520] sm:$0xff]  ;;  %v1477_v38 = vld [vmem:[#allocation4 + $0x5b0] sm:$0xff]  ;;  %v1480_v4 = vld [vmem:[#allocation4 + $0x5c8] sm:$0xff] }
 0x17d   :  { %vm998_vm12 = vcmp.eq.f32.partialorder %v8445_v62, 0.0  ;;  %5877 = vmatpush3.bf16.msra.mxu0 %v5876_v63  ;;  %v1026_v52 = vsel %vm1018_vm0, %v8014_v17, 0.0  ;;  %v5894_v19 = vpack.c.bf16 %v1474_v50, %v1473_v23  ;;  %v5880_v2 = vpack.c.bf16 %v1434_v53, %v1433_v11  ;;  %v1460_v63 = vld [vmem:[#allocation4 + $0x528] sm:$0xff]  ;;  %v1478_v23 = vld [vmem:[#allocation4 + $0x5b8] sm:$0xff]  ;;  %v1437_v43 = vld [vmem:[#allocation4 + $0x470] sm:$0xff] }
 0x17e   :  { %v1006_v61 = vsel %vm998_vm12, %v8443_v54, 0.0  ;;  %5879 = vmatprep.subr.bf16.mxu0 %v5878_v28  ;;  %v1050_v59 = vadd.f32 %v1042_v13, %v1026_v52  ;;  %v5882_v25 = vpack.c.bf16 %v1452_v34, %v1451_v21  ;;  %v5896_v40 = vpack.c.bf16 %v1458_v7, %v1457_v5  ;;  %v1438_v50 = vld [vmem:[#allocation4 + $0x478] sm:$0xff]  ;;  %v1503_v11 = vld [vmem:[#allocation4 + $0x680] sm:$0xff]  ;;  %v1504_v53 = vld [vmem:[#allocation4 + $0x688] sm:$0xff] }
 0x17f   :  { %v1014_v60 = vadd.f32 %v1006_v61, %v990_v16  ;;  %v5898_v12 = vpack.c.bf16 %v1476_v56, %v1475_v45  ;;  %v5884_v30 = vpack.c.bf16 %v1436_v22, %v1435_v55  ;;  %v5886_v28 = vpack.c.bf16 %v1454_v37, %v1453_v20  ;;  %v1461_v13 = vld [vmem:[#allocation4 + $0x530] sm:$0xff]  ;;  %v1462_v21 = vld [vmem:[#allocation4 + $0x538] sm:$0xff]  ;;  %v1479_v34 = vld [vmem:[#allocation4 + $0x5c0] sm:$0xff] }
 0x180   :  { %v5900_v16 = vpack.c.bf16 %v1460_v63, %v1459_v3  ;;  %vm1031_vm2 = vcmp.eq.f32.partialorder %v8048_v14, 1.0  ;;  %v5902_v61 = vpack.c.bf16 %v1478_v23, %v1477_v38  ;;  %v1488_v52 = vld [vmem:[#allocation4 + $0x608] sm:$0xff]  ;;  %vm1036_vm6 = vcmp.eq.f32.partialorder %v8351_v10, 1.0  ;;  %v1505_v5 = vld [vmem:[#allocation4 + $0x690] sm:$0xff]  ;;  %v1506_v7 = vld [vmem:[#allocation4 + $0x698] sm:$0xff] }
 0x181   :  { %2593 = vmatprep.mubr.f32.mxu1 %v1014_v60  ;;  %5881 = vmatpush3.bf16.msra.mxu0 %v5880_v2  ;;  %v5888_v60 = vpack.c.bf16 %v1438_v50, %v1437_v43  ;;  %v5904_v45 = vpack.c.bf16 %v1462_v21, %v1461_v13  ;;  %v8884_v2 = vld [vmem:[#allocation20_spill] sm:$0xff]  ;;  %v1481_v55 = vld [vmem:[#allocation4 + $0x5d0] sm:$0xff]  ;;  %vm1020_vm11 = vcmp.eq.f32.partialorder %v8318_v42, 1.0  ;;  %v5926_v63 = vpack.c.bf16 %v1506_v7, %v1505_v5  ;;  %v1508_v43 = vld [vmem:[#allocation4 + $0x6a8] sm:$0xff] }
 0x182   :  { %2594 = vmatmul.mubr.f32.vlgmr.msra.gmra.mrb[2].mxu1 %v1013_v51  ;;  %5883 = vmatprep.subr.bf16.mxu0 %v5882_v25  ;;  %v1487_v51 = vld [vmem:[#allocation4 + $0x600] sm:$0xff]  ;;  %vm1015_vm9 = vcmp.eq.f32.partialorder %v8884_v2, 1.0  ;;  %v1464_v25 = vld [vmem:[#allocation4 + $0x548] sm:$0xff]  ;;  %v1489_v38 = vld [vmem:[#allocation4 + $0x610] sm:$0xff]  ;;  %v1028_v23 = vsel %vm1020_vm11, %v8335_v41, 0.0  ;;  %vm1033_vm5 = vcmp.eq.f32.partialorder %v8160_v35, 1.0 }
 0x183   :  { %5893 = vmatpush3.bf16.msra.mxu1 %v5892_v36  ;;  %2733 = vmatprep.mubr.f32.mxu1 %v1050_v59  ;;  %v5922_v36 = vpack.c.bf16 %v1504_v53, %v1503_v11  ;;  %v5906_v59 = vpack.c.bf16 %v1480_v4, %v1479_v34  ;;  %v1463_v56 = vld [vmem:[#allocation4 + $0x540] sm:$0xff]  ;;  %v5924_v37 = vpack.c.bf16 %v1488_v52, %v1487_v51  ;;  %v1484_v34 = vld [vmem:[#allocation4 + $0x5e8] sm:$0xff]  ;;  %v1509_v51 = vld [vmem:[#allocation4 + $0x6b0] sm:$0xff]  ;;  %vm1038_vm3 = vcmp.eq.f32.partialorder %v8445_v62, 1.0 }
 0x184   :  { %5895 = vmatprep.subr.bf16.mxu1 %v5894_v19  ;;  %v1039_v19 = vsel %vm1031_vm2, %v7892_v27, 0.0  ;;  %v8885_v22 = vld [vmem:[#allocation12_spill] sm:$0xff]  ;;  %v5908_v50 = vpack.c.bf16 %v1464_v25, %v1463_v56  ;;  %v1510_v52 = vld [vmem:[#allocation4 + $0x6b8] sm:$0xff]  ;;  %vm1017_vm15 = vcmp.eq.f32.partialorder %v8098_v48, 1.0  ;;  %vm1022_vm14 = vcmp.eq.f32.partialorder %v8428_v32, 1.0 }
 0x185   :  { %5885 = vmatpush3.bf16.msra.mxu0 %v5884_v30  ;;  %v1023_v20 = vsel %vm1015_vm9, %v8885_v22, 0.0  ;;  %v1490_v30 = vld [vmem:[#allocation4 + $0x618] sm:$0xff]  ;;  %v1483_v13 = vld [vmem:[#allocation4 + $0x5e0] sm:$0xff]  ;;  %vm1035_vm8 = vcmp.eq.f32.partialorder %v8345_v31, 1.0  ;;  %vm1072_vm13 = vcmp.eq.f32.partialorder %v8024_v47, 2.0  ;;  %vm1019_vm10 = vcmp.eq.f32.partialorder %v8198_v44, 1.0 }
 0x186   :  { %5887 = vmatprep.subr.bf16.mxu0 %v5886_v28  ;;  %v1047_v3 = vadd.f32 %v1039_v19, %v1023_v20  ;;  %v1507_v28 = vld [vmem:[#allocation4 + $0x6a0] sm:$0xff]  ;;  %v5928_v21 = vpack.c.bf16 %v1490_v30, %v1489_v38  ;;  %v5914_v5 = vpack.c.bf16 %v1484_v34, %v1483_v13  ;;  %v1486_v25 = vld [vmem:[#allocation4 + $0x5f8] sm:$0xff]  ;;  %v1493_v20 = vld [vmem:[#allocation4 + $0x630] sm:$0xff]  ;;  %vm1056_vm4 = vcmp.eq.f32.partialorder %v7988_v18, 2.0 }
 0x187   :  { %5897 = vmatpush3.bf16.msra.mxu1 %v5896_v40  ;;  %v1044_v40 = vsel %vm1036_vm6, %v8321_v29, 0.0  ;;  %v1491_v4 = vld [vmem:[#allocation4 + $0x620] sm:$0xff]  ;;  %v1469_v38 = vld [vmem:[#allocation4 + $0x570] sm:$0xff]  ;;  %v1470_v30 = vld [vmem:[#allocation4 + $0x578] sm:$0xff]  ;;  %vm1037_vm7 = vcmp.eq.f32.partialorder %v8431_v46, 1.0  ;;  %vm1074_vm12 = vcmp.eq.f32.partialorder %v8108_v1, 2.0 }
 0x188   :  { %5899 = vmatprep.subr.bf16.mxu1 %v5898_v12  ;;  %v1482_v12 = vld [vmem:[#allocation4 + $0x5d8] sm:$0xff]  ;;  %v1052_v11 = vadd.f32 %v1044_v40, %v1028_v23  ;;  %v1467_v7 = vld [vmem:[#allocation4 + $0x560] sm:$0xff]  ;;  %v5920_v13 = vpack.c.bf16 %v1470_v30, %v1469_v38  ;;  %vm1021_vm1 = vcmp.eq.f32.partialorder %v8398_v0, 1.0  ;;  %vm1058_vm0 = vcmp.eq.f32.partialorder %v8077_v6, 2.0 }
 0x189   :  { %5889 = vmatpush3.bf16.msra.mxu0 %v5888_v60  ;;  %v5910_v53 = vpack.c.bf16 %v1482_v12, %v1481_v55  ;;  %v5930_v60 = vpack.c.bf16 %v1508_v43, %v1507_v28  ;;  %v5934_v55 = vpack.c.bf16 %v1510_v52, %v1509_v51  ;;  %v1511_v40 = vld [vmem:[#allocation4 + $0x6c0] sm:$0xff]  ;;  %v1512_v12 = vld [vmem:[#allocation4 + $0x6c8] sm:$0xff]  ;;  %v1041_v51 = vsel %vm1033_vm5, %v7942_v8, 0.0  ;;  %v1538_v52 = vld [vmem:[#allocation4 + $0x798] sm:$0xff] }
 0x18a   :  { %5923 = vmatprep.subr.bf16.mxu0 %v5922_v36  ;;  %v1492_v36 = vld [vmem:[#allocation4 + $0x628] sm:$0xff]  ;;  %v1535_v23 = vld [vmem:[#allocation4 + $0x780] sm:$0xff]  ;;  %vm1071_vm2 = vcmp.eq.f32.partialorder %v8048_v14, 2.0  ;;  %vm1076_vm6 = vcmp.eq.f32.partialorder %v8351_v10, 2.0  ;;  %vm1055_vm9 = vcmp.eq.f32.partialorder %v8884_v2, 2.0  ;;  %vm1060_vm11 = vcmp.eq.f32.partialorder %v8318_v42, 2.0 }
 0x18b   :  { %5901 = vmatpush3.bf16.msra.mxu1 %v5900_v16  ;;  %v1465_v16 = vld [vmem:[#allocation4 + $0x550] sm:$0xff]  ;;  %v5932_v56 = vpack.c.bf16 %v1492_v36, %v1491_v4  ;;  %v1536_v43 = vld [vmem:[#allocation4 + $0x788] sm:$0xff]  ;;  %v1519_v34 = vld [vmem:[#allocation4 + $0x700] sm:$0xff]  ;;  %vm1073_vm5 = vcmp.eq.f32.partialorder %v8160_v35, 2.0 }
 0x18c   :  { %5903 = vmatprep.subr.bf16.mxu1 %v5902_v61  ;;  %2664 = vmatmul.mubr.f32.vlgmr.msra.gmra.mrb[4].mxu0 %v1047_v3  ;;  %v1466_v61 = vld [vmem:[#allocation4 + $0x558] sm:$0xff]  ;;  %v1537_v4 = vld [vmem:[#allocation4 + $0x790] sm:$0xff] }
 0x18d   :  { %5925 = vmatpush3.bf16.msra.mxu0 %v5924_v37  ;;  %2803 = vmatprep.mubr.f32.mxu0 %v1052_v11  ;;  %v5912_v19 = vpack.c.bf16 %v1466_v61, %v1465_v16  ;;  %v1494_v37 = vld [vmem:[#allocation4 + $0x638] sm:$0xff]  ;;  %v1495_v11 = vld [vmem:[#allocation4 + $0x640] sm:$0xff]  ;;  %v1513_v16 = vld [vmem:[#allocation4 + $0x6d0] sm:$0xff] }
 0x18e   :  { %5927 = vmatprep.subr.bf16.mxu0 %v5926_v63  ;;  %v5936_v28 = vpack.c.bf16 %v1494_v37, %v1493_v20  ;;  %v1514_v61 = vld [vmem:[#allocation4 + $0x6d8] sm:$0xff]  ;;  %v1030_v37 = vsel %vm1022_vm14, %v8435_v39, 0.0  ;;  %vm1062_vm14 = vcmp.eq.f32.partialorder %v8428_v32, 2.0 }
 0x18f   :  { %5905 = vmatpush3.bf16.msra.mxu1 %v5904_v45  ;;  %v1468_v45 = vld [vmem:[#allocation4 + $0x568] sm:$0xff] }
 0x190   :  { %5907 = vmatprep.subr.bf16.mxu1 %v5906_v59  ;;  %v1485_v59 = vld [vmem:[#allocation4 + $0x5f0] sm:$0xff]  ;;  %v5916_v3 = vpack.c.bf16 %v1468_v45, %v1467_v7  ;;  %v1498_v7 = vld [vmem:[#allocation4 + $0x658] sm:$0xff]  ;;  %v1046_v45 = vsel %vm1038_vm3, %v8443_v54, 0.0  ;;  %vm1078_vm3 = vcmp.eq.f32.partialorder %v8445_v62, 2.0 }
 0x191   :  { %5929 = vmatpush3.bf16.msra.mxu0 %v5928_v21  ;;  %v5918_v63 = vpack.c.bf16 %v1486_v25, %v1485_v59  ;;  %v5954_v21 = vpack.c.bf16 %v1536_v43, %v1535_v23  ;;  %v1515_v59 = vld [vmem:[#allocation4 + $0x6e0] sm:$0xff]  ;;  %v1025_v25 = vsel %vm1017_vm15, %v7950_v58, 0.0  ;;  %v1054_v30 = vadd.f32 %v1046_v45, %v1030_v37  ;;  %v1540_v23 = vld [vmem:[#allocation4 + $0x7a8] sm:$0xff] }
 0x192   :  { %5931 = vmatprep.subr.bf16.mxu0 %v5930_v60  ;;  %v1520_v60 = vld [vmem:[#allocation4 + $0x708] sm:$0xff]  ;;  %v1049_v20 = vadd.f32 %v1041_v51, %v1025_v25  ;;  %v1499_v43 = vld [vmem:[#allocation4 + $0x660] sm:$0xff]  ;;  %v1501_v51 = vld [vmem:[#allocation4 + $0x670] sm:$0xff]  ;;  %vm1057_vm15 = vcmp.eq.f32.partialorder %v8098_v48, 2.0 }
 0x193   :  { %5909 = vmatpush3.bf16.msra.mxu1 %v5908_v50  ;;  %v5938_v50 = vpack.c.bf16 %v1512_v12, %v1511_v40  ;;  %v5958_v40 = vpack.c.bf16 %v1538_v52, %v1537_v4  ;;  %v1521_v12 = vld [vmem:[#allocation4 + $0x710] sm:$0xff]  ;;  %v1542_v4 = vld [vmem:[#allocation4 + $0x7b8] sm:$0xff]  ;;  %v1543_v25 = vld [vmem:[#allocation4 + $0x7c0] sm:$0xff] }
 0x194   :  { %5911 = vmatprep.subr.bf16.mxu1 %v5910_v53  ;;  %v1496_v53 = vld [vmem:[#allocation4 + $0x648] sm:$0xff]  ;;  %v1502_v52 = vld [vmem:[#allocation4 + $0x678] sm:$0xff] }
 0x195   :  { %5933 = vmatpush3.bf16.msra.mxu0 %v5932_v56  ;;  %v5940_v36 = vpack.c.bf16 %v1496_v53, %v1495_v11  ;;  %v1516_v56 = vld [vmem:[#allocation4 + $0x6e8] sm:$0xff]  ;;  %v1517_v11 = vld [vmem:[#allocation4 + $0x6f0] sm:$0xff]  ;;  %v1518_v53 = vld [vmem:[#allocation4 + $0x6f8] sm:$0xff] }
 0x196   :  { %5935 = vmatprep.subr.bf16.mxu0 %v5934_v55  ;;  %v5956_v55 = vpack.c.bf16 %v1520_v60, %v1519_v34  ;;  %v1541_v34 = vld [vmem:[#allocation4 + $0x7b0] sm:$0xff] }
 0x197   :  { %5913 = vmatpush3.bf16.msra.mxu1 %v5912_v19  ;;  %v5942_v19 = vpack.c.bf16 %v1514_v61, %v1513_v16  ;;  %v5966_v45 = vpack.c.bf16 %v1542_v4, %v1541_v34  ;;  %v1553_v34 = vld [vmem:[#allocation4 + $0x810] sm:$0xff]  ;;  %v1064_v4 = vsel %vm1056_vm4, %v7900_v49, 0.0  ;;  %vm1096_vm4 = vcmp.eq.f32.partialorder %v7988_v18, 3.0 }
 0x198   :  { %5915 = vmatprep.subr.bf16.mxu1 %v5914_v5  ;;  %v1497_v5 = vld [vmem:[#allocation4 + $0x650] sm:$0xff] }
 0x199   :  { %5937 = vmatpush3.bf16.msra.mxu0 %v5936_v28  ;;  %v5944_v38 = vpack.c.bf16 %v1498_v7, %v1497_v5  ;;  %v5946_v28 = vpack.c.bf16 %v1516_v56, %v1515_v59  ;;  %v1568_v5 = vld [vmem:[#allocation4 + $0x888] sm:$0xff]  ;;  %v1525_v59 = vld [vmem:[#allocation4 + $0x730] sm:$0xff]  ;;  %v1526_v56 = vld [vmem:[#allocation4 + $0x738] sm:$0xff] }
 0x19a   :  { %5939 = vmatprep.subr.bf16.mxu0 %v5938_v50  ;;  %v1500_v50 = vld [vmem:[#allocation4 + $0x668] sm:$0xff] }
 0x19b   :  { %5917 = vmatpush3.bf16.msra.mxu1 %v5916_v3  ;;  %v1522_v3 = vld [vmem:[#allocation4 + $0x718] sm:$0xff]  ;;  %v5948_v60 = vpack.c.bf16 %v1500_v50, %v1499_v43  ;;  %v1528_v43 = vld [vmem:[#allocation4 + $0x748] sm:$0xff]  ;;  %v1545_v50 = vld [vmem:[#allocation4 + $0x7d0] sm:$0xff] }
 0x19c   :  { %5919 = vmatprep.subr.bf16.mxu1 %v5918_v63  ;;  %v1539_v63 = vld [vmem:[#allocation4 + $0x7a0] sm:$0xff]  ;;  %v5960_v16 = vpack.c.bf16 %v1522_v3, %v1521_v12  ;;  %v1552_v12 = vld [vmem:[#allocation4 + $0x808] sm:$0xff]  ;;  %v1043_v3 = vsel %vm1035_vm8, %v8202_v15, 0.0  ;;  %vm1075_vm8 = vcmp.eq.f32.partialorder %v8345_v31, 2.0 }
 0x19d   :  { %5941 = vmatpush3.bf16.msra.mxu0 %v5940_v36  ;;  %v5962_v61 = vpack.c.bf16 %v1540_v23, %v1539_v63  ;;  %v5950_v36 = vpack.c.bf16 %v1518_v53, %v1517_v11  ;;  %v1569_v63 = vld [vmem:[#allocation4 + $0x890] sm:$0xff]  ;;  %v1027_v11 = vsel %vm1019_vm10, %v8213_v24, 0.0  ;;  %vm1059_vm10 = vcmp.eq.f32.partialorder %v8198_v44, 2.0 }
 0x19e   :  { %5943 = vmatprep.subr.bf16.mxu0 %v5942_v19  ;;  %v1567_v19 = vld [vmem:[#allocation4 + $0x880] sm:$0xff] }
 0x19f   :  { %5921 = vmatpush3.bf16.msra.mxu1 %v5920_v13  ;;  %v1523_v13 = vld [vmem:[#allocation4 + $0x720] sm:$0xff]  ;;  %v5986_v37 = vpack.c.bf16 %v1568_v5, %v1567_v19 }
 0x1a0   :  { %5955 = vmatprep.subr.bf16.mxu1 %v5954_v21  ;;  %v1524_v21 = vld [vmem:[#allocation4 + $0x728] sm:$0xff] }
 0x1a1   :  { %5945 = vmatpush3.bf16.msra.mxu0 %v5944_v38  ;;  %v5964_v7 = vpack.c.bf16 %v1524_v21, %v1523_v13  ;;  %v1570_v38 = vld [vmem:[#allocation4 + $0x898] sm:$0xff]  ;;  %v1051_v13 = vadd.f32 %v1043_v3, %v1027_v11  ;;  %v1557_v11 = vld [vmem:[#allocation4 + $0x830] sm:$0xff] }
 0x1a2   :  { %2734 = vmatmul.mubr.f32.vlgmr.msra.gmra.mrb[4].mxu1 %v1049_v20  ;;  %5947 = vmatprep.subr.bf16.mxu0 %v5946_v28  ;;  %v1544_v20 = vld [vmem:[#allocation4 + $0x7c8] sm:$0xff]  ;;  %v1527_v28 = vld [vmem:[#allocation4 + $0x740] sm:$0xff]  ;;  %v5990_v21 = vpack.c.bf16 %v1570_v38, %v1569_v63 }
 0x1a3   :  { %5957 = vmatpush3.bf16.msra.mxu1 %v5956_v55  ;;  %2873 = vmatprep.mubr.f32.mxu1 %v1054_v30  ;;  %v5952_v55 = vpack.c.bf16 %v1502_v52, %v1501_v51  ;;  %v5968_v30 = vpack.c.bf16 %v1526_v56, %v1525_v59  ;;  %v5970_v23 = vpack.c.bf16 %v1544_v20, %v1543_v25  ;;  %v1572_v51 = vld [vmem:[#allocation4 + $0x8a8] sm:$0xff]  ;;  %v1547_v59 = vld [vmem:[#allocation4 + $0x7e0] sm:$0xff] }
 0x1a4   :  { %5959 = vmatprep.subr.bf16.mxu1 %v5958_v40  ;;  %v1551_v40 = vld [vmem:[#allocation4 + $0x800] sm:$0xff]  ;;  %v5972_v52 = vpack.c.bf16 %v1528_v43, %v1527_v28  ;;  %v1548_v25 = vld [vmem:[#allocation4 + $0x7e8] sm:$0xff]  ;;  %v1550_v43 = vld [vmem:[#allocation4 + $0x7f8] sm:$0xff] }
 0x1a5   :  { %5949 = vmatpush3.bf16.msra.mxu0 %v5948_v60  ;;  %v5988_v53 = vpack.c.bf16 %v1552_v12, %v1551_v40  ;;  %v1554_v60 = vld [vmem:[#allocation4 + $0x818] sm:$0xff]  ;;  %v1555_v20 = vld [vmem:[#allocation4 + $0x820] sm:$0xff]  ;;  %v1573_v40 = vld [vmem:[#allocation4 + $0x8b0] sm:$0xff]  ;;  %v5978_v63 = vpack.c.bf16 %v1548_v25, %v1547_v59 }
 0x1a6   :  { %5951 = vmatprep.subr.bf16.mxu0 %v5950_v36  ;;  %v1571_v36 = vld [vmem:[#allocation4 + $0x8a0] sm:$0xff]  ;;  %v5992_v56 = vpack.c.bf16 %v1554_v60, %v1553_v34  ;;  %v1574_v12 = vld [vmem:[#allocation4 + $0x8b8] sm:$0xff]  ;;  %v1533_v34 = vld [vmem:[#allocation4 + $0x770] sm:$0xff] }
 0x1a7   :  { %5961 = vmatpush3.bf16.msra.mxu1 %v5960_v16  ;;  %v1080_v16 = vsel %vm1072_vm13, %v7889_v33, 0.0  ;;  %v1531_v38 = vld [vmem:[#allocation4 + $0x760] sm:$0xff]  ;;  %v1534_v60 = vld [vmem:[#allocation4 + $0x778] sm:$0xff]  ;;  %vm1112_vm13 = vcmp.eq.f32.partialorder %v8024_v47, 3.0 }
 0x1a8   :  { %5963 = vmatprep.subr.bf16.mxu1 %v5962_v61  ;;  %v1546_v61 = vld [vmem:[#allocation4 + $0x7d8] sm:$0xff]  ;;  %v1088_v19 = vadd.f32 %v1080_v16, %v1064_v4  ;;  %v1575_v16 = vld [vmem:[#allocation4 + $0x8c0] sm:$0xff]  ;;  %v5984_v59 = vpack.c.bf16 %v1534_v60, %v1533_v34 }
 0x1a9   :  { %5953 = vmatpush3.bf16.msra.mxu0 %v5952_v55  ;;  %v5974_v5 = vpack.c.bf16 %v1546_v61, %v1545_v50  ;;  %v5994_v55 = vpack.c.bf16 %v1572_v51, %v1571_v36  ;;  %v5998_v50 = vpack.c.bf16 %v1574_v12, %v1573_v40  ;;  %v1576_v61 = vld [vmem:[#allocation4 + $0x8c8] sm:$0xff]  ;;  %v1599_v4 = vld [vmem:[#allocation4 + $0x980] sm:$0xff]  ;;  %v1045_v40 = vsel %vm1037_vm7, %v8440_v57, 0.0  ;;  %v1602_v12 = vld [vmem:[#allocation4 + $0x998] sm:$0xff] }
 0x1aa   :  { %5987 = vmatprep.subr.bf16.mxu0 %v5986_v37  ;;  %v1556_v37 = vld [vmem:[#allocation4 + $0x828] sm:$0xff]  ;;  %v1583_v25 = vld [vmem:[#allocation4 + $0x900] sm:$0xff]  ;;  %vm1077_vm7 = vcmp.eq.f32.partialorder %v8431_v46, 2.0 }
 0x1ab   :  { %5965 = vmatpush3.bf16.msra.mxu1 %v5964_v7  ;;  %v1529_v7 = vld [vmem:[#allocation4 + $0x750] sm:$0xff]  ;;  %v5996_v28 = vpack.c.bf16 %v1556_v37, %v1555_v20  ;;  %v1600_v51 = vld [vmem:[#allocation4 + $0x988] sm:$0xff] }
 0x1ac   :  { %5967 = vmatprep.subr.bf16.mxu1 %v5966_v45  ;;  %2804 = vmatmul.mubr.f32.vlgmr.msra.gmra.mrb[6].mxu0 %v1051_v13  ;;  %v1530_v45 = vld [vmem:[#allocation4 + $0x758] sm:$0xff]  ;;  %v1601_v20 = vld [vmem:[#allocation4 + $0x990] sm:$0xff] }
 0x1ad   :  { %5989 = vmatpush3.bf16.msra.mxu0 %v5988_v53  ;;  %2943 = vmatprep.mubr.f32.mxu0 %v1088_v19  ;;  %v5976_v3 = vpack.c.bf16 %v1530_v45, %v1529_v7  ;;  %v1558_v53 = vld [vmem:[#allocation4 + $0x838] sm:$0xff]  ;;  %v1559_v19 = vld [vmem:[#allocation4 + $0x840] sm:$0xff]  ;;  %v1577_v7 = vld [vmem:[#allocation4 + $0x8d0] sm:$0xff] }
 0x1ae   :  { %5991 = vmatprep.subr.bf16.mxu0 %v5990_v21  ;;  %v6000_v36 = vpack.c.bf16 %v1558_v53, %v1557_v11  ;;  %v1578_v45 = vld [vmem:[#allocation4 + $0x8d8] sm:$0xff]  ;;  %v1066_v53 = vsel %vm1058_vm0, %v8014_v17, 0.0  ;;  %vm1098_vm0 = vcmp.eq.f32.partialorder %v8077_v6, 3.0 }
 0x1af   :  { %5969 = vmatpush3.bf16.msra.mxu1 %v5968_v30  ;;  %v1532_v30 = vld [vmem:[#allocation4 + $0x768] sm:$0xff] }
 0x1b0   :  { %5971 = vmatprep.subr.bf16.mxu1 %v5970_v23  ;;  %v1549_v23 = vld [vmem:[#allocation4 + $0x7f0] sm:$0xff]  ;;  %v5980_v13 = vpack.c.bf16 %v1532_v30, %v1531_v38  ;;  %v1562_v38 = vld [vmem:[#allocation4 + $0x858] sm:$0xff]  ;;  %v1082_v30 = vsel %vm1074_vm12, %v8087_v26, 0.0  ;;  %vm1114_vm12 = vcmp.eq.f32.partialorder %v8108_v1, 3.0 }
 0x1b1   :  { %5993 = vmatpush3.bf16.msra.mxu0 %v5992_v56  ;;  %v5982_v21 = vpack.c.bf16 %v1550_v43, %v1549_v23  ;;  %v6018_v56 = vpack.c.bf16 %v1600_v51, %v1599_v4  ;;  %v1579_v23 = vld [vmem:[#allocation4 + $0x8e0] sm:$0xff]  ;;  %v1029_v43 = vsel %vm1021_vm1, %v8438_v9, 0.0  ;;  %v1090_v60 = vadd.f32 %v1082_v30, %v1066_v53  ;;  %v1604_v4 = vld [vmem:[#allocation4 + $0x9a8] sm:$0xff] }
 0x1b2   :  { %5995 = vmatprep.subr.bf16.mxu0 %v5994_v55  ;;  %v1584_v55 = vld [vmem:[#allocation4 + $0x908] sm:$0xff]  ;;  %v1053_v11 = vadd.f32 %v1045_v40, %v1029_v43  ;;  %v1563_v51 = vld [vmem:[#allocation4 + $0x860] sm:$0xff]  ;;  %v1565_v40 = vld [vmem:[#allocation4 + $0x870] sm:$0xff]  ;;  %vm1061_vm1 = vcmp.eq.f32.partialorder %v8398_v0, 2.0 }
 0x1b3   :  { %5973 = vmatpush3.bf16.msra.mxu1 %v5972_v52  ;;  %v6002_v52 = vpack.c.bf16 %v1576_v61, %v1575_v16  ;;  %v6022_v16 = vpack.c.bf16 %v1602_v12, %v1601_v20  ;;  %v1585_v61 = vld [vmem:[#allocation4 + $0x910] sm:$0xff]  ;;  %v1606_v20 = vld [vmem:[#allocation4 + $0x9b8] sm:$0xff]  ;;  %v1607_v43 = vld [vmem:[#allocation4 + $0x9c0] sm:$0xff] }
 0x1b4   :  { %5975 = vmatprep.subr.bf16.mxu1 %v5974_v5  ;;  %v1560_v5 = vld [vmem:[#allocation4 + $0x848] sm:$0xff]  ;;  %v1566_v12 = vld [vmem:[#allocation4 + $0x878] sm:$0xff] }
 0x1b5   :  { %5997 = vmatpush3.bf16.msra.mxu0 %v5996_v28  ;;  %v6004_v37 = vpack.c.bf16 %v1560_v5, %v1559_v19  ;;  %v1580_v28 = vld [vmem:[#allocation4 + $0x8e8] sm:$0xff]  ;;  %v1581_v19 = vld [vmem:[#allocation4 + $0x8f0] sm:$0xff]  ;;  %v1582_v5 = vld [vmem:[#allocation4 + $0x8f8] sm:$0xff] }
 0x1b6   :  { %5999 = vmatprep.subr.bf16.mxu0 %v5998_v50  ;;  %v6020_v50 = vpack.c.bf16 %v1584_v55, %v1583_v25  ;;  %v1605_v25 = vld [vmem:[#allocation4 + $0x9b0] sm:$0xff] }
 0x1b7   :  { %5977 = vmatpush3.bf16.msra.mxu1 %v5976_v3  ;;  %v6006_v3 = vpack.c.bf16 %v1578_v45, %v1577_v7  ;;  %v6030_v30 = vpack.c.bf16 %v1606_v20, %v1605_v25  ;;  %v1617_v25 = vld [vmem:[#allocation4 + $0xa10] sm:$0xff]  ;;  %v1068_v20 = vsel %vm1060_vm11, %v8335_v41, 0.0  ;;  %vm1100_vm11 = vcmp.eq.f32.partialorder %v8318_v42, 3.0 }
 0x1b8   :  { %5979 = vmatprep.subr.bf16.mxu1 %v5978_v63  ;;  %v1561_v63 = vld [vmem:[#allocation4 + $0x850] sm:$0xff] }
 0x1b9   :  { %6001 = vmatpush3.bf16.msra.mxu0 %v6000_v36  ;;  %v6008_v34 = vpack.c.bf16 %v1562_v38, %v1561_v63  ;;  %v6010_v36 = vpack.c.bf16 %v1580_v28, %v1579_v23  ;;  %v1632_v63 = vld [vmem:[#allocation4 + $0xa88] sm:$0xff]  ;;  %v1589_v23 = vld [vmem:[#allocation4 + $0x930] sm:$0xff]  ;;  %v1590_v28 = vld [vmem:[#allocation4 + $0x938] sm:$0xff] }
 0x1ba   :  { %6003 = vmatprep.subr.bf16.mxu0 %v6002_v52  ;;  %v1564_v52 = vld [vmem:[#allocation4 + $0x868] sm:$0xff] }
 0x1bb   :  { %5981 = vmatpush3.bf16.msra.mxu1 %v5980_v13  ;;  %v1586_v13 = vld [vmem:[#allocation4 + $0x918] sm:$0xff]  ;;  %v6012_v55 = vpack.c.bf16 %v1564_v52, %v1563_v51  ;;  %v1592_v51 = vld [vmem:[#allocation4 + $0x948] sm:$0xff]  ;;  %v1609_v52 = vld [vmem:[#allocation4 + $0x9d0] sm:$0xff] }
 0x1bc   :  { %5983 = vmatprep.subr.bf16.mxu1 %v5982_v21  ;;  %v1603_v21 = vld [vmem:[#allocation4 + $0x9a0] sm:$0xff]  ;;  %v6024_v7 = vpack.c.bf16 %v1586_v13, %v1585_v61  ;;  %v1616_v61 = vld [vmem:[#allocation4 + $0xa08] sm:$0xff]  ;;  %v1079_v13 = vsel %vm1071_vm2, %v7892_v27, 0.0  ;;  %vm1111_vm2 = vcmp.eq.f32.partialorder %v8048_v14, 3.0 }
 0x1bd   :  { %6005 = vmatpush3.bf16.msra.mxu0 %v6004_v37  ;;  %v6026_v45 = vpack.c.bf16 %v1604_v4, %v1603_v21  ;;  %v6014_v37 = vpack.c.bf16 %v1582_v5, %v1581_v19  ;;  %v1633_v21 = vld [vmem:[#allocation4 + $0xa90] sm:$0xff]  ;;  %v1063_v19 = vsel %vm1055_vm9, %v8885_v22, 0.0  ;;  %vm1095_vm9 = vcmp.eq.f32.partialorder %v8884_v2, 3.0 }
 0x1be   :  { %6007 = vmatprep.subr.bf16.mxu0 %v6006_v3  ;;  %v1631_v3 = vld [vmem:[#allocation4 + $0xa80] sm:$0xff] }
 0x1bf   :  { %5985 = vmatpush3.bf16.msra.mxu1 %v5984_v59  ;;  %v1587_v59 = vld [vmem:[#allocation4 + $0x920] sm:$0xff]  ;;  %v6050_v53 = vpack.c.bf16 %v1632_v63, %v1631_v3 }
 0x1c0   :  { %6019 = vmatprep.subr.bf16.mxu1 %v6018_v56  ;;  %v1588_v56 = vld [vmem:[#allocation4 + $0x928] sm:$0xff] }
 0x1c1   :  { %6009 = vmatpush3.bf16.msra.mxu0 %v6008_v34  ;;  %v6028_v38 = vpack.c.bf16 %v1588_v56, %v1587_v59  ;;  %v1634_v34 = vld [vmem:[#allocation4 + $0xa98] sm:$0xff]  ;;  %v1087_v59 = vadd.f32 %v1079_v13, %v1063_v19  ;;  %v1621_v19 = vld [vmem:[#allocation4 + $0xa30] sm:$0xff] }
 0x1c2   :  { %2874 = vmatmul.mubr.f32.vlgmr.msra.gmra.mrb[6].mxu1 %v1053_v11  ;;  %6011 = vmatprep.subr.bf16.mxu0 %v6010_v36  ;;  %v1608_v11 = vld [vmem:[#allocation4 + $0x9c8] sm:$0xff]  ;;  %v1591_v36 = vld [vmem:[#allocation4 + $0x940] sm:$0xff]  ;;  %v6054_v56 = vpack.c.bf16 %v1634_v34, %v1633_v21 }
 0x1c3   :  { %6021 = vmatpush3.bf16.msra.mxu1 %v6020_v50  ;;  %3013 = vmatprep.mubr.f32.mxu1 %v1090_v60  ;;  %v6016_v50 = vpack.c.bf16 %v1566_v12, %v1565_v40  ;;  %v6032_v60 = vpack.c.bf16 %v1590_v28, %v1589_v23  ;;  %v6034_v4 = vpack.c.bf16 %v1608_v11, %v1607_v43  ;;  %v1636_v40 = vld [vmem:[#allocation4 + $0xaa8] sm:$0xff]  ;;  %v1611_v23 = vld [vmem:[#allocation4 + $0x9e0] sm:$0xff] }
 0x1c4   :  { %6023 = vmatprep.subr.bf16.mxu1 %v6022_v16  ;;  %v1615_v16 = vld [vmem:[#allocation4 + $0xa00] sm:$0xff]  ;;  %v6036_v12 = vpack.c.bf16 %v1592_v51, %v1591_v36  ;;  %v1612_v43 = vld [vmem:[#allocation4 + $0x9e8] sm:$0xff]  ;;  %v1614_v51 = vld [vmem:[#allocation4 + $0x9f8] sm:$0xff] }
 0x1c5   :  { %6013 = vmatpush3.bf16.msra.mxu0 %v6012_v55  ;;  %v6052_v5 = vpack.c.bf16 %v1616_v61, %v1615_v16  ;;  %v1618_v55 = vld [vmem:[#allocation4 + $0xa18] sm:$0xff]  ;;  %v1619_v11 = vld [vmem:[#allocation4 + $0xa20] sm:$0xff]  ;;  %v1637_v16 = vld [vmem:[#allocation4 + $0xab0] sm:$0xff]  ;;  %v6042_v21 = vpack.c.bf16 %v1612_v43, %v1611_v23 }
 0x1c6   :  { %6015 = vmatprep.subr.bf16.mxu0 %v6014_v37  ;;  %v1635_v37 = vld [vmem:[#allocation4 + $0xaa0] sm:$0xff]  ;;  %v6056_v28 = vpack.c.bf16 %v1618_v55, %v1617_v25  ;;  %v1638_v61 = vld [vmem:[#allocation4 + $0xab8] sm:$0xff]  ;;  %v1597_v25 = vld [vmem:[#allocation4 + $0x970] sm:$0xff] }
 0x1c7   :  { %6025 = vmatpush3.bf16.msra.mxu1 %v6024_v7  ;;  %v1084_v7 = vsel %vm1076_vm6, %v8321_v29, 0.0  ;;  %v1595_v34 = vld [vmem:[#allocation4 + $0x960] sm:$0xff]  ;;  %v1598_v55 = vld [vmem:[#allocation4 + $0x978] sm:$0xff]  ;;  %vm1116_vm6 = vcmp.eq.f32.partialorder %v8351_v10, 3.0 }
 0x1c8   :  { %6027 = vmatprep.subr.bf16.mxu1 %v6026_v45  ;;  %v1610_v45 = vld [vmem:[#allocation4 + $0x9d8] sm:$0xff]  ;;  %v1092_v3 = vadd.f32 %v1084_v7, %v1068_v20  ;;  %v1639_v7 = vld [vmem:[#allocation4 + $0xac0] sm:$0xff]  ;;  %v6048_v23 = vpack.c.bf16 %v1598_v55, %v1597_v25 }
 0x1c9   :  { %6017 = vmatpush3.bf16.msra.mxu0 %v6016_v50  ;;  %v6038_v63 = vpack.c.bf16 %v1610_v45, %v1609_v52  ;;  %v6058_v50 = vpack.c.bf16 %v1636_v40, %v1635_v37  ;;  %v6062_v52 = vpack.c.bf16 %v1638_v61, %v1637_v16  ;;  %v1640_v45 = vld [vmem:[#allocation4 + $0xac8] sm:$0xff]  ;;  %v1663_v20 = vld [vmem:[#allocation4 + $0xb80] sm:$0xff]  ;;  %v1081_v16 = vsel %vm1073_vm5, %v7942_v8, 0.0  ;;  %v1666_v61 = vld [vmem:[#allocation4 + $0xb98] sm:$0xff] }
 0x1ca   :  { %6051 = vmatprep.subr.bf16.mxu0 %v6050_v53  ;;  %v1620_v53 = vld [vmem:[#allocation4 + $0xa28] sm:$0xff]  ;;  %v1647_v43 = vld [vmem:[#allocation4 + $0xb00] sm:$0xff]  ;;  %vm1113_vm5 = vcmp.eq.f32.partialorder %v8160_v35, 3.0 }
 0x1cb   :  { %6029 = vmatpush3.bf16.msra.mxu1 %v6028_v38  ;;  %v1593_v38 = vld [vmem:[#allocation4 + $0x950] sm:$0xff]  ;;  %v6060_v36 = vpack.c.bf16 %v1620_v53, %v1619_v11  ;;  %v1664_v40 = vld [vmem:[#allocation4 + $0xb88] sm:$0xff] }
 0x1cc   :  { %6031 = vmatprep.subr.bf16.mxu1 %v6030_v30  ;;  %2944 = vmatmul.mubr.f32.vlgmr.msra.gmra.mrb[8].mxu0 %v1087_v59  ;;  %v1594_v30 = vld [vmem:[#allocation4 + $0x958] sm:$0xff]  ;;  %v1665_v11 = vld [vmem:[#allocation4 + $0xb90] sm:$0xff] }
 0x1cd   :  { %6053 = vmatpush3.bf16.msra.mxu0 %v6052_v5  ;;  %3083 = vmatprep.mubr.f32.mxu0 %v1092_v3  ;;  %v6040_v13 = vpack.c.bf16 %v1594_v30, %v1593_v38  ;;  %v1622_v5 = vld [vmem:[#allocation4 + $0xa38] sm:$0xff]  ;;  %v1623_v3 = vld [vmem:[#allocation4 + $0xa40] sm:$0xff]  ;;  %v1641_v38 = vld [vmem:[#allocation4 + $0xad0] sm:$0xff] }
 0x1ce   :  { %6055 = vmatprep.subr.bf16.mxu0 %v6054_v56  ;;  %v6064_v37 = vpack.c.bf16 %v1622_v5, %v1621_v19  ;;  %v1642_v30 = vld [vmem:[#allocation4 + $0xad8] sm:$0xff]  ;;  %v1070_v5 = vsel %vm1062_vm14, %v8435_v39, 0.0  ;;  %vm1102_vm14 = vcmp.eq.f32.partialorder %v8428_v32, 3.0 }
 0x1cf   :  { %6033 = vmatpush3.bf16.msra.mxu1 %v6032_v60  ;;  %v1596_v60 = vld [vmem:[#allocation4 + $0x968] sm:$0xff] }
 0x1d0   :  { %6035 = vmatprep.subr.bf16.mxu1 %v6034_v4  ;;  %v1613_v4 = vld [vmem:[#allocation4 + $0x9f0] sm:$0xff]  ;;  %v6044_v59 = vpack.c.bf16 %v1596_v60, %v1595_v34  ;;  %v1626_v34 = vld [vmem:[#allocation4 + $0xa58] sm:$0xff]  ;;  %v1086_v60 = vsel %vm1078_vm3, %v8443_v54, 0.0  ;;  %vm1118_vm3 = vcmp.eq.f32.partialorder %v8445_v62, 3.0 }
 0x1d1   :  { %6057 = vmatpush3.bf16.msra.mxu0 %v6056_v28  ;;  %v6046_v56 = vpack.c.bf16 %v1614_v51, %v1613_v4  ;;  %v6082_v28 = vpack.c.bf16 %v1664_v40, %v1663_v20  ;;  %v1643_v4 = vld [vmem:[#allocation4 + $0xae0] sm:$0xff]  ;;  %v1065_v51 = vsel %vm1057_vm15, %v7950_v58, 0.0  ;;  %v1094_v55 = vadd.f32 %v1086_v60, %v1070_v5  ;;  %v1668_v20 = vld [vmem:[#allocation4 + $0xba8] sm:$0xff] }
 0x1d2   :  { %6059 = vmatprep.subr.bf16.mxu0 %v6058_v50  ;;  %v1648_v50 = vld [vmem:[#allocation4 + $0xb08] sm:$0xff]  ;;  %v1089_v19 = vadd.f32 %v1081_v16, %v1065_v51  ;;  %v1627_v40 = vld [vmem:[#allocation4 + $0xa60] sm:$0xff]  ;;  %v1629_v16 = vld [vmem:[#allocation4 + $0xa70] sm:$0xff]  ;;  %vm1097_vm15 = vcmp.eq.f32.partialorder %v8098_v48, 3.0 }
 0x1d3   :  { %6037 = vmatpush3.bf16.msra.mxu1 %v6036_v12  ;;  %v6066_v12 = vpack.c.bf16 %v1640_v45, %v1639_v7  ;;  %v6086_v7 = vpack.c.bf16 %v1666_v61, %v1665_v11  ;;  %v1649_v45 = vld [vmem:[#allocation4 + $0xb10] sm:$0xff]  ;;  %v1670_v11 = vld [vmem:[#allocation4 + $0xbb8] sm:$0xff]  ;;  %v1671_v51 = vld [vmem:[#allocation4 + $0xbc0] sm:$0xff] }
 0x1d4   :  { %6039 = vmatprep.subr.bf16.mxu1 %v6038_v63  ;;  %v1624_v63 = vld [vmem:[#allocation4 + $0xa48] sm:$0xff]  ;;  %v1630_v61 = vld [vmem:[#allocation4 + $0xa78] sm:$0xff] }
 0x1d5   :  { %6061 = vmatpush3.bf16.msra.mxu0 %v6060_v36  ;;  %v6068_v53 = vpack.c.bf16 %v1624_v63, %v1623_v3  ;;  %v1644_v36 = vld [vmem:[#allocation4 + $0xae8] sm:$0xff]  ;;  %v1645_v3 = vld [vmem:[#allocation4 + $0xaf0] sm:$0xff]  ;;  %v1646_v63 = vld [vmem:[#allocation4 + $0xaf8] sm:$0xff] }
 0x1d6   :  { %6063 = vmatprep.subr.bf16.mxu0 %v6062_v52  ;;  %v6084_v52 = vpack.c.bf16 %v1648_v50, %v1647_v43  ;;  %v1669_v43 = vld [vmem:[#allocation4 + $0xbb0] sm:$0xff] }
 0x1d7   :  { %6041 = vmatpush3.bf16.msra.mxu1 %v6040_v13  ;;  %v6070_v13 = vpack.c.bf16 %v1642_v30, %v1641_v38  ;;  %v6094_v60 = vpack.c.bf16 %v1670_v11, %v1669_v43  ;;  %v1681_v43 = vld [vmem:[#allocation4 + $0xc10] sm:$0xff]  ;;  %v1104_v11 = vsel %vm1096_vm4, %v7900_v49, 0.0  ;;  %vm1136_vm4 = vcmp.eq.f32.partialorder %v7988_v18, 4.0 }
 0x1d8   :  { %6043 = vmatprep.subr.bf16.mxu1 %v6042_v21  ;;  %v1625_v21 = vld [vmem:[#allocation4 + $0xa50] sm:$0xff] }
 0x1d9   :  { %6065 = vmatpush3.bf16.msra.mxu0 %v6064_v37  ;;  %v6072_v25 = vpack.c.bf16 %v1626_v34, %v1625_v21  ;;  %v6074_v37 = vpack.c.bf16 %v1644_v36, %v1643_v4  ;;  %v1696_v21 = vld [vmem:[#allocation4 + $0xc88] sm:$0xff]  ;;  %v1653_v4 = vld [vmem:[#allocation4 + $0xb30] sm:$0xff]  ;;  %v1654_v36 = vld [vmem:[#allocation4 + $0xb38] sm:$0xff] }
 0x1da   :  { %6067 = vmatprep.subr.bf16.mxu0 %v6066_v12  ;;  %v1628_v12 = vld [vmem:[#allocation4 + $0xa68] sm:$0xff] }
 0x1db   :  { %6045 = vmatpush3.bf16.msra.mxu1 %v6044_v59  ;;  %v1650_v59 = vld [vmem:[#allocation4 + $0xb18] sm:$0xff]  ;;  %v6076_v50 = vpack.c.bf16 %v1628_v12, %v1627_v40  ;;  %v1656_v40 = vld [vmem:[#allocation4 + $0xb48] sm:$0xff]  ;;  %v1673_v12 = vld [vmem:[#allocation4 + $0xbd0] sm:$0xff] }
 0x1dc   :  { %6047 = vmatprep.subr.bf16.mxu1 %v6046_v56  ;;  %v1667_v56 = vld [vmem:[#allocation4 + $0xba0] sm:$0xff]  ;;  %v6088_v38 = vpack.c.bf16 %v1650_v59, %v1649_v45  ;;  %v1680_v45 = vld [vmem:[#allocation4 + $0xc08] sm:$0xff]  ;;  %v1083_v59 = vsel %vm1075_vm8, %v8202_v15, 0.0  ;;  %vm1115_vm8 = vcmp.eq.f32.partialorder %v8345_v31, 3.0 }
 0x1dd   :  { %6069 = vmatpush3.bf16.msra.mxu0 %v6068_v53  ;;  %v6090_v30 = vpack.c.bf16 %v1668_v20, %v1667_v56  ;;  %v6078_v53 = vpack.c.bf16 %v1646_v63, %v1645_v3  ;;  %v1697_v56 = vld [vmem:[#allocation4 + $0xc90] sm:$0xff]  ;;  %v1067_v3 = vsel %vm1059_vm10, %v8213_v24, 0.0  ;;  %vm1099_vm10 = vcmp.eq.f32.partialorder %v8198_v44, 3.0 }
 0x1de   :  { %6071 = vmatprep.subr.bf16.mxu0 %v6070_v13  ;;  %v1695_v13 = vld [vmem:[#allocation4 + $0xc80] sm:$0xff] }
 0x1df   :  { %6049 = vmatpush3.bf16.msra.mxu1 %v6048_v23  ;;  %v1651_v23 = vld [vmem:[#allocation4 + $0xb20] sm:$0xff]  ;;  %v6114_v5 = vpack.c.bf16 %v1696_v21, %v1695_v13 }
 0x1e0   :  { %6083 = vmatprep.subr.bf16.mxu1 %v6082_v28  ;;  %v1652_v28 = vld [vmem:[#allocation4 + $0xb28] sm:$0xff] }
 0x1e1   :  { %6073 = vmatpush3.bf16.msra.mxu0 %v6072_v25  ;;  %v6092_v34 = vpack.c.bf16 %v1652_v28, %v1651_v23  ;;  %v1698_v25 = vld [vmem:[#allocation4 + $0xc98] sm:$0xff]  ;;  %v1091_v23 = vadd.f32 %v1083_v59, %v1067_v3  ;;  %v1685_v3 = vld [vmem:[#allocation4 + $0xc30] sm:$0xff] }
 0x1e2   :  { %3014 = vmatmul.mubr.f32.vlgmr.msra.gmra.mrb[8].mxu1 %v1089_v19  ;;  %6075 = vmatprep.subr.bf16.mxu0 %v6074_v37  ;;  %v1672_v19 = vld [vmem:[#allocation4 + $0xbc8] sm:$0xff]  ;;  %v1655_v37 = vld [vmem:[#allocation4 + $0xb40] sm:$0xff]  ;;  %v6118_v28 = vpack.c.bf16 %v1698_v25, %v1697_v56 }
 0x1e3   :  { %6085 = vmatpush3.bf16.msra.mxu1 %v6084_v52  ;;  %3153 = vmatprep.mubr.f32.mxu1 %v1094_v55  ;;  %v6080_v52 = vpack.c.bf16 %v1630_v61, %v1629_v16  ;;  %v6096_v55 = vpack.c.bf16 %v1654_v36, %v1653_v4  ;;  %v6098_v20 = vpack.c.bf16 %v1672_v19, %v1671_v51  ;;  %v1700_v16 = vld [vmem:[#allocation4 + $0xca8] sm:$0xff]  ;;  %v1675_v4 = vld [vmem:[#allocation4 + $0xbe0] sm:$0xff] }
 0x1e4   :  { %6087 = vmatprep.subr.bf16.mxu1 %v6086_v7  ;;  %v1679_v7 = vld [vmem:[#allocation4 + $0xc00] sm:$0xff]  ;;  %v6100_v61 = vpack.c.bf16 %v1656_v40, %v1655_v37  ;;  %v1676_v51 = vld [vmem:[#allocation4 + $0xbe8] sm:$0xff]  ;;  %v1678_v40 = vld [vmem:[#allocation4 + $0xbf8] sm:$0xff] }
 0x1e5   :  { %6077 = vmatpush3.bf16.msra.mxu0 %v6076_v50  ;;  %v6116_v63 = vpack.c.bf16 %v1680_v45, %v1679_v7  ;;  %v1682_v50 = vld [vmem:[#allocation4 + $0xc18] sm:$0xff]  ;;  %v1683_v19 = vld [vmem:[#allocation4 + $0xc20] sm:$0xff]  ;;  %v1701_v7 = vld [vmem:[#allocation4 + $0xcb0] sm:$0xff]  ;;  %v6106_v56 = vpack.c.bf16 %v1676_v51, %v1675_v4 }
 0x1e6   :  { %6079 = vmatprep.subr.bf16.mxu0 %v6078_v53  ;;  %v1699_v53 = vld [vmem:[#allocation4 + $0xca0] sm:$0xff]  ;;  %v6120_v36 = vpack.c.bf16 %v1682_v50, %v1681_v43  ;;  %v1702_v45 = vld [vmem:[#allocation4 + $0xcb8] sm:$0xff]  ;;  %v1661_v43 = vld [vmem:[#allocation4 + $0xb70] sm:$0xff] }
 0x1e7   :  { %6089 = vmatpush3.bf16.msra.mxu1 %v6088_v38  ;;  %v1120_v38 = vsel %vm1112_vm13, %v7889_v33, 0.0  ;;  %v1659_v25 = vld [vmem:[#allocation4 + $0xb60] sm:$0xff]  ;;  %v1662_v50 = vld [vmem:[#allocation4 + $0xb78] sm:$0xff]  ;;  %vm1152_vm13 = vcmp.eq.f32.partialorder %v8024_v47, 4.0 }
 0x1e8   :  { %6091 = vmatprep.subr.bf16.mxu1 %v6090_v30  ;;  %v1674_v30 = vld [vmem:[#allocation4 + $0xbd8] sm:$0xff]  ;;  %v1128_v13 = vadd.f32 %v1120_v38, %v1104_v11  ;;  %v1703_v38 = vld [vmem:[#allocation4 + $0xcc0] sm:$0xff]  ;;  %v6112_v4 = vpack.c.bf16 %v1662_v50, %v1661_v43 }
 0x1e9   :  { %6081 = vmatpush3.bf16.msra.mxu0 %v6080_v52  ;;  %v6102_v21 = vpack.c.bf16 %v1674_v30, %v1673_v12  ;;  %v6122_v52 = vpack.c.bf16 %v1700_v16, %v1699_v53  ;;  %v6126_v12 = vpack.c.bf16 %v1702_v45, %v1701_v7  ;;  %v1704_v30 = vld [vmem:[#allocation4 + $0xcc8] sm:$0xff]  ;;  %v1727_v11 = vld [vmem:[#allocation4 + $0xd80] sm:$0xff]  ;;  %v1085_v7 = vsel %vm1077_vm7, %v8440_v57, 0.0  ;;  %v1730_v45 = vld [vmem:[#allocation4 + $0xd98] sm:$0xff] }
 0x1ea   :  { %6115 = vmatprep.subr.bf16.mxu0 %v6114_v5  ;;  %v1684_v5 = vld [vmem:[#allocation4 + $0xc28] sm:$0xff]  ;;  %v1711_v51 = vld [vmem:[#allocation4 + $0xd00] sm:$0xff]  ;;  %vm1117_vm7 = vcmp.eq.f32.partialorder %v8431_v46, 3.0 }
 0x1eb   :  { %6093 = vmatpush3.bf16.msra.mxu1 %v6092_v34  ;;  %v1657_v34 = vld [vmem:[#allocation4 + $0xb50] sm:$0xff]  ;;  %v6124_v37 = vpack.c.bf16 %v1684_v5, %v1683_v19  ;;  %v1728_v16 = vld [vmem:[#allocation4 + $0xd88] sm:$0xff] }
 0x1ec   :  { %6095 = vmatprep.subr.bf16.mxu1 %v6094_v60  ;;  %3084 = vmatmul.mubr.f32.vlgmr.msra.gmra.mrb[10].mxu0 %v1091_v23  ;;  %v1658_v60 = vld [vmem:[#allocation4 + $0xb58] sm:$0xff]  ;;  %v1729_v19 = vld [vmem:[#allocation4 + $0xd90] sm:$0xff] }
 0x1ed   :  { %6117 = vmatpush3.bf16.msra.mxu0 %v6116_v63  ;;  %3223 = vmatprep.mubr.f32.mxu0 %v1128_v13  ;;  %v6104_v59 = vpack.c.bf16 %v1658_v60, %v1657_v34  ;;  %v1686_v63 = vld [vmem:[#allocation4 + $0xc38] sm:$0xff]  ;;  %v1687_v13 = vld [vmem:[#allocation4 + $0xc40] sm:$0xff]  ;;  %v1705_v34 = vld [vmem:[#allocation4 + $0xcd0] sm:$0xff] }
 0x1ee   :  { %6119 = vmatprep.subr.bf16.mxu0 %v6118_v28  ;;  %v6128_v53 = vpack.c.bf16 %v1686_v63, %v1685_v3  ;;  %v1706_v60 = vld [vmem:[#allocation4 + $0xcd8] sm:$0xff]  ;;  %v1106_v63 = vsel %vm1098_vm0, %v8014_v17, 0.0  ;;  %vm1138_vm0 = vcmp.eq.f32.partialorder %v8077_v6, 4.0 }
 0x1ef   :  { %6097 = vmatpush3.bf16.msra.mxu1 %v6096_v55  ;;  %v1660_v55 = vld [vmem:[#allocation4 + $0xb68] sm:$0xff] }
 0x1f0   :  { %6099 = vmatprep.subr.bf16.mxu1 %v6098_v20  ;;  %v1677_v20 = vld [vmem:[#allocation4 + $0xbf0] sm:$0xff]  ;;  %v6108_v23 = vpack.c.bf16 %v1660_v55, %v1659_v25  ;;  %v1690_v25 = vld [vmem:[#allocation4 + $0xc58] sm:$0xff]  ;;  %v1122_v55 = vsel %vm1114_vm12, %v8087_v26, 0.0  ;;  %vm1154_vm12 = vcmp.eq.f32.partialorder %v8108_v1, 4.0 }
 0x1f1   :  { %6121 = vmatpush3.bf16.msra.mxu0 %v6120_v36  ;;  %v6110_v28 = vpack.c.bf16 %v1678_v40, %v1677_v20  ;;  %v6146_v36 = vpack.c.bf16 %v1728_v16, %v1727_v11  ;;  %v1707_v20 = vld [vmem:[#allocation4 + $0xce0] sm:$0xff]  ;;  %v1069_v40 = vsel %vm1061_vm1, %v8438_v9, 0.0  ;;  %v1130_v50 = vadd.f32 %v1122_v55, %v1106_v63  ;;  %v1732_v11 = vld [vmem:[#allocation4 + $0xda8] sm:$0xff] }
 0x1f2   :  { %6123 = vmatprep.subr.bf16.mxu0 %v6122_v52  ;;  %v1712_v52 = vld [vmem:[#allocation4 + $0xd08] sm:$0xff]  ;;  %v1093_v3 = vadd.f32 %v1085_v7, %v1069_v40  ;;  %v1691_v16 = vld [vmem:[#allocation4 + $0xc60] sm:$0xff]  ;;  %v1693_v7 = vld [vmem:[#allocation4 + $0xc70] sm:$0xff]  ;;  %vm1101_vm1 = vcmp.eq.f32.partialorder %v8398_v0, 3.0 }
 0x1f3   :  { %6101 = vmatpush3.bf16.msra.mxu1 %v6100_v61  ;;  %v6130_v61 = vpack.c.bf16 %v1704_v30, %v1703_v38  ;;  %v6150_v38 = vpack.c.bf16 %v1730_v45, %v1729_v19  ;;  %v1713_v30 = vld [vmem:[#allocation4 + $0xd10] sm:$0xff]  ;;  %v1734_v19 = vld [vmem:[#allocation4 + $0xdb8] sm:$0xff]  ;;  %v1735_v40 = vld [vmem:[#allocation4 + $0xdc0] sm:$0xff] }
 0x1f4   :  { %6103 = vmatprep.subr.bf16.mxu1 %v6102_v21  ;;  %v1688_v21 = vld [vmem:[#allocation4 + $0xc48] sm:$0xff]  ;;  %v1694_v45 = vld [vmem:[#allocation4 + $0xc78] sm:$0xff] }
 0x1f5   :  { %6125 = vmatpush3.bf16.msra.mxu0 %v6124_v37  ;;  %v6132_v5 = vpack.c.bf16 %v1688_v21, %v1687_v13  ;;  %v1708_v37 = vld [vmem:[#allocation4 + $0xce8] sm:$0xff]  ;;  %v1709_v13 = vld [vmem:[#allocation4 + $0xcf0] sm:$0xff]  ;;  %v1710_v21 = vld [vmem:[#allocation4 + $0xcf8] sm:$0xff] }
 0x1f6   :  { %6127 = vmatprep.subr.bf16.mxu0 %v6126_v12  ;;  %v6148_v12 = vpack.c.bf16 %v1712_v52, %v1711_v51  ;;  %v1733_v51 = vld [vmem:[#allocation4 + $0xdb0] sm:$0xff] }
 0x1f7   :  { %6105 = vmatpush3.bf16.msra.mxu1 %v6104_v59  ;;  %v6134_v59 = vpack.c.bf16 %v1706_v60, %v1705_v34  ;;  %v6158_v55 = vpack.c.bf16 %v1734_v19, %v1733_v51  ;;  %v1745_v51 = vld [vmem:[#allocation4 + $0xe10] sm:$0xff]  ;;  %v1108_v19 = vsel %vm1100_vm11, %v8335_v41, 0.0  ;;  %vm1140_vm11 = vcmp.eq.f32.partialorder %v8318_v42, 4.0 }
 0x1f8   :  { %6107 = vmatprep.subr.bf16.mxu1 %v6106_v56  ;;  %v1689_v56 = vld [vmem:[#allocation4 + $0xc50] sm:$0xff] }
 0x1f9   :  { %6129 = vmatpush3.bf16.msra.mxu0 %v6128_v53  ;;  %v6136_v43 = vpack.c.bf16 %v1690_v25, %v1689_v56  ;;  %v6138_v53 = vpack.c.bf16 %v1708_v37, %v1707_v20  ;;  %v1760_v56 = vld [vmem:[#allocation4 + $0xe88] sm:$0xff]  ;;  %v1717_v20 = vld [vmem:[#allocation4 + $0xd30] sm:$0xff]  ;;  %v1718_v37 = vld [vmem:[#allocation4 + $0xd38] sm:$0xff] }
 0x1fa   :  { %6131 = vmatprep.subr.bf16.mxu0 %v6130_v61  ;;  %v1692_v61 = vld [vmem:[#allocation4 + $0xc68] sm:$0xff] }
 0x1fb   :  { %6109 = vmatpush3.bf16.msra.mxu1 %v6108_v23  ;;  %v1714_v23 = vld [vmem:[#allocation4 + $0xd18] sm:$0xff]  ;;  %v6140_v52 = vpack.c.bf16 %v1692_v61, %v1691_v16  ;;  %v1720_v16 = vld [vmem:[#allocation4 + $0xd48] sm:$0xff]  ;;  %v1737_v61 = vld [vmem:[#allocation4 + $0xdd0] sm:$0xff] }
 0x1fc   :  { %6111 = vmatprep.subr.bf16.mxu1 %v6110_v28  ;;  %v1731_v28 = vld [vmem:[#allocation4 + $0xda0] sm:$0xff]  ;;  %v6152_v34 = vpack.c.bf16 %v1714_v23, %v1713_v30  ;;  %v1744_v30 = vld [vmem:[#allocation4 + $0xe08] sm:$0xff]  ;;  %v1119_v23 = vsel %vm1111_vm2, %v7892_v27, 0.0  ;;  %vm1151_vm2 = vcmp.eq.f32.partialorder %v8048_v14, 4.0 }
 0x1fd   :  { %6133 = vmatpush3.bf16.msra.mxu0 %v6132_v5  ;;  %v6154_v60 = vpack.c.bf16 %v1732_v11, %v1731_v28  ;;  %v6142_v5 = vpack.c.bf16 %v1710_v21, %v1709_v13  ;;  %v1761_v28 = vld [vmem:[#allocation4 + $0xe90] sm:$0xff]  ;;  %v1103_v13 = vsel %vm1095_vm9, %v8885_v22, 0.0  ;;  %vm1135_vm9 = vcmp.eq.f32.partialorder %v8884_v2, 4.0 }
 0x1fe   :  { %6135 = vmatprep.subr.bf16.mxu0 %v6134_v59  ;;  %v1759_v59 = vld [vmem:[#allocation4 + $0xe80] sm:$0xff] }
 0x1ff   :  { %6113 = vmatpush3.bf16.msra.mxu1 %v6112_v4  ;;  %v1715_v4 = vld [vmem:[#allocation4 + $0xd20] sm:$0xff]  ;;  %v6178_v63 = vpack.c.bf16 %v1760_v56, %v1759_v59 }
 0x200   :  { %6147 = vmatprep.subr.bf16.mxu1 %v6146_v36  ;;  %v1716_v36 = vld [vmem:[#allocation4 + $0xd28] sm:$0xff] }
 0x201   :  { %6137 = vmatpush3.bf16.msra.mxu0 %v6136_v43  ;;  %v6156_v25 = vpack.c.bf16 %v1716_v36, %v1715_v4  ;;  %v1762_v43 = vld [vmem:[#allocation4 + $0xe98] sm:$0xff]  ;;  %v1127_v4 = vadd.f32 %v1119_v23, %v1103_v13  ;;  %v1749_v13 = vld [vmem:[#allocation4 + $0xe30] sm:$0xff] }
 0x202   :  { %3154 = vmatmul.mubr.f32.vlgmr.msra.gmra.mrb[10].mxu1 %v1093_v3  ;;  %6139 = vmatprep.subr.bf16.mxu0 %v6138_v53  ;;  %v1736_v3 = vld [vmem:[#allocation4 + $0xdc8] sm:$0xff]  ;;  %v1719_v53 = vld [vmem:[#allocation4 + $0xd40] sm:$0xff]  ;;  %v6182_v36 = vpack.c.bf16 %v1762_v43, %v1761_v28 }
 0x203   :  { %6149 = vmatpush3.bf16.msra.mxu1 %v6148_v12  ;;  %3293 = vmatprep.mubr.f32.mxu1 %v1130_v50  ;;  %v6144_v12 = vpack.c.bf16 %v1694_v45, %v1693_v7  ;;  %v6160_v50 = vpack.c.bf16 %v1718_v37, %v1717_v20  ;;  %v6162_v11 = vpack.c.bf16 %v1736_v3, %v1735_v40  ;;  %v1764_v7 = vld [vmem:[#allocation4 + $0xea8] sm:$0xff]  ;;  %v1739_v20 = vld [vmem:[#allocation4 + $0xde0] sm:$0xff] }
 0x204   :  { %6151 = vmatprep.subr.bf16.mxu1 %v6150_v38  ;;  %v1743_v38 = vld [vmem:[#allocation4 + $0xe00] sm:$0xff]  ;;  %v6164_v45 = vpack.c.bf16 %v1720_v16, %v1719_v53  ;;  %v1740_v40 = vld [vmem:[#allocation4 + $0xde8] sm:$0xff]  ;;  %v1742_v16 = vld [vmem:[#allocation4 + $0xdf8] sm:$0xff] }
 0x205   :  { %6141 = vmatpush3.bf16.msra.mxu0 %v6140_v52  ;;  %v6180_v21 = vpack.c.bf16 %v1744_v30, %v1743_v38  ;;  %v1746_v52 = vld [vmem:[#allocation4 + $0xe18] sm:$0xff]  ;;  %v1747_v3 = vld [vmem:[#allocation4 + $0xe20] sm:$0xff]  ;;  %v1765_v38 = vld [vmem:[#allocation4 + $0xeb0] sm:$0xff]  ;;  %v6170_v28 = vpack.c.bf16 %v1740_v40, %v1739_v20 }
 0x206   :  { %6143 = vmatprep.subr.bf16.mxu0 %v6142_v5  ;;  %v1763_v5 = vld [vmem:[#allocation4 + $0xea0] sm:$0xff]  ;;  %v6184_v37 = vpack.c.bf16 %v1746_v52, %v1745_v51  ;;  %v1766_v30 = vld [vmem:[#allocation4 + $0xeb8] sm:$0xff]  ;;  %v1725_v51 = vld [vmem:[#allocation4 + $0xd70] sm:$0xff] }
 0x207   :  { %6153 = vmatpush3.bf16.msra.mxu1 %v6152_v34  ;;  %v1124_v34 = vsel %vm1116_vm6, %v8321_v29, 0.0  ;;  %v1723_v43 = vld [vmem:[#allocation4 + $0xd60] sm:$0xff]  ;;  %v1726_v52 = vld [vmem:[#allocation4 + $0xd78] sm:$0xff]  ;;  %vm1156_vm6 = vcmp.eq.f32.partialorder %v8351_v10, 4.0 }
 0x208   :  { %6155 = vmatprep.subr.bf16.mxu1 %v6154_v60  ;;  %v1738_v60 = vld [vmem:[#allocation4 + $0xdd8] sm:$0xff]  ;;  %v1132_v59 = vadd.f32 %v1124_v34, %v1108_v19  ;;  %v1767_v34 = vld [vmem:[#allocation4 + $0xec0] sm:$0xff]  ;;  %v6176_v20 = vpack.c.bf16 %v1726_v52, %v1725_v51  ;;  %v1777_v51 = vld [vmem:[#allocation4 + $0xf10] sm:$0xff] }
 0x209   :  { %6145 = vmatpush3.bf16.msra.mxu0 %v6144_v12  ;;  %v6166_v56 = vpack.c.bf16 %v1738_v60, %v1737_v61  ;;  %v6186_v12 = vpack.c.bf16 %v1764_v7, %v1763_v5  ;;  %v6190_v61 = vpack.c.bf16 %v1766_v30, %v1765_v38  ;;  %v1768_v60 = vld [vmem:[#allocation4 + $0xec8] sm:$0xff]  ;;  %v1791_v19 = vld [vmem:[#allocation4 + $0xf80] sm:$0xff]  ;;  %v1778_v52 = vld [vmem:[#allocation4 + $0xf18] sm:$0xff] }
 0x20a   :  { %6179 = vmatprep.subr.bf16.mxu0 %v6178_v63  ;;  %v1748_v63 = vld [vmem:[#allocation4 + $0xe28] sm:$0xff] }
 0x20b   :  { %6157 = vmatpush3.bf16.msra.mxu1 %v6156_v25  ;;  %v1721_v25 = vld [vmem:[#allocation4 + $0xd50] sm:$0xff]  ;;  %v6188_v53 = vpack.c.bf16 %v1748_v63, %v1747_v3  ;;  %v1792_v7 = vld [vmem:[#allocation4 + $0xf88] sm:$0xff] }
 0x20c   :  { %6159 = vmatprep.subr.bf16.mxu1 %v6158_v55  ;;  %3224 = vmatmul.mubr.f32.vlgmr.msra.gmra.mrb[12].mxu0 %v1127_v4  ;;  %v1722_v55 = vld [vmem:[#allocation4 + $0xd58] sm:$0xff]  ;;  %v6210_v40 = vpack.c.bf16 %v1792_v7, %v1791_v19  ;;  %v1776_v3 = vld [vmem:[#allocation4 + $0xf08] sm:$0xff]  ;;  %v1793_v63 = vld [vmem:[#allocation4 + $0xf90] sm:$0xff] }
 0x20d   :  { %6181 = vmatpush3.bf16.msra.mxu0 %v6180_v21  ;;  %3363 = vmatprep.mubr.f32.mxu0 %v1132_v59  ;;  %v6168_v23 = vpack.c.bf16 %v1722_v55, %v1721_v25  ;;  %v1750_v21 = vld [vmem:[#allocation4 + $0xe38] sm:$0xff]  ;;  %v1751_v59 = vld [vmem:[#allocation4 + $0xe40] sm:$0xff]  ;;  %v1769_v25 = vld [vmem:[#allocation4 + $0xed0] sm:$0xff] }
 0x20e   :  { %6183 = vmatprep.subr.bf16.mxu0 %v6182_v36  ;;  %v6192_v5 = vpack.c.bf16 %v1750_v21, %v1749_v13  ;;  %v1770_v55 = vld [vmem:[#allocation4 + $0xed8] sm:$0xff]  ;;  %v1772_v13 = vld [vmem:[#allocation4 + $0xee8] sm:$0xff]  ;;  %v1105_v21 = vsel %vm1097_vm15, %v7950_v58, 0.0  ;;  %v1795_v19 = vld [vmem:[#allocation4 + $0xfa0] sm:$0xff]  ;;  %vm1137_vm15 = vcmp.eq.f32.partialorder %v8098_v48, 4.0 }
 0x20f   :  { %6161 = vmatpush3.bf16.msra.mxu1 %v6160_v50  ;;  %v1724_v50 = vld [vmem:[#allocation4 + $0xd68] sm:$0xff] }
 0x210   :  { %6163 = vmatprep.subr.bf16.mxu1 %v6162_v11  ;;  %v1741_v11 = vld [vmem:[#allocation4 + $0xdf0] sm:$0xff]  ;;  %v6172_v4 = vpack.c.bf16 %v1724_v50, %v1723_v43  ;;  %v6198_v43 = vpack.c.bf16 %v1770_v55, %v1769_v25  ;;  %v1756_v25 = vld [vmem:[#allocation4 + $0xe68] sm:$0xff] }
 0x211   :  { %6185 = vmatpush3.bf16.msra.mxu0 %v6184_v37  ;;  %v6174_v36 = vpack.c.bf16 %v1742_v16, %v1741_v11  ;;  %v1753_v11 = vld [vmem:[#allocation4 + $0xe50] sm:$0xff]  ;;  %v1126_v16 = vsel %vm1118_vm3, %v8443_v54, 0.0  ;;  %vm1158_vm3 = vcmp.eq.f32.partialorder %v8445_v62, 4.0 }
 0x212   :  { %6187 = vmatprep.subr.bf16.mxu0 %v6186_v12  ;;  %v1775_v12 = vld [vmem:[#allocation4 + $0xf00] sm:$0xff]  ;;  %v1773_v55 = vld [vmem:[#allocation4 + $0xef0] sm:$0xff] }
 0x213   :  { %6165 = vmatpush3.bf16.msra.mxu1 %v6164_v45  ;;  %v6194_v45 = vpack.c.bf16 %v1768_v60, %v1767_v34  ;;  %v6212_v34 = vpack.c.bf16 %v1776_v3, %v1775_v12  ;;  %v1779_v12 = vld [vmem:[#allocation4 + $0xf20] sm:$0xff]  ;;  %v1780_v3 = vld [vmem:[#allocation4 + $0xf28] sm:$0xff] }
 0x214   :  { %6167 = vmatprep.subr.bf16.mxu1 %v6166_v56  ;;  %v1752_v56 = vld [vmem:[#allocation4 + $0xe48] sm:$0xff] }
 0x215   :  { %6189 = vmatpush3.bf16.msra.mxu0 %v6188_v53  ;;  %v4642_v37 = vpop.f32.mrb[0].mxu0  ;;  %v6196_v38 = vpack.c.bf16 %v1752_v56, %v1751_v59  ;;  %v1754_v53 = vld [vmem:[#allocation4 + $0xe58] sm:$0xff]  ;;  %v1755_v56 = vld [vmem:[#allocation4 + $0xe60] sm:$0xff] }
 0x216   :  { %6191 = vmatprep.subr.bf16.mxu0 %v6190_v61  ;;  %v4643_v30 = vpop.f32.mrb[1].mxu0  ;;  %v1771_v61 = vld [vmem:[#allocation4 + $0xee0] sm:$0xff] }
 0x217   :  { %6169 = vmatpush3.bf16.msra.mxu1 %v6168_v23  ;;  %v1121_v23 = vsel %vm1113_vm5, %v7942_v8, 0.0  ;;  %v8534_v50 = vadd.f32 %v4643_v30, %v4642_v37  ;;  %v6202_v59 = vpack.c.bf16 %v1772_v13, %v1771_v61  ;;  %v6216_v37 = vpack.c.bf16 %v1778_v52, %v1777_v51  ;;  %v1798_v30 = vld [vmem:[#allocation4 + $0xfb8] sm:$0xff]  ;;  %v1781_v13 = vld [vmem:[#allocation4 + $0xf30] sm:$0xff]  ;;  %v1807_v51 = vld [vmem:[#allocation4 + $0x1000] sm:$0xff] }
 0x218   :  { %6171 = vmatprep.subr.bf16.mxu1 %v6170_v28  ;;  %v1794_v28 = vld [vmem:[#allocation4 + $0xf98] sm:$0xff]  ;;  %v1129_v60 = vadd.f32 %v1121_v23, %v1105_v21  ;;  %v1808_v52 = vld [vmem:[#allocation4 + $0x1008] sm:$0xff]  ;;  %vm1153_vm5 = vcmp.eq.f32.partialorder %v8160_v35, 4.0 }
 0x219   :  { %6193 = vmatpush3.bf16.msra.mxu0 %v6192_v5  ;;  %v6200_v5 = vpack.c.bf16 %v1754_v53, %v1753_v11  ;;  %v1823_v11 = vld [vmem:[#allocation4 + $0x1080] sm:$0xff]  ;;  %v1824_v53 = vld [vmem:[#allocation4 + $0x1088] sm:$0xff]  ;;  %v1782_v21 = vld [vmem:[#allocation4 + $0xf38] sm:$0xff] }
 0x21a   :  { %6195 = vmatprep.subr.bf16.mxu0 %v6194_v45  ;;  %v1796_v45 = vld [vmem:[#allocation4 + $0xfa8] sm:$0xff] }
 0x21b   :  { %6173 = vmatpush3.bf16.msra.mxu1 %v6172_v4  ;;  %v1110_v4 = vsel %vm1102_vm14, %v8435_v39, 0.0  ;;  %vm1142_vm14 = vcmp.eq.f32.partialorder %v8428_v32, 4.0 }
 0x21c   :  { %6175 = vmatprep.subr.bf16.mxu1 %v6174_v36  ;;  %v6214_v36 = vpack.c.bf16 %v1794_v28, %v1793_v63  ;;  %v1134_v7 = vadd.f32 %v1126_v16, %v1110_v4  ;;  %v1797_v63 = vld [vmem:[#allocation4 + $0xfb0] sm:$0xff]  ;;  %v6220_v16 = vpack.c.bf16 %v1780_v3, %v1779_v12  ;;  %v1800_v4 = vld [vmem:[#allocation4 + $0xfc8] sm:$0xff]  ;;  %v1802_v3 = vld [vmem:[#allocation4 + $0xfd8] sm:$0xff] }
 0x21d   :  { %6197 = vmatpush3.bf16.msra.mxu0 %v6196_v38  ;;  %v6204_v38 = vpack.c.bf16 %v1756_v25, %v1755_v56  ;;  %v1757_v28 = vld [vmem:[#allocation4 + $0xe70] sm:$0xff]  ;;  %v6222_v61 = vpack.c.bf16 %v1798_v30, %v1797_v63  ;;  %v1783_v56 = vld [vmem:[#allocation4 + $0xf40] sm:$0xff]  ;;  %v1784_v25 = vld [vmem:[#allocation4 + $0xf48] sm:$0xff] }
 0x21e   :  { %6199 = vmatprep.subr.bf16.mxu0 %v6198_v43  ;;  %v1758_v43 = vld [vmem:[#allocation4 + $0xe78] sm:$0xff]  ;;  %v1809_v30 = vld [vmem:[#allocation4 + $0x1010] sm:$0xff] }
 0x21f   :  { %6177 = vmatpush3.bf16.msra.mxu1 %v6176_v20  ;;  %v1774_v20 = vld [vmem:[#allocation4 + $0xef8] sm:$0xff] }
 0x220   :  { %6211 = vmatprep.subr.bf16.mxu1 %v6210_v40  ;;  %v6218_v40 = vpack.c.bf16 %v1796_v45, %v1795_v19  ;;  %v6206_v23 = vpack.c.bf16 %v1774_v20, %v1773_v55  ;;  %v1123_v19 = vsel %vm1115_vm8, %v8202_v15, 0.0  ;;  %v6224_v45 = vpack.c.bf16 %v1782_v21, %v1781_v13  ;;  %v1801_v55 = vld [vmem:[#allocation4 + $0xfd0] sm:$0xff] }
 0x221   :  { %6201 = vmatpush3.bf16.msra.mxu0 %v6200_v5  ;;  %v1825_v5 = vld [vmem:[#allocation4 + $0x1090] sm:$0xff]  ;;  %v1107_v20 = vsel %vm1099_vm10, %v8213_v24, 0.0  ;;  %v6230_v21 = vpack.c.bf16 %v1802_v3, %v1801_v55  ;;  %v1787_v55 = vld [vmem:[#allocation4 + $0xf60] sm:$0xff]  ;;  %vm1155_vm8 = vcmp.eq.f32.partialorder %v8345_v31, 4.0  ;;  %vm1139_vm10 = vcmp.eq.f32.partialorder %v8198_v44, 4.0 }
 0x222   :  { %3294 = vmatmul.mubr.f32.vlgmr.msra.gmra.mrb[12].mxu1 %v1129_v60  ;;  %6203 = vmatprep.subr.bf16.mxu0 %v6202_v59  ;;  %v6208_v60 = vpack.c.bf16 %v1758_v43, %v1757_v28  ;;  %v1131_v63 = vadd.f32 %v1123_v19, %v1107_v20  ;;  %v1144_v43 = vsel %vm1136_vm4, %v7900_v49, 0.0  ;;  %v1788_v20 = vld [vmem:[#allocation4 + $0xf68] sm:$0xff]  ;;  %v1813_v3 = vld [vmem:[#allocation4 + $0x1030] sm:$0xff]  ;;  %vm1176_vm4 = vcmp.eq.f32.partialorder %v7988_v18, 5.0 }
 0x223   :  { %6213 = vmatpush3.bf16.msra.mxu1 %v6212_v34  ;;  %3433 = vmatprep.mubr.f32.mxu1 %v1134_v7  ;;  %v1799_v34 = vld [vmem:[#allocation4 + $0xfc0] sm:$0xff]  ;;  %v1826_v7 = vld [vmem:[#allocation4 + $0x1098] sm:$0xff] }
 0x224   :  { %6215 = vmatprep.subr.bf16.mxu1 %v6214_v36  ;;  %v6242_v36 = vpack.c.bf16 %v1824_v53, %v1823_v11  ;;  %v6226_v59 = vpack.c.bf16 %v1800_v4, %v1799_v34  ;;  %v1827_v11 = vld [vmem:[#allocation4 + $0x10a0] sm:$0xff]  ;;  %v1828_v53 = vld [vmem:[#allocation4 + $0x10a8] sm:$0xff]  ;;  %v1785_v34 = vld [vmem:[#allocation4 + $0xf50] sm:$0xff] }
 0x225   :  { %6205 = vmatpush3.bf16.msra.mxu0 %v6204_v38  ;;  %v6246_v38 = vpack.c.bf16 %v1826_v7, %v1825_v5  ;;  %v1803_v4 = vld [vmem:[#allocation4 + $0xfe0] sm:$0xff]  ;;  %v6250_v19 = vpack.c.bf16 %v1828_v53, %v1827_v11  ;;  %v1812_v7 = vld [vmem:[#allocation4 + $0x1028] sm:$0xff]  ;;  %v1790_v11 = vld [vmem:[#allocation4 + $0xf78] sm:$0xff] }
 0x226   :  { %6207 = vmatprep.subr.bf16.mxu0 %v6206_v23  ;;  %v1810_v23 = vld [vmem:[#allocation4 + $0x1018] sm:$0xff]  ;;  %v1811_v5 = vld [vmem:[#allocation4 + $0x1020] sm:$0xff] }
 0x227   :  { %6217 = vmatpush3.bf16.msra.mxu1 %v6216_v37  ;;  %v6244_v37 = vpack.c.bf16 %v1808_v52, %v1807_v51  ;;  %v1804_v52 = vld [vmem:[#allocation4 + $0xfe8] sm:$0xff]  ;;  %v1855_v53 = vld [vmem:[#allocation4 + $0x1180] sm:$0xff] }
 0x228   :  { %6219 = vmatprep.subr.bf16.mxu1 %v6218_v40  ;;  %v1160_v40 = vsel %vm1152_vm13, %v7889_v33, 0.0  ;;  %vm1192_vm13 = vcmp.eq.f32.partialorder %v8024_v47, 5.0 }
 0x229   :  { %6209 = vmatpush3.bf16.msra.mxu0 %v6208_v60  ;;  %v1168_v13 = vadd.f32 %v1160_v40, %v1144_v43  ;;  %v1786_v60 = vld [vmem:[#allocation4 + $0xf58] sm:$0xff]  ;;  %v1805_v40 = vld [vmem:[#allocation4 + $0xff0] sm:$0xff] }
 0x22a   :  { %v4677_v12 = vpop.f32.mrb[0].mxu1  ;;  %6243 = vmatprep.subr.bf16.mxu0 %v6242_v36  ;;  %v6248_v36 = vpack.c.bf16 %v1810_v23, %v1809_v30  ;;  %v1832_v30 = vld [vmem:[#allocation4 + $0x10c8] sm:$0xff]  ;;  %v6236_v23 = vpack.c.bf16 %v1788_v20, %v1787_v55  ;;  %v1789_v43 = vld [vmem:[#allocation4 + $0xf70] sm:$0xff]  ;;  %v1818_v20 = vld [vmem:[#allocation4 + $0x1058] sm:$0xff] }
 0x22b   :  { %6221 = vmatpush3.bf16.msra.mxu1 %v6220_v16  ;;  %v4678_v28 = vpop.f32.mrb[1].mxu1  ;;  %v6228_v16 = vpack.c.bf16 %v1784_v25, %v1783_v56  ;;  %v1830_v56 = vld [vmem:[#allocation4 + $0x10b8] sm:$0xff]  ;;  %v6232_v25 = vpack.c.bf16 %v1786_v60, %v1785_v34  ;;  %v1816_v34 = vld [vmem:[#allocation4 + $0x1048] sm:$0xff]  ;;  %v1833_v60 = vld [vmem:[#allocation4 + $0x10d0] sm:$0xff] }
 0x22c   :  { %6223 = vmatprep.subr.bf16.mxu1 %v6222_v61  ;;  %v4679_v61 = vadd.f32 %v4678_v28, %v4677_v12  ;;  %3364 = vmatmul.mubr.f32.vlgmr.msra.gmra.mrb[14].mxu0 %v1131_v63  ;;  %v1806_v12 = vld [vmem:[#allocation4 + $0xff8] sm:$0xff]  ;;  %v1817_v55 = vld [vmem:[#allocation4 + $0x1050] sm:$0xff] }
 0x22d   :  { %6245 = vmatpush3.bf16.msra.mxu0 %v6244_v37  ;;  %3503 = vmatprep.mubr.f32.mxu0 %v1168_v13  ;;  %v6252_v37 = vpack.c.bf16 %v1812_v7, %v1811_v5  ;;  %v1814_v63 = vld [vmem:[#allocation4 + $0x1038] sm:$0xff]  ;;  %v6238_v28 = vpack.c.bf16 %v1806_v12, %v1805_v40  ;;  %v1840_v5 = vld [vmem:[#allocation4 + $0x1108] sm:$0xff]  ;;  %v1857_v7 = vld [vmem:[#allocation4 + $0x1190] sm:$0xff]  ;;  %v1162_v40 = vsel %vm1154_vm12, %v8087_v26, 0.0  ;;  %vm1194_vm12 = vcmp.eq.f32.partialorder %v8108_v1, 5.0 }
 0x22e   :  { %v8552_v51 = vadd.f32 %v4679_v61, %v8534_v50  ;;  %6247 = vmatprep.subr.bf16.mxu0 %v6246_v38  ;;  %v1831_v38 = vld [vmem:[#allocation4 + $0x10c0] sm:$0xff]  ;;  %v1856_v61 = vld [vmem:[#allocation4 + $0x1188] sm:$0xff] }
 0x22f   :  { %6225 = vmatpush3.bf16.msra.mxu1 %v6224_v45  ;;  %v1829_v45 = vld [vmem:[#allocation4 + $0x10b0] sm:$0xff]  ;;  %v6258_v13 = vpack.c.bf16 %v1832_v30, %v1831_v38  ;;  %v1836_v12 = vld [vmem:[#allocation4 + $0x10e8] sm:$0xff]  ;;  %v1146_v38 = vsel %vm1138_vm0, %v8014_v17, 0.0  ;;  %vm1178_vm0 = vcmp.eq.f32.partialorder %v8077_v6, 5.0 }
 0x230   :  { %6227 = vmatprep.subr.bf16.mxu1 %v6226_v59  ;;  %v6234_v59 = vpack.c.bf16 %v1804_v52, %v1803_v4  ;;  %v6254_v50 = vpack.c.bf16 %v1830_v56, %v1829_v45  ;;  %v1834_v4 = vld [vmem:[#allocation4 + $0x10d8] sm:$0xff]  ;;  %v6274_v52 = vpack.c.bf16 %v1856_v61, %v1855_v53  ;;  %v1125_v56 = vsel %vm1117_vm7, %v8440_v57, 0.0 }
 0x231   :  { %6249 = vmatpush3.bf16.msra.mxu0 %v6248_v36  ;;  %v6240_v36 = vpack.c.bf16 %v1790_v11, %v1789_v43  ;;  %v1859_v43 = vld [vmem:[#allocation4 + $0x11a0] sm:$0xff]  ;;  %v6264_v11 = vpack.c.bf16 %v1818_v20, %v1817_v55  ;;  %v1170_v53 = vadd.f32 %v1162_v40, %v1146_v38  ;;  %v1862_v55 = vld [vmem:[#allocation4 + $0x11b8] sm:$0xff]  ;;  %v1821_v40 = vld [vmem:[#allocation4 + $0x1070] sm:$0xff]  ;;  %vm1157_vm7 = vcmp.eq.f32.partialorder %v8431_v46, 4.0 }
 0x232   :  { %6251 = vmatprep.subr.bf16.mxu0 %v6250_v19  ;;  %v1839_v19 = vld [vmem:[#allocation4 + $0x1100] sm:$0xff]  ;;  %v1845_v38 = vld [vmem:[#allocation4 + $0x1130] sm:$0xff] }
 0x233   :  { %6229 = vmatpush3.bf16.msra.mxu1 %v6228_v16  ;;  %v6256_v16 = vpack.c.bf16 %v1814_v63, %v1813_v3  ;;  %v6276_v3 = vpack.c.bf16 %v1840_v5, %v1839_v19 }
 0x234   :  { %6231 = vmatprep.subr.bf16.mxu1 %v6230_v21  ;;  %v1815_v21 = vld [vmem:[#allocation4 + $0x1040] sm:$0xff] }
 0x235   :  { %6253 = vmatpush3.bf16.msra.mxu0 %v6252_v37  ;;  %v6260_v45 = vpack.c.bf16 %v1816_v34, %v1815_v21  ;;  %v1835_v37 = vld [vmem:[#allocation4 + $0x10e0] sm:$0xff]  ;;  %v1820_v34 = vld [vmem:[#allocation4 + $0x1068] sm:$0xff] }
 0x236   :  { %6255 = vmatprep.subr.bf16.mxu0 %v6254_v50  ;;  %v1109_v50 = vsel %vm1101_vm1, %v8438_v9, 0.0  ;;  %v1819_v21 = vld [vmem:[#allocation4 + $0x1060] sm:$0xff]  ;;  %vm1141_vm1 = vcmp.eq.f32.partialorder %v8398_v0, 4.0 }
 0x237   :  { %6233 = vmatpush3.bf16.msra.mxu1 %v6232_v25  ;;  %v1858_v25 = vld [vmem:[#allocation4 + $0x1198] sm:$0xff]  ;;  %v1133_v63 = vadd.f32 %v1125_v56, %v1109_v50  ;;  %v1861_v56 = vld [vmem:[#allocation4 + $0x11b0] sm:$0xff]  ;;  %v1888_v50 = vld [vmem:[#allocation4 + $0x1288] sm:$0xff] }
 0x238   :  { %6235 = vmatprep.subr.bf16.mxu1 %v6234_v59  ;;  %v6262_v59 = vpack.c.bf16 %v1834_v4, %v1833_v60  ;;  %v6278_v30 = vpack.c.bf16 %v1858_v25, %v1857_v7  ;;  %v1837_v4 = vld [vmem:[#allocation4 + $0x10f0] sm:$0xff]  ;;  %v1843_v7 = vld [vmem:[#allocation4 + $0x1120] sm:$0xff]  ;;  %v6268_v25 = vpack.c.bf16 %v1820_v34, %v1819_v21 }
 0x239   :  { %6257 = vmatpush3.bf16.msra.mxu0 %v6256_v16  ;;  %v1860_v16 = vld [vmem:[#allocation4 + $0x11a8] sm:$0xff] }
 0x23a   :  { %6259 = vmatprep.subr.bf16.mxu0 %v6258_v13  ;;  %v6266_v13 = vpack.c.bf16 %v1836_v12, %v1835_v37  ;;  %v6282_v5 = vpack.c.bf16 %v1860_v16, %v1859_v43  ;;  %v1822_v37 = vld [vmem:[#allocation4 + $0x1078] sm:$0xff]  ;;  %v1887_v12 = vld [vmem:[#allocation4 + $0x1280] sm:$0xff]  ;;  %v1864_v43 = vld [vmem:[#allocation4 + $0x11c8] sm:$0xff]  ;;  %v1159_v16 = vsel %vm1151_vm2, %v7892_v27, 0.0  ;;  %vm1191_vm2 = vcmp.eq.f32.partialorder %v8048_v14, 5.0 }
 0x23b   :  { %6237 = vmatpush3.bf16.msra.mxu1 %v6236_v23  ;;  %v1841_v23 = vld [vmem:[#allocation4 + $0x1110] sm:$0xff] }
 0x23c   :  { %6239 = vmatprep.subr.bf16.mxu1 %v6238_v28  ;;  %v1842_v28 = vld [vmem:[#allocation4 + $0x1118] sm:$0xff] }
 0x23d   :  { %6261 = vmatpush3.bf16.msra.mxu0 %v6260_v45  ;;  %v1844_v45 = vld [vmem:[#allocation4 + $0x1128] sm:$0xff] }
 0x23e   :  { %6263 = vmatprep.subr.bf16.mxu0 %v6262_v59 }
 0x23f   :  { %6241 = vmatpush3.bf16.msra.mxu1 %v6240_v36  ;;  %v4712_v61 = vpop.f32.mrb[2].mxu0  ;;  %v1838_v36 = vld [vmem:[#allocation4 + $0x10f8] sm:$0xff] }
 0x240   :  { %6275 = vmatprep.subr.bf16.mxu1 %v6274_v52  ;;  %v4713_v60 = vpop.f32.mrb[3].mxu0  ;;  %v6280_v52 = vpack.c.bf16 %v1842_v28, %v1841_v23  ;;  %v6270_v20 = vpack.c.bf16 %v1838_v36, %v1837_v4  ;;  %v1863_v23 = vld [vmem:[#allocation4 + $0x11c0] sm:$0xff]  ;;  %v6272_v28 = vpack.c.bf16 %v1822_v37, %v1821_v40  ;;  %v1848_v4 = vld [vmem:[#allocation4 + $0x1148] sm:$0xff]  ;;  %v1865_v36 = vld [vmem:[#allocation4 + $0x11d0] sm:$0xff] }
 0x241   :  { %v4714_v19 = vadd.f32 %v4713_v60, %v4712_v61  ;;  %6265 = vmatpush3.bf16.msra.mxu0 %v6264_v11  ;;  %v1871_v11 = vld [vmem:[#allocation4 + $0x1200] sm:$0xff]  ;;  %v1889_v61 = vld [vmem:[#allocation4 + $0x1290] sm:$0xff]  ;;  %v6290_v34 = vpack.c.bf16 %v1864_v43, %v1863_v23  ;;  %v1892_v37 = vld [vmem:[#allocation4 + $0x12a8] sm:$0xff] }
 0x242   :  { %3434 = vmatmul.mubr.f32.vlgmr.msra.gmra.mrb[14].mxu1 %v1133_v63  ;;  %6267 = vmatprep.subr.bf16.mxu0 %v6266_v13  ;;  %v6286_v63 = vpack.c.bf16 %v1862_v55, %v1861_v56  ;;  %v1890_v13 = vld [vmem:[#allocation4 + $0x1298] sm:$0xff]  ;;  %v1847_v60 = vld [vmem:[#allocation4 + $0x1140] sm:$0xff] }
 0x243   :  { %6277 = vmatpush3.bf16.msra.mxu1 %v6276_v3  ;;  %3573 = vmatprep.mubr.f32.mxu1 %v1170_v53  ;;  %v8563_v59 = vadd.f32 %v4714_v19, %v8552_v51  ;;  %v6284_v3 = vpack.c.bf16 %v1844_v45, %v1843_v7  ;;  %v6306_v51 = vpack.c.bf16 %v1888_v50, %v1887_v12  ;;  %v1872_v53 = vld [vmem:[#allocation4 + $0x1208] sm:$0xff]  ;;  %v1866_v7 = vld [vmem:[#allocation4 + $0x11d8] sm:$0xff]  ;;  %v1891_v40 = vld [vmem:[#allocation4 + $0x12a0] sm:$0xff] }
 0x244   :  { %6279 = vmatprep.subr.bf16.mxu1 %v6278_v30  ;;  %v1846_v30 = vld [vmem:[#allocation4 + $0x1138] sm:$0xff]  ;;  %v6308_v19 = vpack.c.bf16 %v1872_v53, %v1871_v11  ;;  %v6310_v56 = vpack.c.bf16 %v1890_v13, %v1889_v61  ;;  %v6292_v12 = vpack.c.bf16 %v1848_v4, %v1847_v60  ;;  %v6314_v43 = vpack.c.bf16 %v1892_v37, %v1891_v40  ;;  %v1876_v11 = vld [vmem:[#allocation4 + $0x1228] sm:$0xff]  ;;  %v1893_v53 = vld [vmem:[#allocation4 + $0x12b0] sm:$0xff] }
 0x245   :  { %6269 = vmatpush3.bf16.msra.mxu0 %v6268_v25  ;;  %v6288_v21 = vpack.c.bf16 %v1846_v30, %v1845_v38  ;;  %v1873_v25 = vld [vmem:[#allocation4 + $0x1210] sm:$0xff]  ;;  %v1874_v55 = vld [vmem:[#allocation4 + $0x1218] sm:$0xff]  ;;  %v1867_v30 = vld [vmem:[#allocation4 + $0x11e0] sm:$0xff] }
 0x246   :  { %6271 = vmatprep.subr.bf16.mxu0 %v6270_v20  ;;  %v1148_v20 = vsel %vm1140_vm11, %v8335_v41, 0.0  ;;  %v1850_v38 = vld [vmem:[#allocation4 + $0x1158] sm:$0xff]  ;;  %v6312_v23 = vpack.c.bf16 %v1874_v55, %v1873_v25  ;;  %v1869_v60 = vld [vmem:[#allocation4 + $0x11f0] sm:$0xff]  ;;  %v1896_v25 = vld [vmem:[#allocation4 + $0x12c8] sm:$0xff]  ;;  %vm1180_vm11 = vcmp.eq.f32.partialorder %v8318_v42, 5.0 }
 0x247   :  { %6281 = vmatpush3.bf16.msra.mxu1 %v6280_v52  ;;  %v1143_v52 = vsel %vm1135_vm9, %v8885_v22, 0.0  ;;  %v1853_v37 = vld [vmem:[#allocation4 + $0x1170] sm:$0xff]  ;;  %vm1175_vm9 = vcmp.eq.f32.partialorder %v8884_v2, 5.0 }
 0x248   :  { %6283 = vmatprep.subr.bf16.mxu1 %v6282_v5  ;;  %v1164_v5 = vsel %vm1156_vm6, %v8321_v29, 0.0  ;;  %v1167_v45 = vadd.f32 %v1159_v16, %v1143_v52  ;;  %v1894_v16 = vld [vmem:[#allocation4 + $0x12b8] sm:$0xff]  ;;  %vm1196_vm6 = vcmp.eq.f32.partialorder %v8351_v10, 5.0 }
 0x249   :  { %6273 = vmatpush3.bf16.msra.mxu0 %v6272_v28  ;;  %v1172_v50 = vadd.f32 %v1164_v5, %v1148_v20  ;;  %v1868_v28 = vld [vmem:[#allocation4 + $0x11e8] sm:$0xff]  ;;  %v1870_v52 = vld [vmem:[#allocation4 + $0x11f8] sm:$0xff]  ;;  %v1877_v5 = vld [vmem:[#allocation4 + $0x1230] sm:$0xff] }
 0x24a   :  { %6307 = vmatprep.subr.bf16.mxu0 %v6306_v51  ;;  %v1875_v51 = vld [vmem:[#allocation4 + $0x1220] sm:$0xff]  ;;  %v6298_v13 = vpack.c.bf16 %v1868_v28, %v1867_v30  ;;  %v6302_v40 = vpack.c.bf16 %v1870_v52, %v1869_v60  ;;  %v1880_v28 = vld [vmem:[#allocation4 + $0x1248] sm:$0xff]  ;;  %v1166_v52 = vsel %vm1158_vm3, %v8443_v54, 0.0  ;;  %vm1198_vm3 = vcmp.eq.f32.partialorder %v8445_v62, 5.0 }
 0x24b   :  { %6285 = vmatpush3.bf16.msra.mxu1 %v6284_v3  ;;  %v6294_v3 = vpack.c.bf16 %v1866_v7, %v1865_v36  ;;  %v6316_v4 = vpack.c.bf16 %v1876_v11, %v1875_v51  ;;  %v1878_v7 = vld [vmem:[#allocation4 + $0x1238] sm:$0xff] }
 0x24c   :  { %6287 = vmatprep.subr.bf16.mxu1 %v6286_v63  ;;  %3504 = vmatmul.mubr.f32.vlgmr.msra.gmra.mrb[16].mxu0 %v1167_v45  ;;  %v1849_v63 = vld [vmem:[#allocation4 + $0x1150] sm:$0xff]  ;;  %v1898_v51 = vld [vmem:[#allocation4 + $0x12d8] sm:$0xff] }
 0x24d   :  { %6309 = vmatpush3.bf16.msra.mxu0 %v6308_v19  ;;  %3643 = vmatprep.mubr.f32.mxu0 %v1172_v50  ;;  %v6296_v61 = vpack.c.bf16 %v1850_v38, %v1849_v63  ;;  %v6318_v19 = vpack.c.bf16 %v1894_v16, %v1893_v53  ;;  %v1919_v50 = vld [vmem:[#allocation4 + $0x1380] sm:$0xff]  ;;  %v1920_v38 = vld [vmem:[#allocation4 + $0x1388] sm:$0xff] }
 0x24e   :  { %6311 = vmatprep.subr.bf16.mxu0 %v6310_v56  ;;  %v1895_v56 = vld [vmem:[#allocation4 + $0x12c0] sm:$0xff]  ;;  %v6338_v53 = vpack.c.bf16 %v1920_v38, %v1919_v50 }
 0x24f   :  { %6289 = vmatpush3.bf16.msra.mxu1 %v6288_v21  ;;  %v1851_v21 = vld [vmem:[#allocation4 + $0x1160] sm:$0xff]  ;;  %v6322_v30 = vpack.c.bf16 %v1896_v25, %v1895_v56  ;;  %v1150_v25 = vsel %vm1142_vm14, %v8435_v39, 0.0  ;;  %vm1182_vm14 = vcmp.eq.f32.partialorder %v8428_v32, 5.0 }
 0x250   :  { %6291 = vmatprep.subr.bf16.mxu1 %v6290_v34  ;;  %v1852_v34 = vld [vmem:[#allocation4 + $0x1168] sm:$0xff]  ;;  %v1903_v16 = vld [vmem:[#allocation4 + $0x1300] sm:$0xff]  ;;  %v1174_v50 = vadd.f32 %v1166_v52, %v1150_v25  ;;  %v1886_v52 = vld [vmem:[#allocation4 + $0x1278] sm:$0xff] }
 0x251   :  { %6313 = vmatpush3.bf16.msra.mxu0 %v6312_v23  ;;  %v6300_v20 = vpack.c.bf16 %v1852_v34, %v1851_v21  ;;  %v1879_v23 = vld [vmem:[#allocation4 + $0x1240] sm:$0xff]  ;;  %v1161_v21 = vsel %vm1153_vm5, %v7942_v8, 0.0  ;;  %v1922_v34 = vld [vmem:[#allocation4 + $0x1398] sm:$0xff]  ;;  %v1909_v25 = vld [vmem:[#allocation4 + $0x1330] sm:$0xff]  ;;  %vm1193_vm5 = vcmp.eq.f32.partialorder %v8160_v35, 5.0 }
 0x252   :  { %6315 = vmatprep.subr.bf16.mxu0 %v6314_v43  ;;  %v1897_v43 = vld [vmem:[#allocation4 + $0x12d0] sm:$0xff] }
 0x253   :  { %6293 = vmatpush3.bf16.msra.mxu1 %v6292_v12  ;;  %v1854_v12 = vld [vmem:[#allocation4 + $0x1178] sm:$0xff]  ;;  %v6326_v60 = vpack.c.bf16 %v1898_v51, %v1897_v43  ;;  %v1901_v43 = vld [vmem:[#allocation4 + $0x12f0] sm:$0xff] }
 0x254   :  { %6295 = vmatprep.subr.bf16.mxu1 %v6294_v3  ;;  %v6320_v3 = vpack.c.bf16 %v1878_v7, %v1877_v5  ;;  %v6304_v11 = vpack.c.bf16 %v1854_v12, %v1853_v37  ;;  %v1900_v5 = vld [vmem:[#allocation4 + $0x12e8] sm:$0xff]  ;;  %v1145_v7 = vsel %vm1137_vm15, %v7950_v58, 0.0  ;;  %v1923_v37 = vld [vmem:[#allocation4 + $0x13a0] sm:$0xff]  ;;  %v1902_v51 = vld [vmem:[#allocation4 + $0x12f8] sm:$0xff]  ;;  %vm1177_vm15 = vcmp.eq.f32.partialorder %v8098_v48, 5.0 }
 0x255   :  { %v4747_v36 = vpop.f32.mrb[2].mxu1  ;;  %6317 = vmatpush3.bf16.msra.mxu0 %v6316_v4  ;;  %v1881_v4 = vld [vmem:[#allocation4 + $0x1250] sm:$0xff]  ;;  %v1169_v56 = vadd.f32 %v1161_v21, %v1145_v7  ;;  %v1952_v7 = vld [vmem:[#allocation4 + $0x1488] sm:$0xff] }
 0x256   :  { %v4748_v45 = vpop.f32.mrb[3].mxu1  ;;  %6319 = vmatprep.subr.bf16.mxu0 %v6318_v19  ;;  %v1899_v19 = vld [vmem:[#allocation4 + $0x12e0] sm:$0xff]  ;;  %v1925_v21 = vld [vmem:[#allocation4 + $0x13b0] sm:$0xff] }
 0x257   :  { %v4749_v55 = vadd.f32 %v4748_v45, %v4747_v36  ;;  %6297 = vmatpush3.bf16.msra.mxu1 %v6296_v61  ;;  %v1904_v61 = vld [vmem:[#allocation4 + $0x1308] sm:$0xff]  ;;  %v1882_v36 = vld [vmem:[#allocation4 + $0x1258] sm:$0xff]  ;;  %v6330_v38 = vpack.c.bf16 %v1900_v5, %v1899_v19  ;;  %v1951_v5 = vld [vmem:[#allocation4 + $0x1480] sm:$0xff] }
 0x258   :  { %6299 = vmatprep.subr.bf16.mxu1 %v6298_v13  ;;  %v1921_v13 = vld [vmem:[#allocation4 + $0x1390] sm:$0xff]  ;;  %v6340_v45 = vpack.c.bf16 %v1904_v61, %v1903_v16  ;;  %v6328_v12 = vpack.c.bf16 %v1882_v36, %v1881_v4  ;;  %v1907_v61 = vld [vmem:[#allocation4 + $0x1320] sm:$0xff]  ;;  %v6334_v4 = vpack.c.bf16 %v1902_v51, %v1901_v43  ;;  %v1912_v51 = vld [vmem:[#allocation4 + $0x1348] sm:$0xff] }
 0x259   :  { %v8574_v63 = vadd.f32 %v4749_v55, %v8563_v59  ;;  %6321 = vmatpush3.bf16.msra.mxu0 %v6320_v3  ;;  %v6324_v59 = vpack.c.bf16 %v1880_v28, %v1879_v23  ;;  %v6342_v55 = vpack.c.bf16 %v1922_v34, %v1921_v13  ;;  %v1924_v3 = vld [vmem:[#allocation4 + $0x13a8] sm:$0xff]  ;;  %v1885_v36 = vld [vmem:[#allocation4 + $0x1270] sm:$0xff]  ;;  %v1911_v43 = vld [vmem:[#allocation4 + $0x1340] sm:$0xff] }
 0x25a   :  { %6323 = vmatprep.subr.bf16.mxu0 %v6322_v30  ;;  %v1883_v30 = vld [vmem:[#allocation4 + $0x1260] sm:$0xff]  ;;  %v1884_v23 = vld [vmem:[#allocation4 + $0x1268] sm:$0xff]  ;;  %v6346_v16 = vpack.c.bf16 %v1924_v3, %v1923_v37 }
 0x25b   :  { %6301 = vmatpush3.bf16.msra.mxu1 %v6300_v20  ;;  %v1905_v20 = vld [vmem:[#allocation4 + $0x1310] sm:$0xff]  ;;  %v1908_v13 = vld [vmem:[#allocation4 + $0x1328] sm:$0xff]  ;;  %v6332_v34 = vpack.c.bf16 %v1884_v23, %v1883_v30  ;;  %v1954_v30 = vld [vmem:[#allocation4 + $0x1498] sm:$0xff] }
 0x25c   :  { %6303 = vmatprep.subr.bf16.mxu1 %v6302_v40  ;;  %v1906_v40 = vld [vmem:[#allocation4 + $0x1318] sm:$0xff]  ;;  %v1928_v37 = vld [vmem:[#allocation4 + $0x13c8] sm:$0xff] }
 0x25d   :  { %6325 = vmatpush3.bf16.msra.mxu0 %v6324_v59  ;;  %v1936_v3 = vld [vmem:[#allocation4 + $0x1408] sm:$0xff] }
 0x25e   :  { %6327 = vmatprep.subr.bf16.mxu0 %v6326_v60  ;;  %v1926_v60 = vld [vmem:[#allocation4 + $0x13b8] sm:$0xff] }
 0x25f   :  { %6305 = vmatpush3.bf16.msra.mxu1 %v6304_v11  ;;  %v4782_v28 = vpop.f32.mrb[4].mxu0  ;;  %v6344_v11 = vpack.c.bf16 %v1906_v40, %v1905_v20  ;;  %v1927_v20 = vld [vmem:[#allocation4 + $0x13c0] sm:$0xff]  ;;  %v6336_v40 = vpack.c.bf16 %v1886_v52, %v1885_v36  ;;  %v1956_v52 = vld [vmem:[#allocation4 + $0x14a8] sm:$0xff] }
 0x260   :  { %6339 = vmatprep.subr.bf16.mxu1 %v6338_v53  ;;  %v4783_v53 = vpop.f32.mrb[5].mxu0  ;;  %v1955_v36 = vld [vmem:[#allocation4 + $0x14a0] sm:$0xff] }
 0x261   :  { %v4784_v59 = vadd.f32 %v4783_v53, %v4782_v28  ;;  %6329 = vmatpush3.bf16.msra.mxu0 %v6328_v12  ;;  %v6370_v12 = vpack.c.bf16 %v1952_v7, %v1951_v5  ;;  %v6354_v28 = vpack.c.bf16 %v1928_v37, %v1927_v20  ;;  %v1147_v53 = vsel %vm1139_vm10, %v8213_v24, 0.0 }
 0x262   :  { %3574 = vmatmul.mubr.f32.vlgmr.msra.gmra.mrb[16].mxu1 %v1169_v56  ;;  %6331 = vmatprep.subr.bf16.mxu0 %v6330_v38  ;;  %v6350_v56 = vpack.c.bf16 %v1926_v60, %v1925_v21  ;;  %v1953_v38 = vld [vmem:[#allocation4 + $0x1490] sm:$0xff]  ;;  %v1938_v60 = vld [vmem:[#allocation4 + $0x1418] sm:$0xff]  ;;  %v6356_v5 = vpack.c.bf16 %v1912_v51, %v1911_v43  ;;  %v6378_v37 = vpack.c.bf16 %v1956_v52, %v1955_v36  ;;  %vm1179_vm10 = vcmp.eq.f32.partialorder %v8198_v44, 5.0 }
 0x263   :  { %6341 = vmatpush3.bf16.msra.mxu1 %v6340_v45  ;;  %3713 = vmatprep.mubr.f32.mxu1 %v1174_v50  ;;  %v8585_v19 = vadd.f32 %v4784_v59, %v8574_v63  ;;  %v6348_v45 = vpack.c.bf16 %v1908_v13, %v1907_v61  ;;  %v1935_v50 = vld [vmem:[#allocation4 + $0x1400] sm:$0xff]  ;;  %v1163_v63 = vsel %vm1155_vm8, %v8202_v15, 0.0  ;;  %v1200_v61 = vsel %vm1192_vm13, %v7889_v33, 0.0  ;;  %v1930_v13 = vld [vmem:[#allocation4 + $0x13d8] sm:$0xff]  ;;  %v1933_v43 = vld [vmem:[#allocation4 + $0x13f0] sm:$0xff] }
 0x264   :  { %6343 = vmatprep.subr.bf16.mxu1 %v6342_v55  ;;  %v1910_v55 = vld [vmem:[#allocation4 + $0x1338] sm:$0xff]  ;;  %v1171_v59 = vadd.f32 %v1163_v63, %v1147_v53  ;;  %v6374_v21 = vpack.c.bf16 %v1954_v30, %v1953_v38  ;;  %v1917_v52 = vld [vmem:[#allocation4 + $0x1370] sm:$0xff]  ;;  %vm1195_vm8 = vcmp.eq.f32.partialorder %v8345_v31, 5.0  ;;  %vm1232_vm13 = vcmp.eq.f32.partialorder %v8024_v47, 6.0 }
 0x265   :  { %6333 = vmatpush3.bf16.msra.mxu0 %v6332_v34  ;;  %v6352_v23 = vpack.c.bf16 %v1910_v55, %v1909_v25  ;;  %v1937_v34 = vld [vmem:[#allocation4 + $0x1410] sm:$0xff]  ;;  %v1914_v25 = vld [vmem:[#allocation4 + $0x1358] sm:$0xff]  ;;  %v1931_v55 = vld [vmem:[#allocation4 + $0x13e0] sm:$0xff] }
 0x266   :  { %6335 = vmatprep.subr.bf16.mxu0 %v6334_v4  ;;  %v1184_v4 = vsel %vm1176_vm4, %v7900_v49, 0.0  ;;  %v6376_v20 = vpack.c.bf16 %v1938_v60, %v1937_v34  ;;  %v1958_v63 = vld [vmem:[#allocation4 + $0x14b8] sm:$0xff]  ;;  %v1960_v34 = vld [vmem:[#allocation4 + $0x14c8] sm:$0xff]  ;;  %vm1216_vm4 = vcmp.eq.f32.partialorder %v7988_v18, 6.0 }
 0x267   :  { %6345 = vmatpush3.bf16.msra.mxu1 %v6344_v11  ;;  %v1929_v11 = vld [vmem:[#allocation4 + $0x13d0] sm:$0xff]  ;;  %v1208_v7 = vadd.f32 %v1200_v61, %v1184_v4  ;;  %v1934_v53 = vld [vmem:[#allocation4 + $0x13f8] sm:$0xff] }
 0x268   :  { %6347 = vmatprep.subr.bf16.mxu1 %v6346_v16  ;;  %v6372_v16 = vpack.c.bf16 %v1936_v3, %v1935_v50  ;;  %v1940_v50 = vld [vmem:[#allocation4 + $0x1428] sm:$0xff]  ;;  %v1957_v3 = vld [vmem:[#allocation4 + $0x14b0] sm:$0xff]  ;;  %v6366_v36 = vpack.c.bf16 %v1934_v53, %v1933_v43  ;;  %v1202_v53 = vsel %vm1194_vm12, %v8087_v26, 0.0  ;;  %vm1234_vm12 = vcmp.eq.f32.partialorder %v8108_v1, 6.0 }
 0x269   :  { %6337 = vmatpush3.bf16.msra.mxu0 %v6336_v40  ;;  %v1932_v40 = vld [vmem:[#allocation4 + $0x13e8] sm:$0xff]  ;;  %v1941_v61 = vld [vmem:[#allocation4 + $0x1430] sm:$0xff] }
 0x26a   :  { %6371 = vmatprep.subr.bf16.mxu0 %v6370_v12  ;;  %v1939_v12 = vld [vmem:[#allocation4 + $0x1420] sm:$0xff]  ;;  %v6362_v30 = vpack.c.bf16 %v1932_v40, %v1931_v55  ;;  %v1944_v40 = vld [vmem:[#allocation4 + $0x1448] sm:$0xff] }
 0x26b   :  { %6349 = vmatpush3.bf16.msra.mxu1 %v6348_v45  ;;  %v6358_v45 = vpack.c.bf16 %v1930_v13, %v1929_v11  ;;  %v6380_v51 = vpack.c.bf16 %v1940_v50, %v1939_v12  ;;  %v1942_v13 = vld [vmem:[#allocation4 + $0x1438] sm:$0xff] }
 0x26c   :  { %6351 = vmatprep.subr.bf16.mxu1 %v6350_v56  ;;  %3644 = vmatmul.mubr.f32.vlgmr.msra.gmra.mrb[18].mxu0 %v1171_v59  ;;  %v1913_v56 = vld [vmem:[#allocation4 + $0x1350] sm:$0xff]  ;;  %v1962_v12 = vld [vmem:[#allocation4 + $0x14d8] sm:$0xff] }
 0x26d   :  { %6373 = vmatpush3.bf16.msra.mxu0 %v6372_v16  ;;  %3783 = vmatprep.mubr.f32.mxu0 %v1208_v7  ;;  %v6360_v38 = vpack.c.bf16 %v1914_v25, %v1913_v56  ;;  %v6382_v16 = vpack.c.bf16 %v1958_v63, %v1957_v3  ;;  %v1983_v7 = vld [vmem:[#allocation4 + $0x1580] sm:$0xff]  ;;  %v1984_v25 = vld [vmem:[#allocation4 + $0x1588] sm:$0xff] }
 0x26e   :  { %6375 = vmatprep.subr.bf16.mxu0 %v6374_v21  ;;  %v1959_v21 = vld [vmem:[#allocation4 + $0x14c0] sm:$0xff]  ;;  %v6402_v3 = vpack.c.bf16 %v1984_v25, %v1983_v7 }
 0x26f   :  { %6353 = vmatpush3.bf16.msra.mxu1 %v6352_v23  ;;  %v1915_v23 = vld [vmem:[#allocation4 + $0x1360] sm:$0xff]  ;;  %v6386_v55 = vpack.c.bf16 %v1960_v34, %v1959_v21  ;;  %v1186_v34 = vsel %vm1178_vm0, %v8014_v17, 0.0  ;;  %vm1218_vm0 = vcmp.eq.f32.partialorder %v8077_v6, 6.0 }
 0x270   :  { %6355 = vmatprep.subr.bf16.mxu1 %v6354_v28  ;;  %v1916_v28 = vld [vmem:[#allocation4 + $0x1368] sm:$0xff]  ;;  %v1967_v63 = vld [vmem:[#allocation4 + $0x1500] sm:$0xff]  ;;  %v1210_v7 = vadd.f32 %v1202_v53, %v1186_v34  ;;  %v1950_v53 = vld [vmem:[#allocation4 + $0x1478] sm:$0xff] }
 0x271   :  { %6377 = vmatpush3.bf16.msra.mxu0 %v6376_v20  ;;  %v6364_v4 = vpack.c.bf16 %v1916_v28, %v1915_v23  ;;  %v1943_v20 = vld [vmem:[#allocation4 + $0x1440] sm:$0xff]  ;;  %v1165_v23 = vsel %vm1157_vm7, %v8440_v57, 0.0  ;;  %v1986_v28 = vld [vmem:[#allocation4 + $0x1598] sm:$0xff]  ;;  %v1973_v34 = vld [vmem:[#allocation4 + $0x1530] sm:$0xff]  ;;  %vm1197_vm7 = vcmp.eq.f32.partialorder %v8431_v46, 5.0 }
 0x272   :  { %6379 = vmatprep.subr.bf16.mxu0 %v6378_v37  ;;  %v1961_v37 = vld [vmem:[#allocation4 + $0x14d0] sm:$0xff] }
 0x273   :  { %6357 = vmatpush3.bf16.msra.mxu1 %v6356_v5  ;;  %v1918_v5 = vld [vmem:[#allocation4 + $0x1378] sm:$0xff]  ;;  %v6390_v43 = vpack.c.bf16 %v1962_v12, %v1961_v37  ;;  %v1965_v37 = vld [vmem:[#allocation4 + $0x14f0] sm:$0xff] }
 0x274   :  { %6359 = vmatprep.subr.bf16.mxu1 %v6358_v45  ;;  %v6384_v45 = vpack.c.bf16 %v1942_v13, %v1941_v61  ;;  %v6368_v50 = vpack.c.bf16 %v1918_v5, %v1917_v52  ;;  %v1964_v61 = vld [vmem:[#allocation4 + $0x14e8] sm:$0xff]  ;;  %v1149_v13 = vsel %vm1141_vm1, %v8438_v9, 0.0  ;;  %v1987_v52 = vld [vmem:[#allocation4 + $0x15a0] sm:$0xff]  ;;  %v1966_v12 = vld [vmem:[#allocation4 + $0x14f8] sm:$0xff]  ;;  %vm1181_vm1 = vcmp.eq.f32.partialorder %v8398_v0, 5.0 }
 0x275   :  { %v4817_v11 = vpop.f32.mrb[4].mxu1  ;;  %6381 = vmatpush3.bf16.msra.mxu0 %v6380_v51  ;;  %v1945_v51 = vld [vmem:[#allocation4 + $0x1450] sm:$0xff]  ;;  %v1173_v21 = vadd.f32 %v1165_v23, %v1149_v13  ;;  %v2016_v13 = vld [vmem:[#allocation4 + $0x1688] sm:$0xff] }
 0x276   :  { %v4818_v59 = vpop.f32.mrb[5].mxu1  ;;  %6383 = vmatprep.subr.bf16.mxu0 %v6382_v16  ;;  %v1963_v16 = vld [vmem:[#allocation4 + $0x14e0] sm:$0xff]  ;;  %v1989_v23 = vld [vmem:[#allocation4 + $0x15b0] sm:$0xff] }
 0x277   :  { %v4819_v60 = vadd.f32 %v4818_v59, %v4817_v11  ;;  %6361 = vmatpush3.bf16.msra.mxu1 %v6360_v38  ;;  %v1968_v38 = vld [vmem:[#allocation4 + $0x1508] sm:$0xff]  ;;  %v1946_v11 = vld [vmem:[#allocation4 + $0x1458] sm:$0xff]  ;;  %v6394_v25 = vpack.c.bf16 %v1964_v61, %v1963_v16  ;;  %v2015_v61 = vld [vmem:[#allocation4 + $0x1680] sm:$0xff] }
 0x278   :  { %6363 = vmatprep.subr.bf16.mxu1 %v6362_v30  ;;  %v1985_v30 = vld [vmem:[#allocation4 + $0x1590] sm:$0xff]  ;;  %v6404_v59 = vpack.c.bf16 %v1968_v38, %v1967_v63  ;;  %v6392_v5 = vpack.c.bf16 %v1946_v11, %v1945_v51  ;;  %v1971_v38 = vld [vmem:[#allocation4 + $0x1520] sm:$0xff]  ;;  %v6398_v51 = vpack.c.bf16 %v1966_v12, %v1965_v37  ;;  %v1976_v12 = vld [vmem:[#allocation4 + $0x1548] sm:$0xff] }
 0x279   :  { %v8596_v56 = vadd.f32 %v4819_v60, %v8585_v19  ;;  %6385 = vmatpush3.bf16.msra.mxu0 %v6384_v45  ;;  %v6388_v19 = vpack.c.bf16 %v1944_v40, %v1943_v20  ;;  %v6406_v60 = vpack.c.bf16 %v1986_v28, %v1985_v30  ;;  %v1988_v45 = vld [vmem:[#allocation4 + $0x15a8] sm:$0xff]  ;;  %v1949_v11 = vld [vmem:[#allocation4 + $0x1470] sm:$0xff]  ;;  %v1975_v37 = vld [vmem:[#allocation4 + $0x1540] sm:$0xff] }
 0x27a   :  { %6387 = vmatprep.subr.bf16.mxu0 %v6386_v55  ;;  %v1947_v55 = vld [vmem:[#allocation4 + $0x1460] sm:$0xff]  ;;  %v1948_v20 = vld [vmem:[#allocation4 + $0x1468] sm:$0xff]  ;;  %v6410_v63 = vpack.c.bf16 %v1988_v45, %v1987_v52 }
 0x27b   :  { %6365 = vmatpush3.bf16.msra.mxu1 %v6364_v4  ;;  %v1969_v4 = vld [vmem:[#allocation4 + $0x1510] sm:$0xff]  ;;  %v1972_v30 = vld [vmem:[#allocation4 + $0x1528] sm:$0xff]  ;;  %v6396_v28 = vpack.c.bf16 %v1948_v20, %v1947_v55  ;;  %v2018_v55 = vld [vmem:[#allocation4 + $0x1698] sm:$0xff] }
 0x27c   :  { %6367 = vmatprep.subr.bf16.mxu1 %v6366_v36  ;;  %v1970_v36 = vld [vmem:[#allocation4 + $0x1518] sm:$0xff]  ;;  %v1992_v52 = vld [vmem:[#allocation4 + $0x15c8] sm:$0xff] }
 0x27d   :  { %6389 = vmatpush3.bf16.msra.mxu0 %v6388_v19  ;;  %v2000_v45 = vld [vmem:[#allocation4 + $0x1608] sm:$0xff] }
 0x27e   :  { %6391 = vmatprep.subr.bf16.mxu0 %v6390_v43  ;;  %v1990_v43 = vld [vmem:[#allocation4 + $0x15b8] sm:$0xff] }
 0x27f   :  { %6369 = vmatpush3.bf16.msra.mxu1 %v6368_v50  ;;  %v4852_v40 = vpop.f32.mrb[6].mxu0  ;;  %v6408_v50 = vpack.c.bf16 %v1970_v36, %v1969_v4  ;;  %v1991_v4 = vld [vmem:[#allocation4 + $0x15c0] sm:$0xff]  ;;  %v6400_v36 = vpack.c.bf16 %v1950_v53, %v1949_v11  ;;  %v2020_v53 = vld [vmem:[#allocation4 + $0x16a8] sm:$0xff] }
 0x280   :  { %6403 = vmatprep.subr.bf16.mxu1 %v6402_v3  ;;  %v4853_v3 = vpop.f32.mrb[7].mxu0  ;;  %v2019_v11 = vld [vmem:[#allocation4 + $0x16a0] sm:$0xff] }
 0x281   :  { %v4854_v19 = vadd.f32 %v4853_v3, %v4852_v40  ;;  %6393 = vmatpush3.bf16.msra.mxu0 %v6392_v5  ;;  %v6434_v5 = vpack.c.bf16 %v2016_v13, %v2015_v61  ;;  %v6418_v40 = vpack.c.bf16 %v1992_v52, %v1991_v4  ;;  %v1183_v3 = vsel %vm1175_vm9, %v8885_v22, 0.0 }
 0x282   :  { %3714 = vmatmul.mubr.f32.vlgmr.msra.gmra.mrb[18].mxu1 %v1173_v21  ;;  %6395 = vmatprep.subr.bf16.mxu0 %v6394_v25  ;;  %v6414_v21 = vpack.c.bf16 %v1990_v43, %v1989_v23  ;;  %v2017_v25 = vld [vmem:[#allocation4 + $0x1690] sm:$0xff]  ;;  %v2002_v43 = vld [vmem:[#allocation4 + $0x1618] sm:$0xff]  ;;  %v6420_v61 = vpack.c.bf16 %v1976_v12, %v1975_v37  ;;  %v6442_v52 = vpack.c.bf16 %v2020_v53, %v2019_v11  ;;  %vm1215_vm9 = vcmp.eq.f32.partialorder %v8884_v2, 6.0 }
 0x283   :  { %6405 = vmatpush3.bf16.msra.mxu1 %v6404_v59  ;;  %3853 = vmatprep.mubr.f32.mxu1 %v1210_v7  ;;  %v8607_v16 = vadd.f32 %v4854_v19, %v8596_v56  ;;  %v6412_v59 = vpack.c.bf16 %v1972_v30, %v1971_v38  ;;  %v1999_v7 = vld [vmem:[#allocation4 + $0x1600] sm:$0xff]  ;;  %v1199_v56 = vsel %vm1191_vm2, %v7892_v27, 0.0  ;;  %v1204_v38 = vsel %vm1196_vm6, %v8321_v29, 0.0  ;;  %v1994_v30 = vld [vmem:[#allocation4 + $0x15d8] sm:$0xff]  ;;  %v1997_v37 = vld [vmem:[#allocation4 + $0x15f0] sm:$0xff] }
 0x284   :  { %6407 = vmatprep.subr.bf16.mxu1 %v6406_v60  ;;  %v1974_v60 = vld [vmem:[#allocation4 + $0x1538] sm:$0xff]  ;;  %v1207_v19 = vadd.f32 %v1199_v56, %v1183_v3  ;;  %v6438_v23 = vpack.c.bf16 %v2018_v55, %v2017_v25  ;;  %v1981_v53 = vld [vmem:[#allocation4 + $0x1570] sm:$0xff]  ;;  %vm1231_vm2 = vcmp.eq.f32.partialorder %v8048_v14, 6.0  ;;  %vm1236_vm6 = vcmp.eq.f32.partialorder %v8351_v10, 6.0 }
 0x285   :  { %6397 = vmatpush3.bf16.msra.mxu0 %v6396_v28  ;;  %v6416_v20 = vpack.c.bf16 %v1974_v60, %v1973_v34  ;;  %v2001_v28 = vld [vmem:[#allocation4 + $0x1610] sm:$0xff]  ;;  %v1978_v34 = vld [vmem:[#allocation4 + $0x1558] sm:$0xff]  ;;  %v1995_v60 = vld [vmem:[#allocation4 + $0x15e0] sm:$0xff] }
 0x286   :  { %6399 = vmatprep.subr.bf16.mxu0 %v6398_v51  ;;  %v1188_v51 = vsel %vm1180_vm11, %v8335_v41, 0.0  ;;  %v6440_v4 = vpack.c.bf16 %v2002_v43, %v2001_v28  ;;  %v2022_v56 = vld [vmem:[#allocation4 + $0x16b8] sm:$0xff]  ;;  %v2024_v28 = vld [vmem:[#allocation4 + $0x16c8] sm:$0xff]  ;;  %vm1220_vm11 = vcmp.eq.f32.partialorder %v8318_v42, 6.0 }
 0x287   :  { %6409 = vmatpush3.bf16.msra.mxu1 %v6408_v50  ;;  %v1993_v50 = vld [vmem:[#allocation4 + $0x15d0] sm:$0xff]  ;;  %v1212_v13 = vadd.f32 %v1204_v38, %v1188_v51  ;;  %v1998_v3 = vld [vmem:[#allocation4 + $0x15f8] sm:$0xff] }
 0x288   :  { %6411 = vmatprep.subr.bf16.mxu1 %v6410_v63  ;;  %v6436_v63 = vpack.c.bf16 %v2000_v45, %v1999_v7  ;;  %v2004_v7 = vld [vmem:[#allocation4 + $0x1628] sm:$0xff]  ;;  %v2021_v45 = vld [vmem:[#allocation4 + $0x16b0] sm:$0xff]  ;;  %v6430_v11 = vpack.c.bf16 %v1998_v3, %v1997_v37  ;;  %v1206_v3 = vsel %vm1198_vm3, %v8443_v54, 0.0  ;;  %vm1238_vm3 = vcmp.eq.f32.partialorder %v8445_v62, 6.0 }
 0x289   :  { %6401 = vmatpush3.bf16.msra.mxu0 %v6400_v36  ;;  %v1996_v36 = vld [vmem:[#allocation4 + $0x15e8] sm:$0xff]  ;;  %v2005_v38 = vld [vmem:[#allocation4 + $0x1630] sm:$0xff] }
 0x28a   :  { %6435 = vmatprep.subr.bf16.mxu0 %v6434_v5  ;;  %v2003_v5 = vld [vmem:[#allocation4 + $0x1620] sm:$0xff]  ;;  %v6426_v55 = vpack.c.bf16 %v1996_v36, %v1995_v60  ;;  %v2008_v36 = vld [vmem:[#allocation4 + $0x1648] sm:$0xff] }
 0x28b   :  { %6413 = vmatpush3.bf16.msra.mxu1 %v6412_v59  ;;  %v6422_v59 = vpack.c.bf16 %v1994_v30, %v1993_v50  ;;  %v6444_v12 = vpack.c.bf16 %v2004_v7, %v2003_v5  ;;  %v2006_v30 = vld [vmem:[#allocation4 + $0x1638] sm:$0xff] }
 0x28c   :  { %6415 = vmatprep.subr.bf16.mxu1 %v6414_v21  ;;  %3784 = vmatmul.mubr.f32.vlgmr.msra.gmra.mrb[20].mxu0 %v1207_v19  ;;  %v1977_v21 = vld [vmem:[#allocation4 + $0x1550] sm:$0xff]  ;;  %v2026_v5 = vld [vmem:[#allocation4 + $0x16d8] sm:$0xff] }
 0x28d   :  { %6437 = vmatpush3.bf16.msra.mxu0 %v6436_v63  ;;  %3923 = vmatprep.mubr.f32.mxu0 %v1212_v13  ;;  %v6424_v25 = vpack.c.bf16 %v1978_v34, %v1977_v21  ;;  %v6446_v63 = vpack.c.bf16 %v2022_v56, %v2021_v45  ;;  %v2047_v13 = vld [vmem:[#allocation4 + $0x1780] sm:$0xff]  ;;  %v2048_v34 = vld [vmem:[#allocation4 + $0x1788] sm:$0xff] }
 0x28e   :  { %6439 = vmatprep.subr.bf16.mxu0 %v6438_v23  ;;  %v2023_v23 = vld [vmem:[#allocation4 + $0x16c0] sm:$0xff]  ;;  %v6466_v45 = vpack.c.bf16 %v2048_v34, %v2047_v13 }
 0x28f   :  { %6417 = vmatpush3.bf16.msra.mxu1 %v6416_v20  ;;  %v1979_v20 = vld [vmem:[#allocation4 + $0x1560] sm:$0xff]  ;;  %v6450_v60 = vpack.c.bf16 %v2024_v28, %v2023_v23  ;;  %v1190_v28 = vsel %vm1182_vm14, %v8435_v39, 0.0  ;;  %vm1222_vm14 = vcmp.eq.f32.partialorder %v8428_v32, 6.0 }
 0x290   :  { %6419 = vmatprep.subr.bf16.mxu1 %v6418_v40  ;;  %v1980_v40 = vld [vmem:[#allocation4 + $0x1568] sm:$0xff]  ;;  %v2031_v56 = vld [vmem:[#allocation4 + $0x1700] sm:$0xff]  ;;  %v1214_v13 = vadd.f32 %v1206_v3, %v1190_v28  ;;  %v2014_v3 = vld [vmem:[#allocation4 + $0x1678] sm:$0xff] }
 0x291   :  { %6441 = vmatpush3.bf16.msra.mxu0 %v6440_v4  ;;  %v6428_v51 = vpack.c.bf16 %v1980_v40, %v1979_v20  ;;  %v2007_v4 = vld [vmem:[#allocation4 + $0x1640] sm:$0xff]  ;;  %v1201_v20 = vsel %vm1193_vm5, %v7942_v8, 0.0  ;;  %v2050_v40 = vld [vmem:[#allocation4 + $0x1798] sm:$0xff]  ;;  %v2037_v28 = vld [vmem:[#allocation4 + $0x1730] sm:$0xff]  ;;  %vm1233_vm5 = vcmp.eq.f32.partialorder %v8160_v35, 6.0 }
 0x292   :  { %6443 = vmatprep.subr.bf16.mxu0 %v6442_v52  ;;  %v2025_v52 = vld [vmem:[#allocation4 + $0x16d0] sm:$0xff] }
 0x293   :  { %6421 = vmatpush3.bf16.msra.mxu1 %v6420_v61  ;;  %v1982_v61 = vld [vmem:[#allocation4 + $0x1578] sm:$0xff]  ;;  %v6454_v37 = vpack.c.bf16 %v2026_v5, %v2025_v52  ;;  %v2029_v52 = vld [vmem:[#allocation4 + $0x16f0] sm:$0xff] }
 0x294   :  { %6423 = vmatprep.subr.bf16.mxu1 %v6422_v59  ;;  %v6448_v59 = vpack.c.bf16 %v2006_v30, %v2005_v38  ;;  %v6432_v7 = vpack.c.bf16 %v1982_v61, %v1981_v53  ;;  %v2028_v38 = vld [vmem:[#allocation4 + $0x16e8] sm:$0xff]  ;;  %v1185_v30 = vsel %vm1177_vm15, %v7950_v58, 0.0  ;;  %v2051_v53 = vld [vmem:[#allocation4 + $0x17a0] sm:$0xff]  ;;  %v2030_v5 = vld [vmem:[#allocation4 + $0x16f8] sm:$0xff]  ;;  %vm1217_vm15 = vcmp.eq.f32.partialorder %v8098_v48, 6.0 }
 0x295   :  { %v4887_v50 = vpop.f32.mrb[6].mxu1  ;;  %6445 = vmatpush3.bf16.msra.mxu0 %v6444_v12  ;;  %v2009_v12 = vld [vmem:[#allocation4 + $0x1650] sm:$0xff]  ;;  %v1209_v23 = vadd.f32 %v1201_v20, %v1185_v30  ;;  %v2080_v30 = vld [vmem:[#allocation4 + $0x1888] sm:$0xff] }
 0x296   :  { %v4888_v19 = vpop.f32.mrb[7].mxu1  ;;  %6447 = vmatprep.subr.bf16.mxu0 %v6446_v63  ;;  %v2027_v63 = vld [vmem:[#allocation4 + $0x16e0] sm:$0xff]  ;;  %v2053_v20 = vld [vmem:[#allocation4 + $0x17b0] sm:$0xff] }
 0x297   :  { %v4889_v43 = vadd.f32 %v4888_v19, %v4887_v50  ;;  %6425 = vmatpush3.bf16.msra.mxu1 %v6424_v25  ;;  %v2032_v25 = vld [vmem:[#allocation4 + $0x1708] sm:$0xff]  ;;  %v2010_v50 = vld [vmem:[#allocation4 + $0x1658] sm:$0xff]  ;;  %v6458_v34 = vpack.c.bf16 %v2028_v38, %v2027_v63  ;;  %v2079_v38 = vld [vmem:[#allocation4 + $0x1880] sm:$0xff] }
 0x298   :  { %6427 = vmatprep.subr.bf16.mxu1 %v6426_v55  ;;  %v2049_v55 = vld [vmem:[#allocation4 + $0x1790] sm:$0xff]  ;;  %v6468_v19 = vpack.c.bf16 %v2032_v25, %v2031_v56  ;;  %v6456_v61 = vpack.c.bf16 %v2010_v50, %v2009_v12  ;;  %v2035_v25 = vld [vmem:[#allocation4 + $0x1720] sm:$0xff]  ;;  %v6462_v12 = vpack.c.bf16 %v2030_v5, %v2029_v52  ;;  %v2040_v5 = vld [vmem:[#allocation4 + $0x1748] sm:$0xff] }
 0x299   :  { %v8618_v21 = vadd.f32 %v4889_v43, %v8607_v16  ;;  %6449 = vmatpush3.bf16.msra.mxu0 %v6448_v59  ;;  %v6452_v16 = vpack.c.bf16 %v2008_v36, %v2007_v4  ;;  %v6470_v43 = vpack.c.bf16 %v2050_v40, %v2049_v55  ;;  %v2052_v59 = vld [vmem:[#allocation4 + $0x17a8] sm:$0xff]  ;;  %v2013_v50 = vld [vmem:[#allocation4 + $0x1670] sm:$0xff]  ;;  %v2039_v52 = vld [vmem:[#allocation4 + $0x1740] sm:$0xff] }
 0x29a   :  { %6451 = vmatprep.subr.bf16.mxu0 %v6450_v60  ;;  %v2011_v60 = vld [vmem:[#allocation4 + $0x1660] sm:$0xff]  ;;  %v2012_v4 = vld [vmem:[#allocation4 + $0x1668] sm:$0xff]  ;;  %v6474_v56 = vpack.c.bf16 %v2052_v59, %v2051_v53 }
 0x29b   :  { %6429 = vmatpush3.bf16.msra.mxu1 %v6428_v51  ;;  %v2033_v51 = vld [vmem:[#allocation4 + $0x1710] sm:$0xff]  ;;  %v2036_v55 = vld [vmem:[#allocation4 + $0x1728] sm:$0xff]  ;;  %v6460_v40 = vpack.c.bf16 %v2012_v4, %v2011_v60  ;;  %v2082_v60 = vld [vmem:[#allocation4 + $0x1898] sm:$0xff] }
 0x29c   :  { %6431 = vmatprep.subr.bf16.mxu1 %v6430_v11  ;;  %v2034_v11 = vld [vmem:[#allocation4 + $0x1718] sm:$0xff]  ;;  %v2056_v53 = vld [vmem:[#allocation4 + $0x17c8] sm:$0xff] }
 0x29d   :  { %6453 = vmatpush3.bf16.msra.mxu0 %v6452_v16  ;;  %v2064_v59 = vld [vmem:[#allocation4 + $0x1808] sm:$0xff] }
 0x29e   :  { %6455 = vmatprep.subr.bf16.mxu0 %v6454_v37  ;;  %v2054_v37 = vld [vmem:[#allocation4 + $0x17b8] sm:$0xff] }
 0x29f   :  { %6433 = vmatpush3.bf16.msra.mxu1 %v6432_v7  ;;  %v4922_v36 = vpop.f32.mrb[8].mxu0  ;;  %v6472_v7 = vpack.c.bf16 %v2034_v11, %v2033_v51  ;;  %v2055_v51 = vld [vmem:[#allocation4 + $0x17c0] sm:$0xff]  ;;  %v6464_v11 = vpack.c.bf16 %v2014_v3, %v2013_v50  ;;  %v2084_v3 = vld [vmem:[#allocation4 + $0x18a8] sm:$0xff] }
 0x2a0   :  { %6467 = vmatprep.subr.bf16.mxu1 %v6466_v45  ;;  %v4923_v45 = vpop.f32.mrb[9].mxu0  ;;  %v2083_v50 = vld [vmem:[#allocation4 + $0x18a0] sm:$0xff] }
 0x2a1   :  { %v4924_v16 = vadd.f32 %v4923_v45, %v4922_v36  ;;  %6457 = vmatpush3.bf16.msra.mxu0 %v6456_v61  ;;  %v6498_v61 = vpack.c.bf16 %v2080_v30, %v2079_v38  ;;  %v6482_v36 = vpack.c.bf16 %v2056_v53, %v2055_v51  ;;  %v1187_v45 = vsel %vm1179_vm10, %v8213_v24, 0.0 }
 0x2a2   :  { %3854 = vmatmul.mubr.f32.vlgmr.msra.gmra.mrb[20].mxu1 %v1209_v23  ;;  %6459 = vmatprep.subr.bf16.mxu0 %v6458_v34  ;;  %v6478_v23 = vpack.c.bf16 %v2054_v37, %v2053_v20  ;;  %v2081_v34 = vld [vmem:[#allocation4 + $0x1890] sm:$0xff]  ;;  %v2066_v37 = vld [vmem:[#allocation4 + $0x1818] sm:$0xff]  ;;  %v6484_v38 = vpack.c.bf16 %v2040_v5, %v2039_v52  ;;  %v6506_v53 = vpack.c.bf16 %v2084_v3, %v2083_v50  ;;  %vm1219_vm10 = vcmp.eq.f32.partialorder %v8198_v44, 6.0 }
 0x2a3   :  { %6469 = vmatpush3.bf16.msra.mxu1 %v6468_v19  ;;  %3993 = vmatprep.mubr.f32.mxu1 %v1214_v13  ;;  %v8629_v63 = vadd.f32 %v4924_v16, %v8618_v21  ;;  %v6476_v19 = vpack.c.bf16 %v2036_v55, %v2035_v25  ;;  %v2063_v13 = vld [vmem:[#allocation4 + $0x1800] sm:$0xff]  ;;  %v1203_v21 = vsel %vm1195_vm8, %v8202_v15, 0.0  ;;  %v1240_v25 = vsel %vm1232_vm13, %v7889_v33, 0.0  ;;  %v2058_v55 = vld [vmem:[#allocation4 + $0x17d8] sm:$0xff]  ;;  %v2061_v52 = vld [vmem:[#allocation4 + $0x17f0] sm:$0xff] }
 0x2a4   :  { %6471 = vmatprep.subr.bf16.mxu1 %v6470_v43  ;;  %v2038_v43 = vld [vmem:[#allocation4 + $0x1738] sm:$0xff]  ;;  %v1211_v16 = vadd.f32 %v1203_v21, %v1187_v45  ;;  %v6502_v20 = vpack.c.bf16 %v2082_v60, %v2081_v34  ;;  %v2045_v3 = vld [vmem:[#allocation4 + $0x1770] sm:$0xff]  ;;  %vm1235_vm8 = vcmp.eq.f32.partialorder %v8345_v31, 6.0  ;;  %vm1272_vm13 = vcmp.eq.f32.partialorder %v8024_v47, 7.0 }
 0x2a5   :  { %6461 = vmatpush3.bf16.msra.mxu0 %v6460_v40  ;;  %v6480_v4 = vpack.c.bf16 %v2038_v43, %v2037_v28  ;;  %v2065_v40 = vld [vmem:[#allocation4 + $0x1810] sm:$0xff]  ;;  %v2042_v28 = vld [vmem:[#allocation4 + $0x1758] sm:$0xff]  ;;  %v2059_v43 = vld [vmem:[#allocation4 + $0x17e0] sm:$0xff] }
 0x2a6   :  { %6463 = vmatprep.subr.bf16.mxu0 %v6462_v12  ;;  %v1224_v12 = vsel %vm1216_vm4, %v7900_v49, 0.0  ;;  %v6504_v51 = vpack.c.bf16 %v2066_v37, %v2065_v40  ;;  %v2086_v21 = vld [vmem:[#allocation4 + $0x18b8] sm:$0xff]  ;;  %v2088_v40 = vld [vmem:[#allocation4 + $0x18c8] sm:$0xff]  ;;  %vm1256_vm4 = vcmp.eq.f32.partialorder %v7988_v18, 7.0 }
 0x2a7   :  { %6473 = vmatpush3.bf16.msra.mxu1 %v6472_v7  ;;  %v2057_v7 = vld [vmem:[#allocation4 + $0x17d0] sm:$0xff]  ;;  %v1248_v30 = vadd.f32 %v1240_v25, %v1224_v12  ;;  %v2062_v45 = vld [vmem:[#allocation4 + $0x17f8] sm:$0xff] }
 0x2a8   :  { %6475 = vmatprep.subr.bf16.mxu1 %v6474_v56  ;;  %v6500_v56 = vpack.c.bf16 %v2064_v59, %v2063_v13  ;;  %v2068_v13 = vld [vmem:[#allocation4 + $0x1828] sm:$0xff]  ;;  %v2085_v59 = vld [vmem:[#allocation4 + $0x18b0] sm:$0xff]  ;;  %v6494_v50 = vpack.c.bf16 %v2062_v45, %v2061_v52  ;;  %v1242_v45 = vsel %vm1234_vm12, %v8087_v26, 0.0  ;;  %v2186_v47 = vld [vmem:[#allocation4 + $0x1bd8] sm:$0xff]  ;;  %vm1274_vm12 = vcmp.eq.f32.partialorder %v8108_v1, 7.0 }
 0x2a9   :  { %6465 = vmatpush3.bf16.msra.mxu0 %v6464_v11  ;;  %v2060_v11 = vld [vmem:[#allocation4 + $0x17e8] sm:$0xff]  ;;  %v2069_v25 = vld [vmem:[#allocation4 + $0x1830] sm:$0xff] }
 0x2aa   :  { %6499 = vmatprep.subr.bf16.mxu0 %v6498_v61  ;;  %v2067_v61 = vld [vmem:[#allocation4 + $0x1820] sm:$0xff]  ;;  %v6490_v60 = vpack.c.bf16 %v2060_v11, %v2059_v43  ;;  %v2072_v11 = vld [vmem:[#allocation4 + $0x1848] sm:$0xff] }
 0x2ab   :  { %6477 = vmatpush3.bf16.msra.mxu1 %v6476_v19  ;;  %v6486_v19 = vpack.c.bf16 %v2058_v55, %v2057_v7  ;;  %v6508_v5 = vpack.c.bf16 %v2068_v13, %v2067_v61  ;;  %v2070_v55 = vld [vmem:[#allocation4 + $0x1838] sm:$0xff]  ;;  %v2220_v1 = vld [vmem:[#allocation4 + $0x1ce8] sm:$0xff] }
 0x2ac   :  { %6479 = vmatprep.subr.bf16.mxu1 %v6478_v23  ;;  %3924 = vmatmul.mubr.f32.vlgmr.msra.gmra.mrb[22].mxu0 %v1211_v16  ;;  %v2041_v23 = vld [vmem:[#allocation4 + $0x1750] sm:$0xff]  ;;  %v2090_v61 = vld [vmem:[#allocation4 + $0x18d8] sm:$0xff] }
 0x2ad   :  { %6501 = vmatpush3.bf16.msra.mxu0 %v6500_v56  ;;  %4063 = vmatprep.mubr.f32.mxu0 %v1248_v30  ;;  %v6488_v34 = vpack.c.bf16 %v2042_v28, %v2041_v23  ;;  %v6510_v56 = vpack.c.bf16 %v2086_v21, %v2085_v59  ;;  %v2111_v30 = vld [vmem:[#allocation4 + $0x1980] sm:$0xff]  ;;  %v2112_v28 = vld [vmem:[#allocation4 + $0x1988] sm:$0xff] }
 0x2ae   :  { %6503 = vmatprep.subr.bf16.mxu0 %v6502_v20  ;;  %v2087_v20 = vld [vmem:[#allocation4 + $0x18c0] sm:$0xff]  ;;  %v6530_v59 = vpack.c.bf16 %v2112_v28, %v2111_v30 }
 0x2af   :  { %6481 = vmatpush3.bf16.msra.mxu1 %v6480_v4  ;;  %v2043_v4 = vld [vmem:[#allocation4 + $0x1760] sm:$0xff]  ;;  %v6514_v43 = vpack.c.bf16 %v2088_v40, %v2087_v20  ;;  %v1226_v40 = vsel %vm1218_vm0, %v8014_v17, 0.0  ;;  %vm1258_vm0 = vcmp.eq.f32.partialorder %v8077_v6, 7.0  ;;  %v2222_v6 = vld [vmem:[#allocation4 + $0x1cf8] sm:$0xff] }
 0x2b0   :  { %6483 = vmatprep.subr.bf16.mxu1 %v6482_v36  ;;  %v2044_v36 = vld [vmem:[#allocation4 + $0x1768] sm:$0xff]  ;;  %v2095_v21 = vld [vmem:[#allocation4 + $0x1900] sm:$0xff]  ;;  %v1250_v30 = vadd.f32 %v1242_v45, %v1226_v40  ;;  %v2078_v45 = vld [vmem:[#allocation4 + $0x1878] sm:$0xff] }
 0x2b1   :  { %6505 = vmatpush3.bf16.msra.mxu0 %v6504_v51  ;;  %v6492_v12 = vpack.c.bf16 %v2044_v36, %v2043_v4  ;;  %v2071_v51 = vld [vmem:[#allocation4 + $0x1840] sm:$0xff]  ;;  %v1205_v4 = vsel %vm1197_vm7, %v8440_v57, 0.0  ;;  %v2114_v36 = vld [vmem:[#allocation4 + $0x1998] sm:$0xff]  ;;  %v2101_v40 = vld [vmem:[#allocation4 + $0x1930] sm:$0xff]  ;;  %vm1237_vm7 = vcmp.eq.f32.partialorder %v8431_v46, 6.0 }
 0x2b2   :  { %6507 = vmatprep.subr.bf16.mxu0 %v6506_v53  ;;  %v2089_v53 = vld [vmem:[#allocation4 + $0x18d0] sm:$0xff] }
 0x2b3   :  { %6485 = vmatpush3.bf16.msra.mxu1 %v6484_v38  ;;  %v2046_v38 = vld [vmem:[#allocation4 + $0x1778] sm:$0xff]  ;;  %v6518_v52 = vpack.c.bf16 %v2090_v61, %v2089_v53  ;;  %v2093_v53 = vld [vmem:[#allocation4 + $0x18f0] sm:$0xff] }
 0x2b4   :  { %6487 = vmatprep.subr.bf16.mxu1 %v6486_v19  ;;  %v6512_v19 = vpack.c.bf16 %v2070_v55, %v2069_v25  ;;  %v6496_v13 = vpack.c.bf16 %v2046_v38, %v2045_v3  ;;  %v2092_v25 = vld [vmem:[#allocation4 + $0x18e8] sm:$0xff]  ;;  %v1189_v55 = vsel %vm1181_vm1, %v8438_v9, 0.0  ;;  %v2115_v3 = vld [vmem:[#allocation4 + $0x19a0] sm:$0xff]  ;;  %v2094_v61 = vld [vmem:[#allocation4 + $0x18f8] sm:$0xff]  ;;  %vm1221_vm1 = vcmp.eq.f32.partialorder %v8398_v0, 6.0 }
 0x2b5   :  { %v4957_v7 = vpop.f32.mrb[8].mxu1  ;;  %6509 = vmatpush3.bf16.msra.mxu0 %v6508_v5  ;;  %v2073_v5 = vld [vmem:[#allocation4 + $0x1850] sm:$0xff]  ;;  %v1213_v20 = vadd.f32 %v1205_v4, %v1189_v55  ;;  %v2144_v55 = vld [vmem:[#allocation4 + $0x1a88] sm:$0xff] }
 0x2b6   :  { %v4958_v16 = vpop.f32.mrb[9].mxu1  ;;  %6511 = vmatprep.subr.bf16.mxu0 %v6510_v56  ;;  %v2091_v56 = vld [vmem:[#allocation4 + $0x18e0] sm:$0xff]  ;;  %v2117_v4 = vld [vmem:[#allocation4 + $0x19b0] sm:$0xff] }
 0x2b7   :  { %v4959_v37 = vadd.f32 %v4958_v16, %v4957_v7  ;;  %6489 = vmatpush3.bf16.msra.mxu1 %v6488_v34  ;;  %v2096_v34 = vld [vmem:[#allocation4 + $0x1908] sm:$0xff]  ;;  %v2074_v7 = vld [vmem:[#allocation4 + $0x1858] sm:$0xff]  ;;  %v6522_v28 = vpack.c.bf16 %v2092_v25, %v2091_v56  ;;  %v2143_v25 = vld [vmem:[#allocation4 + $0x1a80] sm:$0xff] }
 0x2b8   :  { %6491 = vmatprep.subr.bf16.mxu1 %v6490_v60  ;;  %v2113_v60 = vld [vmem:[#allocation4 + $0x1990] sm:$0xff]  ;;  %v6532_v16 = vpack.c.bf16 %v2096_v34, %v2095_v21  ;;  %v6520_v38 = vpack.c.bf16 %v2074_v7, %v2073_v5  ;;  %v2099_v34 = vld [vmem:[#allocation4 + $0x1920] sm:$0xff]  ;;  %v6526_v5 = vpack.c.bf16 %v2094_v61, %v2093_v53  ;;  %v2104_v61 = vld [vmem:[#allocation4 + $0x1948] sm:$0xff] }
 0x2b9   :  { %v8640_v23 = vadd.f32 %v4959_v37, %v8629_v63  ;;  %6513 = vmatpush3.bf16.msra.mxu0 %v6512_v19  ;;  %v6516_v63 = vpack.c.bf16 %v2072_v11, %v2071_v51  ;;  %v6534_v37 = vpack.c.bf16 %v2114_v36, %v2113_v60  ;;  %v2116_v19 = vld [vmem:[#allocation4 + $0x19a8] sm:$0xff]  ;;  %v2077_v7 = vld [vmem:[#allocation4 + $0x1870] sm:$0xff]  ;;  %v2103_v53 = vld [vmem:[#allocation4 + $0x1940] sm:$0xff] }
 0x2ba   :  { %6515 = vmatprep.subr.bf16.mxu0 %v6514_v43  ;;  %v2075_v43 = vld [vmem:[#allocation4 + $0x1860] sm:$0xff]  ;;  %v2076_v51 = vld [vmem:[#allocation4 + $0x1868] sm:$0xff]  ;;  %v6538_v21 = vpack.c.bf16 %v2116_v19, %v2115_v3 }
 0x2bb   :  { %6493 = vmatpush3.bf16.msra.mxu1 %v6492_v12  ;;  %v2097_v12 = vld [vmem:[#allocation4 + $0x1910] sm:$0xff]  ;;  %v2100_v60 = vld [vmem:[#allocation4 + $0x1928] sm:$0xff]  ;;  %v6524_v36 = vpack.c.bf16 %v2076_v51, %v2075_v43  ;;  %v2146_v43 = vld [vmem:[#allocation4 + $0x1a98] sm:$0xff] }
 0x2bc   :  { %6495 = vmatprep.subr.bf16.mxu1 %v6494_v50  ;;  %v2098_v50 = vld [vmem:[#allocation4 + $0x1918] sm:$0xff]  ;;  %v2120_v3 = vld [vmem:[#allocation4 + $0x19c8] sm:$0xff] }
 0x2bd   :  { %6517 = vmatpush3.bf16.msra.mxu0 %v6516_v63  ;;  %v2128_v19 = vld [vmem:[#allocation4 + $0x1a08] sm:$0xff] }
 0x2be   :  { %6519 = vmatprep.subr.bf16.mxu0 %v6518_v52  ;;  %v2118_v52 = vld [vmem:[#allocation4 + $0x19b8] sm:$0xff] }
 0x2bf   :  { %6497 = vmatpush3.bf16.msra.mxu1 %v6496_v13  ;;  %v4992_v11 = vpop.f32.mrb[10].mxu0  ;;  %v6536_v13 = vpack.c.bf16 %v2098_v50, %v2097_v12  ;;  %v2119_v12 = vld [vmem:[#allocation4 + $0x19c0] sm:$0xff]  ;;  %v6528_v50 = vpack.c.bf16 %v2078_v45, %v2077_v7  ;;  %v2148_v45 = vld [vmem:[#allocation4 + $0x1aa8] sm:$0xff] }
 0x2c0   :  { %6531 = vmatprep.subr.bf16.mxu1 %v6530_v59  ;;  %v4993_v59 = vpop.f32.mrb[11].mxu0  ;;  %v2147_v7 = vld [vmem:[#allocation4 + $0x1aa0] sm:$0xff] }
 0x2c1   :  { %v4994_v63 = vadd.f32 %v4993_v59, %v4992_v11  ;;  %6521 = vmatpush3.bf16.msra.mxu0 %v6520_v38  ;;  %v6562_v38 = vpack.c.bf16 %v2144_v55, %v2143_v25  ;;  %v6546_v11 = vpack.c.bf16 %v2120_v3, %v2119_v12  ;;  %v1223_v59 = vsel %vm1215_vm9, %v8885_v22, 0.0 }
 0x2c2   :  { %3994 = vmatmul.mubr.f32.vlgmr.msra.gmra.mrb[22].mxu1 %v1213_v20  ;;  %6523 = vmatprep.subr.bf16.mxu0 %v6522_v28  ;;  %v6542_v20 = vpack.c.bf16 %v2118_v52, %v2117_v4  ;;  %v2145_v28 = vld [vmem:[#allocation4 + $0x1a90] sm:$0xff]  ;;  %v2130_v52 = vld [vmem:[#allocation4 + $0x1a18] sm:$0xff]  ;;  %v6548_v25 = vpack.c.bf16 %v2104_v61, %v2103_v53  ;;  %v6570_v3 = vpack.c.bf16 %v2148_v45, %v2147_v7  ;;  %vm1255_vm9 = vcmp.eq.f32.partialorder %v8884_v2, 7.0 }
 0x2c3   :  { %6533 = vmatpush3.bf16.msra.mxu1 %v6532_v16  ;;  %4133 = vmatprep.mubr.f32.mxu1 %v1250_v30  ;;  %v8651_v56 = vadd.f32 %v4994_v63, %v8640_v23  ;;  %v6540_v16 = vpack.c.bf16 %v2100_v60, %v2099_v34  ;;  %v2127_v30 = vld [vmem:[#allocation4 + $0x1a00] sm:$0xff]  ;;  %v1239_v23 = vsel %vm1231_vm2, %v7892_v27, 0.0  ;;  %v1244_v34 = vsel %vm1236_vm6, %v8321_v29, 0.0  ;;  %v2122_v60 = vld [vmem:[#allocation4 + $0x19d8] sm:$0xff]  ;;  %v2125_v53 = vld [vmem:[#allocation4 + $0x19f0] sm:$0xff] }
 0x2c4   :  { %6535 = vmatprep.subr.bf16.mxu1 %v6534_v37  ;;  %v2102_v37 = vld [vmem:[#allocation4 + $0x1938] sm:$0xff]  ;;  %v1247_v63 = vadd.f32 %v1239_v23, %v1223_v59  ;;  %v6566_v4 = vpack.c.bf16 %v2146_v43, %v2145_v28  ;;  %v2109_v45 = vld [vmem:[#allocation4 + $0x1970] sm:$0xff]  ;;  %vm1271_vm2 = vcmp.eq.f32.partialorder %v8048_v14, 7.0  ;;  %vm1276_vm6 = vcmp.eq.f32.partialorder %v8351_v10, 7.0 }
 0x2c5   :  { %6525 = vmatpush3.bf16.msra.mxu0 %v6524_v36  ;;  %v6544_v51 = vpack.c.bf16 %v2102_v37, %v2101_v40  ;;  %v2129_v36 = vld [vmem:[#allocation4 + $0x1a10] sm:$0xff]  ;;  %v2106_v40 = vld [vmem:[#allocation4 + $0x1958] sm:$0xff]  ;;  %v2123_v37 = vld [vmem:[#allocation4 + $0x19e0] sm:$0xff] }
 0x2c6   :  { %6527 = vmatprep.subr.bf16.mxu0 %v6526_v5  ;;  %v1228_v5 = vsel %vm1220_vm11, %v8335_v41, 0.0  ;;  %v6568_v12 = vpack.c.bf16 %v2130_v52, %v2129_v36  ;;  %v2150_v23 = vld [vmem:[#allocation4 + $0x1ab8] sm:$0xff]  ;;  %v2152_v36 = vld [vmem:[#allocation4 + $0x1ac8] sm:$0xff]  ;;  %vm1260_vm11 = vcmp.eq.f32.partialorder %v8318_v42, 7.0 }
 0x2c7   :  { %6537 = vmatpush3.bf16.msra.mxu1 %v6536_v13  ;;  %v2121_v13 = vld [vmem:[#allocation4 + $0x19d0] sm:$0xff]  ;;  %v1252_v55 = vadd.f32 %v1244_v34, %v1228_v5  ;;  %v2126_v59 = vld [vmem:[#allocation4 + $0x19f8] sm:$0xff]  ;;  %v1268_v2 = vsel %vm1260_vm11, %v8335_v41, 0.0 }
 0x2c8   :  { %6539 = vmatprep.subr.bf16.mxu1 %v6538_v21  ;;  %v6564_v21 = vpack.c.bf16 %v2128_v19, %v2127_v30  ;;  %v2132_v30 = vld [vmem:[#allocation4 + $0x1a28] sm:$0xff]  ;;  %v2149_v19 = vld [vmem:[#allocation4 + $0x1ab0] sm:$0xff]  ;;  %v6558_v7 = vpack.c.bf16 %v2126_v59, %v2125_v53  ;;  %v1246_v59 = vsel %vm1238_vm3, %v8443_v54, 0.0  ;;  %v2250_v10 = vld [vmem:[#allocation4 + $0x1dd8] sm:$0xff]  ;;  %vm1278_vm3 = vcmp.eq.f32.partialorder %v8445_v62, 7.0 }
 0x2c9   :  { %6529 = vmatpush3.bf16.msra.mxu0 %v6528_v50  ;;  %v2124_v50 = vld [vmem:[#allocation4 + $0x19e8] sm:$0xff]  ;;  %v2133_v34 = vld [vmem:[#allocation4 + $0x1a30] sm:$0xff] }
 0x2ca   :  { %6563 = vmatprep.subr.bf16.mxu0 %v6562_v38  ;;  %v2131_v38 = vld [vmem:[#allocation4 + $0x1a20] sm:$0xff]  ;;  %v6554_v43 = vpack.c.bf16 %v2124_v50, %v2123_v37  ;;  %v2136_v50 = vld [vmem:[#allocation4 + $0x1a48] sm:$0xff]  ;;  %v2277_v41 = vld [vmem:[#allocation4 + $0x1eb0] sm:$0xff] }
 0x2cb   :  { %6541 = vmatpush3.bf16.msra.mxu1 %v6540_v16  ;;  %v6550_v16 = vpack.c.bf16 %v2122_v60, %v2121_v13  ;;  %v6572_v61 = vpack.c.bf16 %v2132_v30, %v2131_v38  ;;  %v2134_v60 = vld [vmem:[#allocation4 + $0x1a38] sm:$0xff]  ;;  %v2284_v62 = vld [vmem:[#allocation4 + $0x1ee8] sm:$0xff] }
 0x2cc   :  { %6543 = vmatprep.subr.bf16.mxu1 %v6542_v20  ;;  %4064 = vmatmul.mubr.f32.vlgmr.msra.gmra.mrb[24].mxu0 %v1247_v63  ;;  %v2105_v20 = vld [vmem:[#allocation4 + $0x1950] sm:$0xff]  ;;  %v2154_v38 = vld [vmem:[#allocation4 + $0x1ad8] sm:$0xff] }
 0x2cd   :  { %6565 = vmatpush3.bf16.msra.mxu0 %v6564_v21  ;;  %4203 = vmatprep.mubr.f32.mxu0 %v1252_v55  ;;  %v6552_v28 = vpack.c.bf16 %v2106_v40, %v2105_v20  ;;  %v6574_v21 = vpack.c.bf16 %v2150_v23, %v2149_v19  ;;  %v2175_v55 = vld [vmem:[#allocation4 + $0x1b80] sm:$0xff]  ;;  %v2176_v40 = vld [vmem:[#allocation4 + $0x1b88] sm:$0xff] }
 0x2ce   :  { %6567 = vmatprep.subr.bf16.mxu0 %v6566_v4  ;;  %v2151_v4 = vld [vmem:[#allocation4 + $0x1ac0] sm:$0xff]  ;;  %v6594_v19 = vpack.c.bf16 %v2176_v40, %v2175_v55 }
 0x2cf   :  { %6545 = vmatpush3.bf16.msra.mxu1 %v6544_v51  ;;  %v2107_v51 = vld [vmem:[#allocation4 + $0x1960] sm:$0xff]  ;;  %v6578_v37 = vpack.c.bf16 %v2152_v36, %v2151_v4  ;;  %v1230_v36 = vsel %vm1222_vm14, %v8435_v39, 0.0  ;;  %vm1262_vm14 = vcmp.eq.f32.partialorder %v8428_v32, 7.0  ;;  %v2286_v32 = vld [vmem:[#allocation4 + $0x1ef8] sm:$0xff] }
 0x2d0   :  { %6547 = vmatprep.subr.bf16.mxu1 %v6546_v11  ;;  %v2108_v11 = vld [vmem:[#allocation4 + $0x1968] sm:$0xff]  ;;  %v2159_v23 = vld [vmem:[#allocation4 + $0x1b00] sm:$0xff]  ;;  %v1254_v55 = vadd.f32 %v1246_v59, %v1230_v36  ;;  %v2142_v59 = vld [vmem:[#allocation4 + $0x1a78] sm:$0xff] }
 0x2d1   :  { %6569 = vmatpush3.bf16.msra.mxu0 %v6568_v12  ;;  %v6556_v5 = vpack.c.bf16 %v2108_v11, %v2107_v51  ;;  %v2135_v12 = vld [vmem:[#allocation4 + $0x1a40] sm:$0xff]  ;;  %v1241_v51 = vsel %vm1233_vm5, %v7942_v8, 0.0  ;;  %v2178_v11 = vld [vmem:[#allocation4 + $0x1b98] sm:$0xff]  ;;  %v2165_v36 = vld [vmem:[#allocation4 + $0x1b30] sm:$0xff]  ;;  %vm1273_vm5 = vcmp.eq.f32.partialorder %v8160_v35, 7.0 }
 0x2d2   :  { %6571 = vmatprep.subr.bf16.mxu0 %v6570_v3  ;;  %v2153_v3 = vld [vmem:[#allocation4 + $0x1ad0] sm:$0xff]  ;;  %v2266_v35 = vld [vmem:[#allocation4 + $0x1e58] sm:$0xff] }
 0x2d3   :  { %6549 = vmatpush3.bf16.msra.mxu1 %v6548_v25  ;;  %v2110_v25 = vld [vmem:[#allocation4 + $0x1978] sm:$0xff]  ;;  %v6582_v53 = vpack.c.bf16 %v2154_v38, %v2153_v3  ;;  %v2157_v3 = vld [vmem:[#allocation4 + $0x1af0] sm:$0xff] }
 0x2d4   :  { %6551 = vmatprep.subr.bf16.mxu1 %v6550_v16  ;;  %v6576_v16 = vpack.c.bf16 %v2134_v60, %v2133_v34  ;;  %v6560_v30 = vpack.c.bf16 %v2110_v25, %v2109_v45  ;;  %v2156_v34 = vld [vmem:[#allocation4 + $0x1ae8] sm:$0xff]  ;;  %v1225_v60 = vsel %vm1217_vm15, %v7950_v58, 0.0  ;;  %v2179_v45 = vld [vmem:[#allocation4 + $0x1ba0] sm:$0xff]  ;;  %v2158_v38 = vld [vmem:[#allocation4 + $0x1af8] sm:$0xff]  ;;  %vm1257_vm15 = vcmp.eq.f32.partialorder %v8098_v48, 7.0 }
 0x2d5   :  { %v5027_v13 = vpop.f32.mrb[10].mxu1  ;;  %6573 = vmatpush3.bf16.msra.mxu0 %v6572_v61  ;;  %v2137_v61 = vld [vmem:[#allocation4 + $0x1a50] sm:$0xff]  ;;  %v1249_v4 = vadd.f32 %v1241_v51, %v1225_v60  ;;  %v2208_v60 = vld [vmem:[#allocation4 + $0x1c88] sm:$0xff] }
 0x2d6   :  { %v5028_v63 = vpop.f32.mrb[11].mxu1  ;;  %6575 = vmatprep.subr.bf16.mxu0 %v6574_v21  ;;  %v2155_v21 = vld [vmem:[#allocation4 + $0x1ae0] sm:$0xff]  ;;  %v2181_v51 = vld [vmem:[#allocation4 + $0x1bb0] sm:$0xff] }
 0x2d7   :  { %v5029_v52 = vadd.f32 %v5028_v63, %v5027_v13  ;;  %6553 = vmatpush3.bf16.msra.mxu1 %v6552_v28  ;;  %v2160_v28 = vld [vmem:[#allocation4 + $0x1b08] sm:$0xff]  ;;  %v2138_v13 = vld [vmem:[#allocation4 + $0x1a58] sm:$0xff]  ;;  %v6586_v40 = vpack.c.bf16 %v2156_v34, %v2155_v21  ;;  %v2207_v34 = vld [vmem:[#allocation4 + $0x1c80] sm:$0xff] }
 0x2d8   :  { %6555 = vmatprep.subr.bf16.mxu1 %v6554_v43  ;;  %v2177_v43 = vld [vmem:[#allocation4 + $0x1b90] sm:$0xff]  ;;  %v6596_v63 = vpack.c.bf16 %v2160_v28, %v2159_v23  ;;  %v6584_v25 = vpack.c.bf16 %v2138_v13, %v2137_v61  ;;  %v2163_v28 = vld [vmem:[#allocation4 + $0x1b20] sm:$0xff]  ;;  %v6590_v61 = vpack.c.bf16 %v2158_v38, %v2157_v3  ;;  %v2168_v38 = vld [vmem:[#allocation4 + $0x1b48] sm:$0xff] }
 0x2d9   :  { %v8662_v20 = vadd.f32 %v5029_v52, %v8651_v56  ;;  %6577 = vmatpush3.bf16.msra.mxu0 %v6576_v16  ;;  %v6580_v56 = vpack.c.bf16 %v2136_v50, %v2135_v12  ;;  %v6598_v52 = vpack.c.bf16 %v2178_v11, %v2177_v43  ;;  %v2180_v16 = vld [vmem:[#allocation4 + $0x1ba8] sm:$0xff]  ;;  %v2141_v13 = vld [vmem:[#allocation4 + $0x1a70] sm:$0xff]  ;;  %v2167_v3 = vld [vmem:[#allocation4 + $0x1b40] sm:$0xff] }
 0x2da   :  { %6579 = vmatprep.subr.bf16.mxu0 %v6578_v37  ;;  %v2139_v37 = vld [vmem:[#allocation4 + $0x1a60] sm:$0xff]  ;;  %v2140_v12 = vld [vmem:[#allocation4 + $0x1a68] sm:$0xff]  ;;  %v6602_v23 = vpack.c.bf16 %v2180_v16, %v2179_v45 }
 0x2db   :  { %6557 = vmatpush3.bf16.msra.mxu1 %v6556_v5  ;;  %v2161_v5 = vld [vmem:[#allocation4 + $0x1b10] sm:$0xff]  ;;  %v2164_v43 = vld [vmem:[#allocation4 + $0x1b28] sm:$0xff]  ;;  %v6588_v11 = vpack.c.bf16 %v2140_v12, %v2139_v37  ;;  %v2210_v37 = vld [vmem:[#allocation4 + $0x1c98] sm:$0xff] }
 0x2dc   :  { %6559 = vmatprep.subr.bf16.mxu1 %v6558_v7  ;;  %v2162_v7 = vld [vmem:[#allocation4 + $0x1b18] sm:$0xff]  ;;  %v2184_v45 = vld [vmem:[#allocation4 + $0x1bc8] sm:$0xff] }
 0x2dd   :  { %6581 = vmatpush3.bf16.msra.mxu0 %v6580_v56  ;;  %v2192_v16 = vld [vmem:[#allocation4 + $0x1c08] sm:$0xff] }
 0x2de   :  { %6583 = vmatprep.subr.bf16.mxu0 %v6582_v53  ;;  %v2182_v53 = vld [vmem:[#allocation4 + $0x1bb8] sm:$0xff] }
 0x2df   :  { %6561 = vmatpush3.bf16.msra.mxu1 %v6560_v30  ;;  %v5062_v50 = vpop.f32.mrb[12].mxu0  ;;  %v6600_v30 = vpack.c.bf16 %v2162_v7, %v2161_v5  ;;  %v2183_v5 = vld [vmem:[#allocation4 + $0x1bc0] sm:$0xff]  ;;  %v6592_v7 = vpack.c.bf16 %v2142_v59, %v2141_v13  ;;  %v2212_v13 = vld [vmem:[#allocation4 + $0x1ca8] sm:$0xff]  ;;  %v6612_v59 = vpack.c.bf16 %v2168_v38, %v2167_v3  ;;  %v2197_v38 = vld [vmem:[#allocation4 + $0x1c30] sm:$0xff] }
 0x2e0   :  { %6595 = vmatprep.subr.bf16.mxu1 %v6594_v19  ;;  %v5063_v19 = vpop.f32.mrb[13].mxu0 }
 0x2e1   :  { %v5064_v56 = vadd.f32 %v5063_v19, %v5062_v50  ;;  %6585 = vmatpush3.bf16.msra.mxu0 %v6584_v25  ;;  %v6626_v25 = vpack.c.bf16 %v2208_v60, %v2207_v34  ;;  %v6610_v50 = vpack.c.bf16 %v2184_v45, %v2183_v5  ;;  %v1227_v19 = vsel %vm1219_vm10, %v8213_v24, 0.0  ;;  %v2195_v5 = vld [vmem:[#allocation4 + $0x1c20] sm:$0xff]  ;;  %v2214_v45 = vld [vmem:[#allocation4 + $0x1cb8] sm:$0xff] }
 0x2e2   :  { %4134 = vmatmul.mubr.f32.vlgmr.msra.gmra.mrb[24].mxu1 %v1249_v4  ;;  %6587 = vmatprep.subr.bf16.mxu0 %v6586_v40  ;;  %v6606_v4 = vpack.c.bf16 %v2182_v53, %v2181_v51  ;;  %v2209_v40 = vld [vmem:[#allocation4 + $0x1c90] sm:$0xff]  ;;  %v1264_v53 = vsel %vm1256_vm4, %v7900_v49, 0.0  ;;  %vm1277_vm10 = vcmp.eq.f32.partialorder %v8431_v46, 7.0  ;;  %vm1261_vm4 = vcmp.eq.f32.partialorder %v8398_v0, 7.0 }
 0x2e3   :  { %6597 = vmatpush3.bf16.msra.mxu1 %v6596_v63  ;;  %4273 = vmatprep.mubr.f32.mxu1 %v1254_v55  ;;  %v8673_v21 = vadd.f32 %v5064_v56, %v8662_v20  ;;  %v6604_v63 = vpack.c.bf16 %v2164_v43, %v2163_v28  ;;  %v2191_v55 = vld [vmem:[#allocation4 + $0x1c00] sm:$0xff]  ;;  %v1243_v20 = vsel %vm1235_vm8, %v8202_v15, 0.0  ;;  %v1280_v28 = vsel %vm1272_vm13, %v7889_v33, 0.0  ;;  %v2193_v51 = vld [vmem:[#allocation4 + $0x1c10] sm:$0xff]  ;;  %v2170_v33 = vld [vmem:[#allocation4 + $0x1b58] sm:$0xff] }
 0x2e4   :  { %6599 = vmatprep.subr.bf16.mxu1 %v6598_v52  ;;  %v2166_v52 = vld [vmem:[#allocation4 + $0x1b38] sm:$0xff]  ;;  %v1251_v43 = vadd.f32 %v1243_v20, %v1227_v19  ;;  %v6630_v56 = vpack.c.bf16 %v2210_v37, %v2209_v40  ;;  %v1288_v34 = vadd.f32 %v1280_v28, %v1264_v53  ;;  %v2213_v49 = vld [vmem:[#allocation4 + $0x1cb0] sm:$0xff]  ;;  %v2172_v20 = vld [vmem:[#allocation4 + $0x1b68] sm:$0xff]  ;;  %vm1275_vm8 = vcmp.eq.f32.partialorder %v8345_v31, 7.0 }
 0x2e5   :  { %6589 = vmatpush3.bf16.msra.mxu0 %v6588_v11  ;;  %v6608_v12 = vpack.c.bf16 %v2166_v52, %v2165_v36  ;;  %v2194_v11 = vld [vmem:[#allocation4 + $0x1c18] sm:$0xff]  ;;  %v2188_v52 = vld [vmem:[#allocation4 + $0x1be8] sm:$0xff]  ;;  %v2189_v40 = vld [vmem:[#allocation4 + $0x1bf0] sm:$0xff]  ;;  %v6638_v3 = vpack.c.bf16 %v2214_v45, %v2213_v49  ;;  %v1245_v49 = vsel %vm1237_vm7, %v8440_v57, 0.0  ;;  %vm1259_vm13 = vcmp.eq.f32.partialorder %v8198_v44, 7.0 }
 0x2e6   :  { %6591 = vmatprep.subr.bf16.mxu0 %v6590_v61  ;;  %v2211_v61 = vld [vmem:[#allocation4 + $0x1ca0] sm:$0xff]  ;;  %v6632_v36 = vpack.c.bf16 %v2194_v11, %v2193_v51  ;;  %v2216_v28 = vld [vmem:[#allocation4 + $0x1cc8] sm:$0xff]  ;;  %v2173_v51 = vld [vmem:[#allocation4 + $0x1b70] sm:$0xff]  ;;  %v1267_v31 = vsel %vm1259_vm13, %v8213_v24, 0.0 }
 0x2e7   :  { %6601 = vmatpush3.bf16.msra.mxu1 %v6600_v30  ;;  %v2185_v30 = vld [vmem:[#allocation4 + $0x1bd0] sm:$0xff]  ;;  %v6634_v18 = vpack.c.bf16 %v2212_v13, %v2211_v61  ;;  %v2174_v11 = vld [vmem:[#allocation4 + $0x1b78] sm:$0xff]  ;;  %v2239_v53 = vld [vmem:[#allocation4 + $0x1d80] sm:$0xff] }
 0x2e8   :  { %6603 = vmatprep.subr.bf16.mxu1 %v6602_v23  ;;  %v6628_v23 = vpack.c.bf16 %v2192_v16, %v2191_v55  ;;  %v6614_v60 = vpack.c.bf16 %v2186_v47, %v2185_v30  ;;  %v2171_v16 = vld [vmem:[#allocation4 + $0x1b60] sm:$0xff]  ;;  %v2198_v30 = vld [vmem:[#allocation4 + $0x1c38] sm:$0xff]  ;;  %v2317_v24 = vld [vmem:[#allocation4 + $0x1ff0] sm:$0xff] }
 0x2e9   :  { %6593 = vmatpush3.bf16.msra.mxu0 %v6592_v7  ;;  %v2196_v7 = vld [vmem:[#allocation4 + $0x1c28] sm:$0xff]  ;;  %v6640_v61 = vpack.c.bf16 %v2198_v30, %v2197_v38  ;;  %v2242_v45 = vld [vmem:[#allocation4 + $0x1d98] sm:$0xff]  ;;  %v2225_v30 = vld [vmem:[#allocation4 + $0x1d10] sm:$0xff] }
 0x2ea   :  { %6627 = vmatprep.subr.bf16.mxu0 %v6626_v25  ;;  %v6636_v37 = vpack.c.bf16 %v2196_v7, %v2195_v5  ;;  %v2224_v5 = vld [vmem:[#allocation4 + $0x1d08] sm:$0xff]  ;;  %v2241_v7 = vld [vmem:[#allocation4 + $0x1d90] sm:$0xff] }
 0x2eb   :  { %6605 = vmatpush3.bf16.msra.mxu1 %v6604_v63  ;;  %v2169_v63 = vld [vmem:[#allocation4 + $0x1b50] sm:$0xff]  ;;  %v6662_v38 = vpack.c.bf16 %v2242_v45, %v2241_v7 }
 0x2ec   :  { %6607 = vmatprep.subr.bf16.mxu1 %v6606_v4  ;;  %4204 = vmatmul.mubr.f32.vlgmr.msra.gmra.mrb[26].mxu0 %v1251_v43  ;;  %v2187_v4 = vld [vmem:[#allocation4 + $0x1be0] sm:$0xff]  ;;  %v6616_v25 = vpack.c.bf16 %v2170_v33, %v2169_v63  ;;  %v6620_v43 = vpack.c.bf16 %v2172_v20, %v2171_v16  ;;  %v2200_v63 = vld [vmem:[#allocation4 + $0x1c48] sm:$0xff]  ;;  %v2217_v33 = vld [vmem:[#allocation4 + $0x1cd0] sm:$0xff]  ;;  %v1282_v20 = vsel %vm1274_vm12, %v8087_v26, 0.0 }
 0x2ed   :  { %6629 = vmatpush3.bf16.msra.mxu0 %v6628_v23  ;;  %4343 = vmatprep.mubr.f32.mxu0 %v1288_v34  ;;  %v6618_v55 = vpack.c.bf16 %v2188_v52, %v2187_v4  ;;  %v2215_v23 = vld [vmem:[#allocation4 + $0x1cc0] sm:$0xff]  ;;  %v2218_v4 = vld [vmem:[#allocation4 + $0x1cd8] sm:$0xff]  ;;  %v2244_v26 = vld [vmem:[#allocation4 + $0x1da8] sm:$0xff] }
 0x2ee   :  { %6631 = vmatprep.subr.bf16.mxu0 %v6630_v56  ;;  %v6642_v34 = vpack.c.bf16 %v2216_v28, %v2215_v23  ;;  %v2202_v16 = vld [vmem:[#allocation4 + $0x1c58] sm:$0xff]  ;;  %v2243_v23 = vld [vmem:[#allocation4 + $0x1da0] sm:$0xff] }
 0x2ef   :  { %6609 = vmatpush3.bf16.msra.mxu1 %v6608_v12 }
 0x2f0   :  { %6611 = vmatprep.subr.bf16.mxu1 %v6610_v50  ;;  %v2190_v50 = vld [vmem:[#allocation4 + $0x1bf8] sm:$0xff] }
 0x2f1   :  { %6633 = vmatpush3.bf16.msra.mxu0 %v6632_v36  ;;  %v6622_v56 = vpack.c.bf16 %v2190_v50, %v2189_v40  ;;  %v6624_v36 = vpack.c.bf16 %v2174_v11, %v2173_v51  ;;  %v2219_v40 = vld [vmem:[#allocation4 + $0x1ce0] sm:$0xff]  ;;  %v2204_v51 = vld [vmem:[#allocation4 + $0x1c68] sm:$0xff] }
 0x2f2   :  { %6635 = vmatprep.subr.bf16.mxu0 %v6634_v18  ;;  %v2223_v18 = vld [vmem:[#allocation4 + $0x1d00] sm:$0xff] }
 0x2f3   :  { %6613 = vmatpush3.bf16.msra.mxu1 %v6612_v59  ;;  %v2240_v59 = vld [vmem:[#allocation4 + $0x1d88] sm:$0xff] }
 0x2f4   :  { %6615 = vmatprep.subr.bf16.mxu1 %v6614_v60  ;;  %v2199_v60 = vld [vmem:[#allocation4 + $0x1c40] sm:$0xff]  ;;  %v6658_v52 = vpack.c.bf16 %v2240_v59, %v2239_v53  ;;  %v2221_v53 = vld [vmem:[#allocation4 + $0x1cf0] sm:$0xff]  ;;  %v6666_v59 = vpack.c.bf16 %v2244_v26, %v2243_v23  ;;  %v2232_v23 = vld [vmem:[#allocation4 + $0x1d48] sm:$0xff] }
 0x2f5   :  { %v5097_v12 = vpop.f32.mrb[12].mxu1  ;;  %6637 = vmatpush3.bf16.msra.mxu0 %v6636_v37  ;;  %v1229_v37 = vsel %vm1221_vm1, %v8438_v9, 0.0 }
 0x2f6   :  { %v5098_v19 = vpop.f32.mrb[13].mxu1  ;;  %6639 = vmatprep.subr.bf16.mxu0 %v6638_v3  ;;  %v1253_v50 = vadd.f32 %v1245_v49, %v1229_v37  ;;  %v1266_v3 = vsel %vm1258_vm0, %v8014_v17, 0.0  ;;  %v2272_v49 = vld [vmem:[#allocation4 + $0x1e88] sm:$0xff] }
 0x2f7   :  { %v5099_v47 = vadd.f32 %v5098_v19, %v5097_v12  ;;  %6617 = vmatpush3.bf16.msra.mxu1 %v6616_v25  ;;  %v6646_v25 = vpack.c.bf16 %v2218_v4, %v2217_v33  ;;  %v6660_v12 = vpack.c.bf16 %v2224_v5, %v2223_v18  ;;  %v2226_v19 = vld [vmem:[#allocation4 + $0x1d18] sm:$0xff]  ;;  %v2245_v33 = vld [vmem:[#allocation4 + $0x1db0] sm:$0xff] }
 0x2f8   :  { %6619 = vmatprep.subr.bf16.mxu1 %v6618_v55  ;;  %v2201_v55 = vld [vmem:[#allocation4 + $0x1c50] sm:$0xff]  ;;  %v2206_v5 = vld [vmem:[#allocation4 + $0x1c78] sm:$0xff] }
 0x2f9   :  { %v8684_v13 = vadd.f32 %v5099_v47, %v8673_v21  ;;  %6641 = vmatpush3.bf16.msra.mxu0 %v6640_v61  ;;  %v6644_v21 = vpack.c.bf16 %v2200_v63, %v2199_v60  ;;  %v6648_v28 = vpack.c.bf16 %v2202_v16, %v2201_v55  ;;  %v1290_v47 = vadd.f32 %v1282_v20, %v1266_v3  ;;  %v2228_v60 = vld [vmem:[#allocation4 + $0x1d28] sm:$0xff]  ;;  %v2205_v18 = vld [vmem:[#allocation4 + $0x1c70] sm:$0xff]  ;;  %v2230_v16 = vld [vmem:[#allocation4 + $0x1d38] sm:$0xff] }
 0x2fa   :  { %6643 = vmatprep.subr.bf16.mxu0 %v6642_v34  ;;  %v6664_v61 = vpack.c.bf16 %v2226_v19, %v2225_v30  ;;  %v2227_v34 = vld [vmem:[#allocation4 + $0x1d20] sm:$0xff]  ;;  %v2229_v55 = vld [vmem:[#allocation4 + $0x1d30] sm:$0xff] }
 0x2fb   :  { %6621 = vmatpush3.bf16.msra.mxu1 %v6620_v43  ;;  %v6650_v43 = vpack.c.bf16 %v2220_v1, %v2219_v40  ;;  %v6668_v45 = vpack.c.bf16 %v2228_v60, %v2227_v34  ;;  %v2247_v20 = vld [vmem:[#allocation4 + $0x1dc0] sm:$0xff]  ;;  %v6656_v40 = vpack.c.bf16 %v2206_v5, %v2205_v18  ;;  %v2248_v1 = vld [vmem:[#allocation4 + $0x1dc8] sm:$0xff]  ;;  %v2273_v3 = vld [vmem:[#allocation4 + $0x1e90] sm:$0xff]  ;;  %v6672_v14 = vpack.c.bf16 %v2230_v16, %v2229_v55 }
 0x2fc   :  { %6623 = vmatprep.subr.bf16.mxu1 %v6622_v56  ;;  %v2203_v56 = vld [vmem:[#allocation4 + $0x1c60] sm:$0xff]  ;;  %v6674_v30 = vpack.c.bf16 %v2248_v1, %v2247_v20  ;;  %v2254_v55 = vld [vmem:[#allocation4 + $0x1df8] sm:$0xff]  ;;  %v2261_v20 = vld [vmem:[#allocation4 + $0x1e30] sm:$0xff] }
 0x2fd   :  { %6645 = vmatpush3.bf16.msra.mxu0 %v6644_v21  ;;  %v6652_v4 = vpack.c.bf16 %v2204_v51, %v2203_v56  ;;  %v2271_v21 = vld [vmem:[#allocation4 + $0x1e80] sm:$0xff]  ;;  %v2257_v51 = vld [vmem:[#allocation4 + $0x1e10] sm:$0xff] }
 0x2fe   :  { %6647 = vmatprep.subr.bf16.mxu0 %v6646_v25  ;;  %v6690_v37 = vpack.c.bf16 %v2272_v49, %v2271_v21  ;;  %v2231_v19 = vld [vmem:[#allocation4 + $0x1d40] sm:$0xff]  ;;  %v2236_v21 = vld [vmem:[#allocation4 + $0x1d68] sm:$0xff]  ;;  %v2253_v49 = vld [vmem:[#allocation4 + $0x1df0] sm:$0xff] }
 0x2ff   :  { %6625 = vmatpush3.bf16.msra.mxu1 %v6624_v36  ;;  %v5132_v11 = vpop.f32.mrb[14].mxu0  ;;  %v2246_v36 = vld [vmem:[#allocation4 + $0x1db8] sm:$0xff]  ;;  %v2251_v34 = vld [vmem:[#allocation4 + $0x1de0] sm:$0xff] }
 0x300   :  { %6659 = vmatprep.subr.bf16.mxu1 %v6658_v52  ;;  %v5133_v17 = vpop.f32.mrb[15].mxu0  ;;  %v6654_v52 = vpack.c.bf16 %v2222_v6, %v2221_v53  ;;  %v6670_v25 = vpack.c.bf16 %v2246_v36, %v2245_v33  ;;  %v2275_v53 = vld [vmem:[#allocation4 + $0x1ea0] sm:$0xff]  ;;  %v2276_v6 = vld [vmem:[#allocation4 + $0x1ea8] sm:$0xff]  ;;  %v2278_v36 = vld [vmem:[#allocation4 + $0x1eb8] sm:$0xff] }
 0x301   :  { %v5134_v63 = vadd.f32 %v5133_v17, %v5132_v11  ;;  %6649 = vmatpush3.bf16.msra.mxu0 %v6648_v28  ;;  %v2249_v28 = vld [vmem:[#allocation4 + $0x1dd0] sm:$0xff]  ;;  %v2258_v11 = vld [vmem:[#allocation4 + $0x1e18] sm:$0xff]  ;;  %v6698_v42 = vpack.c.bf16 %v2276_v6, %v2275_v53  ;;  %v2259_v33 = vld [vmem:[#allocation4 + $0x1e20] sm:$0xff]  ;;  %v6702_v16 = vpack.c.bf16 %v2278_v36, %v2277_v41  ;;  %v1281_v6 = vsel %vm1273_vm5, %v7942_v8, 0.0 }
 0x302   :  { %4274 = vmatmul.mubr.f32.vlgmr.msra.gmra.mrb[26].mxu1 %v1253_v50  ;;  %6651 = vmatprep.subr.bf16.mxu0 %v6650_v43  ;;  %v2256_v50 = vld [vmem:[#allocation4 + $0x1e08] sm:$0xff]  ;;  %v1284_v43 = vsel %vm1276_vm6, %v8321_v29, 0.0  ;;  %v2234_v29 = vld [vmem:[#allocation4 + $0x1d58] sm:$0xff]  ;;  %v6696_v60 = vpack.c.bf16 %v2258_v11, %v2257_v51  ;;  %v2235_v5 = vld [vmem:[#allocation4 + $0x1d60] sm:$0xff]  ;;  %v1270_v8 = vsel %vm1262_vm14, %v8435_v39, 0.0 }
 0x303   :  { %6661 = vmatpush3.bf16.msra.mxu1 %v6660_v12  ;;  %4413 = vmatprep.mubr.f32.mxu1 %v1290_v47  ;;  %v8695_v7 = vadd.f32 %v5134_v63, %v8684_v13  ;;  %v2255_v12 = vld [vmem:[#allocation4 + $0x1e00] sm:$0xff]  ;;  %v1279_v13 = vsel %vm1271_vm2, %v7892_v27, 0.0  ;;  %v1263_v47 = vsel %vm1255_vm9, %v8885_v22, 0.0  ;;  %v1292_v17 = vadd.f32 %v1284_v43, %v1268_v2  ;;  %v2252_v63 = vld [vmem:[#allocation4 + $0x1de8] sm:$0xff]  ;;  %v2305_v53 = vld [vmem:[#allocation4 + $0x1f90] sm:$0xff] }
 0x304   :  { %6663 = vmatprep.subr.bf16.mxu1 %v6662_v38  ;;  %v2274_v38 = vld [vmem:[#allocation4 + $0x1e98] sm:$0xff]  ;;  %v6692_v26 = vpack.c.bf16 %v2256_v50, %v2255_v12  ;;  %v1287_v56 = vadd.f32 %v1279_v13, %v1263_v47  ;;  %v6678_v22 = vpack.c.bf16 %v2250_v10, %v2249_v28  ;;  %v6682_v18 = vpack.c.bf16 %v2252_v63, %v2251_v34  ;;  %v2280_v12 = vld [vmem:[#allocation4 + $0x1ec8] sm:$0xff]  ;;  %v2281_v10 = vld [vmem:[#allocation4 + $0x1ed0] sm:$0xff] }
 0x305   :  { %6653 = vmatpush3.bf16.msra.mxu0 %v6652_v4  ;;  %v6694_v27 = vpack.c.bf16 %v2274_v38, %v2273_v3  ;;  %v2260_v4 = vld [vmem:[#allocation4 + $0x1e28] sm:$0xff]  ;;  %v6684_v13 = vpack.c.bf16 %v2236_v21, %v2235_v5  ;;  %v6686_v3 = vpack.c.bf16 %v2254_v55, %v2253_v49  ;;  %v2237_v38 = vld [vmem:[#allocation4 + $0x1d70] sm:$0xff]  ;;  %v2287_v11 = vld [vmem:[#allocation4 + $0x1f00] sm:$0xff]  ;;  %v1265_v34 = vsel %vm1257_vm15, %v7950_v58, 0.0 }
 0x306   :  { %6655 = vmatprep.subr.bf16.mxu0 %v6654_v52  ;;  %v2304_v28 = vld [vmem:[#allocation4 + $0x1f88] sm:$0xff]  ;;  %v1289_v63 = vadd.f32 %v1281_v6, %v1265_v34  ;;  %v2307_v41 = vld [vmem:[#allocation4 + $0x1fa0] sm:$0xff]  ;;  %v2285_v21 = vld [vmem:[#allocation4 + $0x1ef0] sm:$0xff] }
 0x307   :  { %6665 = vmatpush3.bf16.msra.mxu1 %v6664_v61  ;;  %v6676_v61 = vpack.c.bf16 %v2232_v23, %v2231_v19  ;;  %v2264_v43 = vld [vmem:[#allocation4 + $0x1e48] sm:$0xff]  ;;  %v2315_v6 = vld [vmem:[#allocation4 + $0x1fe0] sm:$0xff] }
 0x308   :  { %6667 = vmatprep.subr.bf16.mxu1 %v6666_v59  ;;  %v2233_v59 = vld [vmem:[#allocation4 + $0x1d50] sm:$0xff]  ;;  %v2288_v2 = vld [vmem:[#allocation4 + $0x1f08] sm:$0xff] }
 0x309   :  { %6657 = vmatpush3.bf16.msra.mxu0 %v6656_v40  ;;  %v6680_v52 = vpack.c.bf16 %v2234_v29, %v2233_v59  ;;  %v2262_v40 = vld [vmem:[#allocation4 + $0x1e38] sm:$0xff]  ;;  %v1286_v59 = vsel %vm1278_vm3, %v8443_v54, 0.0  ;;  %v2283_v29 = vld [vmem:[#allocation4 + $0x1ee0] sm:$0xff]  ;;  %v2308_v54 = vld [vmem:[#allocation4 + $0x1fa8] sm:$0xff] }
 0x30a   :  { %6691 = vmatprep.subr.bf16.mxu0 %v6690_v37  ;;  %v2279_v37 = vld [vmem:[#allocation4 + $0x1ec0] sm:$0xff]  ;;  %v6704_v19 = vpack.c.bf16 %v2262_v40, %v2261_v20  ;;  %v1294_v36 = vadd.f32 %v1286_v59, %v1270_v8  ;;  %v2268_v5 = vld [vmem:[#allocation4 + $0x1e68] sm:$0xff]  ;;  %v2309_v20 = vld [vmem:[#allocation4 + $0x1fb0] sm:$0xff] }
 0x30b   :  { %6669 = vmatpush3.bf16.msra.mxu1 %v6668_v45  ;;  %v6700_v45 = vpack.c.bf16 %v2260_v4, %v2259_v33  ;;  %v6706_v47 = vpack.c.bf16 %v2280_v12, %v2279_v37  ;;  %v2289_v33 = vld [vmem:[#allocation4 + $0x1f10] sm:$0xff]  ;;  %v2290_v4 = vld [vmem:[#allocation4 + $0x1f18] sm:$0xff]  ;;  %v2292_v55 = vld [vmem:[#allocation4 + $0x1f28] sm:$0xff]  ;;  %v6718_v37 = vpack.c.bf16 %v2286_v32, %v2285_v21 }
 0x30c   :  { %6671 = vmatprep.subr.bf16.mxu1 %v6670_v25  ;;  %4344 = vmatmul.mubr.f32.vlgmr.msra.gmra.mrb[28].mxu0 %v1287_v56  ;;  %v2282_v56 = vld [vmem:[#allocation4 + $0x1ed8] sm:$0xff]  ;;  %v6728_v49 = vpack.c.bf16 %v2290_v4, %v2289_v33  ;;  %v2269_v12 = vld [vmem:[#allocation4 + $0x1e70] sm:$0xff] }
 0x30d   :  { %6693 = vmatpush3.bf16.msra.mxu0 %v6692_v26  ;;  %4483 = vmatprep.mubr.f32.mxu0 %v1292_v17  ;;  %v2263_v26 = vld [vmem:[#allocation4 + $0x1e40] sm:$0xff]  ;;  %v6710_v17 = vpack.c.bf16 %v2282_v56, %v2281_v10  ;;  %v2296_v56 = vld [vmem:[#allocation4 + $0x1f48] sm:$0xff]  ;;  %v2301_v8 = vld [vmem:[#allocation4 + $0x1f70] sm:$0xff] }
 0x30e   :  { %6695 = vmatprep.subr.bf16.mxu0 %v6694_v27  ;;  %v2295_v10 = vld [vmem:[#allocation4 + $0x1f40] sm:$0xff] }
 0x30f   :  { %6673 = vmatpush3.bf16.msra.mxu1 %v6672_v14  ;;  %v2238_v14 = vld [vmem:[#allocation4 + $0x1d78] sm:$0xff] }
 0x310   :  { %6675 = vmatprep.subr.bf16.mxu1 %v6674_v30  ;;  %v2303_v30 = vld [vmem:[#allocation4 + $0x1f80] sm:$0xff]  ;;  %v6688_v27 = vpack.c.bf16 %v2238_v14, %v2237_v38  ;;  %v2293_v14 = vld [vmem:[#allocation4 + $0x1f30] sm:$0xff] }
 0x311   :  { %6697 = vmatpush3.bf16.msra.mxu0 %v6696_v60  ;;  %v6722_v51 = vpack.c.bf16 %v2304_v28, %v2303_v30  ;;  %v6724_v60 = vpack.c.bf16 %v2288_v2, %v2287_v11  ;;  %v2294_v30 = vld [vmem:[#allocation4 + $0x1f38] sm:$0xff]  ;;  %v2311_v28 = vld [vmem:[#allocation4 + $0x1fc0] sm:$0xff]  ;;  %v6740_v2 = vpack.c.bf16 %v2296_v56, %v2295_v10 }
 0x312   :  { %6699 = vmatprep.subr.bf16.mxu0 %v6698_v42 }
 0x313   :  { %6677 = vmatpush3.bf16.msra.mxu1 %v6676_v61  ;;  %v2306_v61 = vld [vmem:[#allocation4 + $0x1f98] sm:$0xff] }
 0x314   :  { %6679 = vmatprep.subr.bf16.mxu1 %v6678_v22  ;;  %v2265_v22 = vld [vmem:[#allocation4 + $0x1e50] sm:$0xff]  ;;  %v6726_v42 = vpack.c.bf16 %v2306_v61, %v2305_v53  ;;  %v2316_v61 = vld [vmem:[#allocation4 + $0x1fe8] sm:$0xff] }
 0x315   :  { %v5167_v25 = vpop.f32.mrb[14].mxu1  ;;  %6701 = vmatpush3.bf16.msra.mxu0 %v6700_v45  ;;  %v6712_v48 = vpack.c.bf16 %v2266_v35, %v2265_v22  ;;  %v6730_v45 = vpack.c.bf16 %v2308_v54, %v2307_v41  ;;  %v2299_v22 = vld [vmem:[#allocation4 + $0x1f60] sm:$0xff]  ;;  %v2300_v35 = vld [vmem:[#allocation4 + $0x1f68] sm:$0xff]  ;;  %v1285_v41 = vsel %vm1277_vm10, %v8440_v57, 0.0 }
 0x316   :  { %v5168_v1 = vpop.f32.mrb[15].mxu1  ;;  %6703 = vmatprep.subr.bf16.mxu0 %v6702_v16 }
 0x317   :  { %v5169_v50 = vadd.f32 %v5168_v1, %v5167_v25  ;;  %6681 = vmatpush3.bf16.msra.mxu1 %v6680_v52  ;;  %v6714_v52 = vpack.c.bf16 %v2284_v62, %v2283_v29  ;;  %v2291_v25 = vld [vmem:[#allocation4 + $0x1f20] sm:$0xff]  ;;  %v2310_v1 = vld [vmem:[#allocation4 + $0x1fb8] sm:$0xff] }
 0x318   :  { %6683 = vmatprep.subr.bf16.mxu1 %v6682_v18  ;;  %v2267_v18 = vld [vmem:[#allocation4 + $0x1e60] sm:$0xff]  ;;  %v6734_v38 = vpack.c.bf16 %v2310_v1, %v2309_v20  ;;  %v2318_v29 = vld [vmem:[#allocation4 + $0x1ff8] sm:$0xff] }
 0x319   :  { %v8706_v23 = vadd.f32 %v5169_v50, %v8695_v7  ;;  %6705 = vmatpush3.bf16.msra.mxu0 %v6704_v19  ;;  %v6708_v7 = vpack.c.bf16 %v2264_v43, %v2263_v26  ;;  %v6716_v40 = vpack.c.bf16 %v2268_v5, %v2267_v18  ;;  %v2270_v50 = vld [vmem:[#allocation4 + $0x1e78] sm:$0xff]  ;;  %v1283_v26 = vsel %vm1275_vm8, %v8202_v15, 0.0  ;;  %v2297_v15 = vld [vmem:[#allocation4 + $0x1f50] sm:$0xff] }
 0x31a   :  { %6707 = vmatprep.subr.bf16.mxu0 %v6706_v47  ;;  %v6720_v19 = vpack.c.bf16 %v2270_v50, %v2269_v12  ;;  %v2312_v47 = vld [vmem:[#allocation4 + $0x1fc8] sm:$0xff]  ;;  %v6736_v43 = vpack.c.bf16 %v2294_v30, %v2293_v14  ;;  %v1291_v11 = vadd.f32 %v1283_v26, %v1267_v31 }
 0x31b   :  { %6685 = vmatpush3.bf16.msra.mxu1 %v6684_v13 }
 0x31c   :  { %6687 = vmatprep.subr.bf16.mxu1 %v6686_v3  ;;  %v6732_v3 = vpack.c.bf16 %v2292_v55, %v2291_v25 }
 0x31d   :  { %6709 = vmatpush3.bf16.msra.mxu0 %v6708_v7  ;;  %v2298_v7 = vld [vmem:[#allocation4 + $0x1f58] sm:$0xff] }
 0x31e   :  { %6711 = vmatprep.subr.bf16.mxu0 %v6710_v17  ;;  %v6744_v44 = vpack.c.bf16 %v2298_v7, %v2297_v15  ;;  %v6746_v17 = vpack.c.bf16 %v2316_v61, %v2315_v6 }
 0x31f   :  { %6689 = vmatpush3.bf16.msra.mxu1 %v6688_v27  ;;  %v5202_v58 = vpop.f32.mrb[16].mxu0  ;;  %v2313_v27 = vld [vmem:[#allocation4 + $0x1fd0] sm:$0xff] }
 0x320   :  { %6723 = vmatprep.subr.bf16.mxu1 %v6722_v51  ;;  %v5203_v39 = vpop.f32.mrb[17].mxu0  ;;  %v2314_v51 = vld [vmem:[#allocation4 + $0x1fd8] sm:$0xff] }
 0x321   :  { %v5204_v16 = vadd.f32 %v5203_v39, %v5202_v58  ;;  %6713 = vmatpush3.bf16.msra.mxu0 %v6712_v48  ;;  %v6742_v53 = vpack.c.bf16 %v2314_v51, %v2313_v27  ;;  %v1269_v48 = vsel %vm1261_vm4, %v8438_v9, 0.0 }
 0x322   :  { %4414 = vmatmul.mubr.f32.vlgmr.msra.gmra.mrb[28].mxu1 %v1289_v63  ;;  %6715 = vmatprep.subr.bf16.mxu0 %v6714_v52  ;;  %v6750_v63 = vpack.c.bf16 %v2318_v29, %v2317_v24 }
 0x323   :  { %6725 = vmatpush3.bf16.msra.mxu1 %v6724_v60  ;;  %4553 = vmatprep.mubr.f32.mxu1 %v1294_v36  ;;  %v3506_v13 = vadd.f32 %v5204_v16, %v8706_v23  ;;  %v6738_v23 = vpack.c.bf16 %v2312_v47, %v2311_v28  ;;  %v6748_v60 = vpack.c.bf16 %v2300_v35, %v2299_v22 }
 0x324   :  { %6727 = vmatprep.subr.bf16.mxu1 %v6726_v42  ;;  %v2302_v42 = vld [vmem:[#allocation4 + $0x1f78] sm:$0xff]  ;;  %v1293_v36 = vadd.f32 %v1285_v41, %v1269_v48 }
 0x325   :  { %6717 = vmatpush3.bf16.msra.mxu0 %v6716_v40  ;;  %v6752_v4 = vpack.c.bf16 %v2302_v42, %v2301_v8 }
 0x326   :  { %6719 = vmatprep.subr.bf16.mxu0 %v6718_v37 }
 0x327   :  { %6729 = vmatpush3.bf16.msra.mxu1 %v6728_v49 }
 0x328   :  { %6731 = vmatprep.subr.bf16.mxu1 %v6730_v45 }
 0x329   :  { %6721 = vmatpush3.bf16.msra.mxu0 %v6720_v19 }
 0x32b   :  { %6733 = vmatpush3.bf16.msra.mxu1 %v6732_v3 }
 0x32c   :  { %6735 = vmatprep.subr.bf16.mxu1 %v6734_v38  ;;  %4484 = vmatmul.mubr.f32.vlgmr.msra.gmra.mrb[30].mxu0 %v1291_v11 }
 0x32f   :  { %6737 = vmatpush3.bf16.msra.mxu1 %v6736_v43 }
 0x330   :  { %6739 = vmatprep.subr.bf16.mxu1 %v6738_v23 }
 0x333   :  { %6741 = vmatpush3.bf16.msra.mxu1 %v6740_v2 }
 0x334   :  { %6743 = vmatprep.subr.bf16.mxu1 %v6742_v53 }
 0x335   :  { %v5237_v59 = vpop.f32.mrb[16].mxu1 }
 0x336   :  { %v5238_v62 = vpop.f32.mrb[17].mxu1 }
 0x337   :  { %v5239_v34 = vadd.f32 %v5238_v62, %v5237_v59  ;;  %6745 = vmatpush3.bf16.msra.mxu1 %v6744_v44 }
 0x338   :  { %6747 = vmatprep.subr.bf16.mxu1 %v6746_v17 }
 0x339   :  { %v3576_v33 = vadd.f32 %v5239_v34, %v3506_v13 }
 0x33b   :  { %6749 = vmatpush3.bf16.msra.mxu1 %v6748_v60 }
 0x33c   :  { %6751 = vmatprep.subr.bf16.mxu1 %v6750_v63 }
 0x33f   :  { %6753 = vmatpush3.bf16.msra.mxu1 %v6752_v4  ;;  %v5272_v54 = vpop.f32.mrb[18].mxu0 }
 0x340   :  { %v5273_v52 = vpop.f32.mrb[19].mxu0 }
 0x341   :  { %v5274_v18 = vadd.f32 %v5273_v52, %v5272_v54 }
 0x342   :  { %4554 = vmatmul.mubr.f32.vlgmr.msra.gmra.mrb[30].mxu1 %v1293_v36 }
 0x343   :  { %v3646_v5 = vadd.f32 %v5274_v18, %v3576_v33 }
 0x355   :  { %v5307_v58 = vpop.f32.mrb[18].mxu1 }
 0x356   :  { %v5308_v21 = vpop.f32.mrb[19].mxu1 }
 0x357   :  { %v5309_v32 = vadd.f32 %v5308_v21, %v5307_v58 }
 0x359   :  { %v3716_v46 = vadd.f32 %v5309_v32, %v3646_v5 }
 0x35f   :  { %v5342_v49 = vpop.f32.mrb[20].mxu0 }
 0x360   :  { %v5343_v39 = vpop.f32.mrb[21].mxu0 }
 0x361   :  { %v5344_v45 = vadd.f32 %v5343_v39, %v5342_v49 }
 0x363   :  { %v3786_v25 = vadd.f32 %v5344_v45, %v3716_v46 }
 0x375   :  { %v5377_v57 = vpop.f32.mrb[20].mxu1 }
 0x376   :  { %v5378_v55 = vpop.f32.mrb[21].mxu1 }
 0x377   :  { %v5379_v0 = vadd.f32 %v5378_v55, %v5377_v57 }
 0x379   :  { %v3856_v16 = vadd.f32 %v5379_v0, %v3786_v25 }
 0x37f   :  { %v5412_v20 = vpop.f32.mrb[22].mxu0 }
 0x380   :  { %v5413_v9 = vpop.f32.mrb[23].mxu0 }
 0x381   :  { %v5414_v40 = vadd.f32 %v5413_v9, %v5412_v20 }
 0x383   :  { %v3926_v1 = vadd.f32 %v5414_v40, %v3856_v16 }
 0x395   :  { %v5447_v37 = vpop.f32.mrb[22].mxu1 }
 0x396   :  { %v5448_v12 = vpop.f32.mrb[23].mxu1 }
 0x397   :  { %v5449_v50 = vadd.f32 %v5448_v12, %v5447_v37 }
 0x399   :  { %v3996_v13 = vadd.f32 %v5449_v50, %v3926_v1 }
 0x39f   :  { %v5482_v3 = vpop.f32.mrb[24].mxu0 }
 0x3a0   :  { %v5483_v38 = vpop.f32.mrb[25].mxu0 }
 0x3a1   :  { %v5484_v14 = vadd.f32 %v5483_v38, %v5482_v3 }
 0x3a3   :  { %v4066_v30 = vadd.f32 %v5484_v14, %v3996_v13 }
 0x3b5   :  { %v5517_v19 = vpop.f32.mrb[24].mxu1 }
 0x3b6   :  { %v5518_v28 = vpop.f32.mrb[25].mxu1 }
 0x3b7   :  { %v5519_v47 = vadd.f32 %v5518_v28, %v5517_v19 }
 0x3b9   :  { %v4136_v26 = vadd.f32 %v5519_v47, %v4066_v30 }
 0x3bf   :  { %v5552_v43 = vpop.f32.mrb[26].mxu0 }
 0x3c0   :  { %v5553_v23 = vpop.f32.mrb[27].mxu0 }
 0x3c1   :  { %v5554_v10 = vadd.f32 %v5553_v23, %v5552_v43 }
 0x3c3   :  { %v4206_v56 = vadd.f32 %v5554_v10, %v4136_v26 }
 0x3d5   :  { %v5587_v31 = vpop.f32.mrb[26].mxu1 }
 0x3d6   :  { %v5588_v27 = vpop.f32.mrb[27].mxu1 }
 0x3d7   :  { %v5589_v51 = vadd.f32 %v5588_v27, %v5587_v31 }
 0x3d9   :  { %v4276_v11 = vadd.f32 %v5589_v51, %v4206_v56 }
 0x3df   :  { %v5622_v2 = vpop.f32.mrb[28].mxu0 }
 0x3e0   :  { %v5623_v53 = vpop.f32.mrb[29].mxu0 }
 0x3e1   :  { %v5624_v15 = vadd.f32 %v5623_v53, %v5622_v2 }
 0x3e3   :  { %v4346_v7 = vadd.f32 %v5624_v15, %v4276_v11 }
 0x3f5   :  { %v5657_v6 = vpop.f32.mrb[28].mxu1 }
 0x3f6   :  { %v5658_v61 = vpop.f32.mrb[29].mxu1 }
 0x3f7   :  { %v5659_v44 = vadd.f32 %v5658_v61, %v5657_v6 }
 0x3f9   :  { %v4416_v17 = vadd.f32 %v5659_v44, %v4346_v7 }
 0x3ff   :  { %v5692_v22 = vpop.f32.mrb[30].mxu0 }
 0x400   :  { %v5693_v35 = vpop.f32.mrb[31].mxu0 }
 0x401   :  { %v5694_v59 = vadd.f32 %v5693_v35, %v5692_v22 }
 0x403   :  { %v4486_v24 = vadd.f32 %v5694_v59, %v4416_v17 }
 0x415   :  { %v5727_v29 = vpop.f32.mrb[30].mxu1 }
 0x416   :  { %v5728_v62 = vpop.f32.mrb[31].mxu1 }
 0x417   :  { %v5729_v34 = vadd.f32 %v5728_v62, %v5727_v29 }
 0x419   :  { %v4556_v60 = vadd.f32 %v5729_v34, %v4486_v24 }
 0x41b   :  { %v4559_v63 = vmul.f32 %v4556_v60, %v4556_v60 }
 0x41d   :  { %4560 = vadd.xlane.f32.xlu0 %v4559_v63 }
 0x4aa   :  { %v4561_v8 = vpop.xlane.xlu0 %4560 }
 0x4ab   :  { %v4562_v42 = vmax.f32 %v4561_v8, 1e-24 }
 0x4ad   :  { %6796 = vrsqrt.f32 %v4562_v42 }
 0x4b7   :  { %v6797_v33 = vpop.eup %6796 }
 0x4b8   :  { %v4564_v4 = vmul.f32 %v6797_v33, %v4556_v60 }
 0x4ba   :  { %v4565_v41 = vmax.f32 %v4564_v4, 0.0 }
 0x4bc   :  { %v4566_v48 = vmin.f32 %v4565_v41, 0.2 }
 0x4be   :  { %v4567_v36 = vmul.f32 %v4566_v48, %v4566_v48 }
 0x4c0   :  { %4568 = vadd.xlane.f32.xlu1 %v4567_v36 }
 0x54d   :  { %v4569_v54 = vpop.xlane.xlu1 %4568 }
 0x54e   :  { %v4570_v52 = vmax.f32 %v4569_v54, 1e-24 }
 0x550   :  { %6798 = vrsqrt.f32 %v4570_v52 }
 0x55a   :  { %v6799_v18 = vpop.eup %6798 }
 0x55b   :  { %v4572_v5 = vmul.f32 %v6799_v18, %v4566_v48 }
 0x55d   :  { %v4573_v58 = vand.u32 2147483647, %v4572_v5 }
 0x55f   :  { %4574 = vadd.xlane.f32.xlu0 %v4573_v58 }
 0x5ec   :  { %v4575_v21 = vpop.xlane.xlu0 %4574 }
 0x5ed   :  { %v4576_v32 = vmax.f32 %v4575_v21, 1e-12 }
 0x5ef   :  { %6800 = vrcp.f32 %v4576_v32 }
 0x5f9   :  { %v6801_v46 = vpop.eup %6800 }
 0x5fa   :  { %v4578_v49 = vmul.f32 %v6801_v46, %v4572_v5 }
 0x5fc   :  { %v4579_v39 = vadd.f32 1e-10, %v4578_v49 }
 0x5fe   :  { %6802 = vrsqrt.f32 %v4579_v39  ;;  %vm4582_vm7 = vcmp.eq.f32.partialorder %v4579_v39, inf  ;;  %v4585_v57 = vand.u32 2147483648, %v4579_v39  ;;  %vm4584_vm12 = vcmp.eq.f32.partialorder %v4579_v39, 0.0 }
 0x608   :  { %v6803_v45 = vpop.eup %6802 }
 0x609   :  { %v4581_v25 = vmul.f32 %v6803_v45, %v4579_v39 }
 0x60b   :  { %v4583_v55 = vsel %vm4582_vm7, %v4579_v39, %v4581_v25 }
 0x60c   :  { %v4586_v0 = vsel %vm4584_vm12, %v4585_v57, %v4583_v55 }
 0x60d   :  { %4587 = vst [vmem:[%s8731_s3] sm:$0xff] %v4586_v0 }
 0x60e   :  { %4592 = vsyncpa [#allocation3], 1 }
 0x60f   :  { %4593 = vsyncpa [#allocation5], 1 }

</bundles_post_ra>
